<compile_context>
chip_gen: v6e
topology: v6e:2x2x1
jax: 0.10.0
libtpu: 0.0.40
codegen_flags: <defaults>
</compile_context>

<pallas_src>
import functools

import numpy as np
import jax
import jax.numpy as jnp
from jax import lax
from jax.experimental import pallas as pl
from jax.experimental.pallas import tpu as pltpu

C_IN = 5                                   # c_input
L_FREQ = 10                                # frequency bands
POS_DIM = C_IN * (2 * L_FREQ) + C_IN       # 105
FEAT_PAD = 128                             # lane-aligned hidden/encoding width
HIDDEN = 128
OUT_DIM = 3
OUT_PAD = 8                                # lane-padded output width (full last dim)
N_HIDDEN = 5                               # five 128-wide layers; the 3-wide head is separate
TM_MAX = 4096                              # max row tile (per-step overhead amortization)


def _round_up(n, m):
    return ((n + m - 1) // m) * m


def _cdiv(a, b):
    return -(-a // b)


# ---------------------------------------------------------------------------
# Constant encode matrices
# ---------------------------------------------------------------------------
@functools.lru_cache(maxsize=1)
def _encode_matrix_np():
    """[C_IN, 128] frequency scatter: (x @ S)[:, C_IN + l*C_IN + c]       = 2^l * x_c
                                      (x @ S)[:, C_IN + L*C_IN + l*C_IN+c] = 2^l * x_c."""
    s = np.zeros((C_IN, FEAT_PAD), dtype=np.float32)
    for l in range(L_FREQ):
        f = float(2.0 ** l)
        for c in range(C_IN):
            s[c, C_IN + l * C_IN + c] = f                         # sin lanes
            s[c, C_IN + L_FREQ * C_IN + l * C_IN + c] = f         # cos lanes
    return s


@functools.lru_cache(maxsize=1)
def _phase_np():
    """[1, 128] cos phase: cos(x) = sin(x + pi/2) on the cos lanes, 0 elsewhere."""
    p = np.zeros((1, FEAT_PAD), dtype=np.float32)
    p[0, C_IN + L_FREQ * C_IN:POS_DIM] = np.pi / 2.0
    return p


# ---------------------------------------------------------------------------
# Generation-dependent knobs
# ---------------------------------------------------------------------------
def _device_kind():
    try:
        return jax.devices()[0].device_kind.lower()
    except Exception:
        return ""


def _elementwise_dtype():
    # v6e/v7x VPUs are bf16-native; v5e (and older) are not -> keep f32 there.
    kind = _device_kind()
    return jnp.bfloat16 if ("v6" in kind or "v7" in kind) else jnp.float32


def _is_dual_core():
    return "v7" in _device_kind()


def _choose_tile(n, dual_core):
    """Padding-aware row tile: split n as evenly as possible over the minimum number
    of <= TM_MAX tiles; on dual-TensorCore chips keep the grid at >= 2 (even) steps."""
    num_tiles = max(1, _cdiv(n, TM_MAX))
    if dual_core and n > 128:
        num_tiles = max(num_tiles, 2)
        if num_tiles % 2:
            num_tiles += 1
    tm = min(TM_MAX, _round_up(_cdiv(n, num_tiles), 128))
    grid = _cdiv(n, tm)
    return tm, grid


# ---------------------------------------------------------------------------
# Kernel: one row tile of the full forward pass
# ---------------------------------------------------------------------------
def _motion_kernel(x_ref, s_ref, phase_ref, w1id_ref, w_ref, b_ref, wl_ref, bl_ref,
                   o_ref):
    """x_ref    : [TM, 5]      f32  raw inputs
       s_ref    : [5, 128]     f32  frequency scatter matrix
       phase_ref: [1, 128]     f32  +pi/2 on cos lanes
       w1id_ref : [5, 128]     f32  layer-1 rows for the raw-x (identity) lanes
       w_ref    : [5,128,128]  bf16 hidden-layer weights (layer-0 raw-x rows zeroed)
       b_ref    : [5, 128]     f32 or bf16 hidden-layer biases (elementwise dtype)
       wl_ref   : [128, 8]     bf16 head weight (cols 3..7 zero)
       bl_ref   : [1, 8]       f32  head bias
       o_ref    : [TM, 8]      f32  output (cols 0..2 meaningful)
    """
    x = x_ref[...]                                        # [TM, 5] f32
    ew = b_ref.dtype                                      # elementwise dtype (f32 / bf16)

    # Positional encoding: exact f32 scatter/scale matmul + cos phase + one sin.
    # Zero lanes give sin(0) = 0 and hit zeroed weight rows, so no select is needed.
    preact = jnp.dot(x, s_ref[...], preferred_element_type=jnp.float32,
                     precision=lax.Precision.HIGHEST)
    enc = jnp.sin(preact + phase_ref[...])                # f32 sin argument

    # Layer 1 (split): frequency lanes via the main 128x128 bf16 matmul,
    # raw-x identity lanes via a tiny K=5 f32 matmul.  f32 accumulation.
    acc = jnp.dot(enc.astype(jnp.bfloat16), w_ref[0],
                  preferred_element_type=jnp.float32)
    acc += jnp.dot(x, w1id_ref[...], preferred_element_type=jnp.float32)
    h = jnp.maximum(acc.astype(ew) + b_ref[0], 0.0)

    # Remaining 128x128 hidden layers: bf16 MXU matmul, f32 accumulate,
    # bias/ReLU in the generation-appropriate elementwise dtype.
    for i in range(1, N_HIDDEN):
        acc = jnp.dot(h.astype(jnp.bfloat16), w_ref[i],
                      preferred_element_type=jnp.float32)
        h = jnp.maximum(acc.astype(ew) + b_ref[i], 0.0)

    # Narrow head: [TM,128] @ [128,8] -> [TM,8]; only 8 lanes written back to HBM.
    out = jnp.dot(h.astype(jnp.bfloat16), wl_ref[...],
                  preferred_element_type=jnp.float32) + bl_ref[...]
    o_ref[...] = out.astype(o_ref.dtype)


# ---------------------------------------------------------------------------
# Wrapper
# ---------------------------------------------------------------------------
def motion_net_forward(x, w_hidden, b_hidden, w_last, b_last, w1_id):
    """x: [..., C_IN] -> flow [..., 3] (matches MotionNet.forward, input_time=False)."""
    # TODO(synk): the `input_time=True` temporal-interpolation branch of
    #   MotionNet.forward (default-off in the reference) is not implemented.
    bins_mode = x.ndim > 2
    l_bins = x.shape[1] if bins_mode else None
    x2 = x.reshape(-1, C_IN).astype(jnp.float32)
    n = x2.shape[0]

    ew_dtype = _elementwise_dtype()
    tm, grid = _choose_tile(n, _is_dual_core())

    s_mat = jnp.asarray(_encode_matrix_np())
    phase = jnp.asarray(_phase_np())

    out = pl.pallas_call(
        _motion_kernel,
        out_shape=jax.ShapeDtypeStruct((n, OUT_PAD), jnp.float32),
        grid_spec=pltpu.PrefetchScalarGridSpec(
            num_scalar_prefetch=0,
            grid=(grid,),
            in_specs=[
                pl.BlockSpec((tm, C_IN), lambda i: (i, 0)),             # x
                pl.BlockSpec((C_IN, FEAT_PAD), lambda i: (0, 0)),       # S
                pl.BlockSpec((1, FEAT_PAD), lambda i: (0, 0)),          # cos phase
                pl.BlockSpec((C_IN, FEAT_PAD), lambda i: (0, 0)),       # W1 raw-x rows
                pl.BlockSpec((N_HIDDEN, FEAT_PAD, FEAT_PAD), lambda i: (0, 0, 0)),
                pl.BlockSpec((N_HIDDEN, FEAT_PAD), lambda i: (0, 0)),
                pl.BlockSpec((FEAT_PAD, OUT_PAD), lambda i: (0, 0)),
                pl.BlockSpec((1, OUT_PAD), lambda i: (0, 0)),
            ],
            out_specs=pl.BlockSpec((tm, OUT_PAD), lambda i: (i, 0)),
        ),
        compiler_params=pltpu.CompilerParams(
            dimension_semantics=("parallel",),
            vmem_limit_bytes=48 * 1024 * 1024),
    )(x2, s_mat, phase, w1_id, w_hidden, b_hidden.astype(ew_dtype), w_last, b_last)

    flow = out[:, :OUT_DIM]
    if bins_mode:
        flow = flow.reshape(-1, l_bins, OUT_DIM)
    return flow


# ---------------------------------------------------------------------------
# Parameters (torch.nn.Linear-style init), padded + stacked, matmul weights bf16.
# ---------------------------------------------------------------------------
def init_params(key):
    dims = [POS_DIM, HIDDEN, HIDDEN, HIDDEN, HIDDEN, HIDDEN, OUT_DIM]
    keys = jax.random.split(key, 12)

    w_hidden = jnp.zeros((N_HIDDEN, FEAT_PAD, FEAT_PAD), jnp.float32)
    b_hidden = jnp.zeros((N_HIDDEN, FEAT_PAD), jnp.float32)
    for i in range(N_HIDDEN):
        fan_in, fan_out = dims[i], dims[i + 1]
        bound = 1.0 / float(np.sqrt(fan_in))
        w = jax.random.uniform(keys[2 * i], (fan_in, fan_out),
                               minval=-bound, maxval=bound, dtype=jnp.float32)
        b = jax.random.uniform(keys[2 * i + 1], (fan_out,),
                               minval=-bound, maxval=bound, dtype=jnp.float32)
        w_hidden = w_hidden.at[i, :fan_in, :fan_out].set(w)
        b_hidden = b_hidden.at[i, :fan_out].set(b)

    # Split layer 1: the raw-input rows (0..C_IN-1) are applied by a separate tiny
    # K=C_IN f32 matmul inside the kernel, so zero them in the stacked bf16 weight.
    w1_id = w_hidden[0, :C_IN, :]                                    # [C_IN, 128] f32
    w_hidden = w_hidden.at[0, :C_IN, :].set(0.0)

    fan_in, fan_out = dims[5], dims[6]
    bound = 1.0 / float(np.sqrt(fan_in))
    w_l = jax.random.uniform(keys[10], (fan_in, fan_out),
                             minval=-bound, maxval=bound, dtype=jnp.float32)
    b_l = jax.random.uniform(keys[11], (fan_out,),
                             minval=-bound, maxval=bound, dtype=jnp.float32)
    w_last = jnp.zeros((FEAT_PAD, OUT_PAD), jnp.float32).at[:, :OUT_DIM].set(w_l)
    b_last = jnp.zeros((1, OUT_PAD), jnp.float32).at[0, :OUT_DIM].set(b_l)

    # 128-wide MXU operands in bf16; biases f32 here (cast per-generation in the
    # wrapper); w1_id and the head bias stay f32.
    return (w_hidden.astype(jnp.bfloat16), b_hidden,
            w_last.astype(jnp.bfloat16), b_last, w1_id)


# ---------------------------------------------------------------------------
# Pure-JAX reference (true encoding math with the bf16-rounded weights).
# ---------------------------------------------------------------------------
def _reference_forward(x, w_hidden, b_hidden, w_last, b_last, w1_id):
    x2 = x.reshape(-1, C_IN).astype(jnp.float32)
    freqs = 2.0 ** jnp.arange(L_FREQ, dtype=jnp.float32)
    scaled = (x2[:, None, :] * freqs[None, :, None]).reshape(x2.shape[0], -1)
    enc = jnp.concatenate([x2, jnp.sin(scaled), jnp.cos(scaled)], axis=-1)
    dims = [POS_DIM, HIDDEN, HIDDEN, HIDDEN, HIDDEN]
    h = enc
    for i in range(N_HIDDEN):
        w = w_hidden[i, :dims[i], :HIDDEN].astype(jnp.float32)
        if i == 0:
            w = w.at[:C_IN, :].set(w1_id[:, :HIDDEN])   # reassemble the split layer-1
        b = b_hidden[i, :HIDDEN]
        h = jnp.maximum(h @ w + b, 0.0)
    out = h @ w_last[:, :OUT_DIM].astype(jnp.float32) + b_last[0, :OUT_DIM]
    if x.ndim > 2:
        out = out.reshape(-1, x.shape[1], OUT_DIM)
    return out


if __name__ == "__main__":
    key = jax.random.PRNGKey(0)
    k_x, k_p = jax.random.split(key)

    # bins-mode input: [B, Lbins, c_input] = [2, 8, 5]
    x = jax.random.normal(k_x, (2, 8, C_IN), dtype=jnp.float32)
    params = init_params(k_p)

    flow = jax.block_until_ready(motion_net_forward(x, *params))
    assert flow.shape == (2, 8, OUT_DIM), flow.shape

    ref = _reference_forward(x, *params)
    err = float(jnp.max(jnp.abs(flow - ref)))
    # bf16 matmul operands (+ bf16 elementwise on v6e/v7x) -> relaxed tolerance.
    assert err < 3e-2, f"max abs err {err}"

    # Also exercise the flat [N, 5] path (ragged trailing block, n = 16 < tm).
    flow_flat = jax.block_until_ready(
        motion_net_forward(x.reshape(-1, C_IN), *params))
    assert flow_flat.shape == (16, OUT_DIM)

    print("KERNEL_OK")
</pallas_src>

<mosaic_0001>
module attributes {stable_mosaic.version = 11 : i64} {
  func.func @_motion_kernel(%arg0: i32, %arg1: memref<128x5xf32, #tpu.memory_space<vmem>>, %arg2: memref<5x128xf32, #tpu.memory_space<vmem>>, %arg3: memref<1x128xf32, #tpu.memory_space<vmem>>, %arg4: memref<5x128xf32, #tpu.memory_space<vmem>>, %arg5: memref<5x128x128xbf16, #tpu.memory_space<vmem>>, %arg6: memref<5x128xf32, #tpu.memory_space<vmem>>, %arg7: memref<128x8xbf16, #tpu.memory_space<vmem>>, %arg8: memref<1x8xf32, #tpu.memory_space<vmem>>, %arg9: memref<128x8xf32, #tpu.memory_space<vmem>>) attributes {dimension_semantics = [#tpu.dimension_semantics<parallel>], iteration_bounds = array<i64: 1>, scalar_prefetch = 0 : i64, scratch_operands = 0 : i64, tpu.core_type = #tpu.core_type<tc>, window_params = [{transform_indices = @transform_0, window_bounds = array<i64: 128, 5>}, {pipeline_mode = #tpu.pipeline_mode<synchronous>, transform_indices = @transform_1, window_bounds = array<i64: 5, 128>}, {pipeline_mode = #tpu.pipeline_mode<synchronous>, transform_indices = @transform_2, window_bounds = array<i64: 1, 128>}, {pipeline_mode = #tpu.pipeline_mode<synchronous>, transform_indices = @transform_3, window_bounds = array<i64: 5, 128>}, {pipeline_mode = #tpu.pipeline_mode<synchronous>, transform_indices = @transform_4, window_bounds = array<i64: 5, 128, 128>}, {pipeline_mode = #tpu.pipeline_mode<synchronous>, transform_indices = @transform_5, window_bounds = array<i64: 5, 128>}, {pipeline_mode = #tpu.pipeline_mode<synchronous>, transform_indices = @transform_6, window_bounds = array<i64: 128, 8>}, {pipeline_mode = #tpu.pipeline_mode<synchronous>, transform_indices = @transform_7, window_bounds = array<i64: 1, 8>}, {transform_indices = @transform_8, window_bounds = array<i64: 128, 8>}]} {
    %c0 = arith.constant 0 : index
    %c0_0 = arith.constant 0 : index
    %0 = vector.load %arg1[%c0, %c0_0] : memref<128x5xf32, #tpu.memory_space<vmem>>, vector<128x5xf32>
    %c0_1 = arith.constant 0 : index
    %c0_2 = arith.constant 0 : index
    %1 = vector.load %arg2[%c0_1, %c0_2] : memref<5x128xf32, #tpu.memory_space<vmem>>, vector<5x128xf32>
    %cst = arith.constant dense<0.000000e+00> : vector<128x128xf32>
    %2 = tpu.matmul %0, %1, %cst {dimension_numbers = #tpu.dot_dimension_numbers<[1], [0], [0], [1], [0, 0, 1, 1], [], []>, precision = #tpu.contract_precision<fp32>} : vector<128x5xf32>, vector<5x128xf32>, vector<128x128xf32> -> vector<128x128xf32>
    %c0_3 = arith.constant 0 : index
    %c0_4 = arith.constant 0 : index
    %3 = vector.load %arg3[%c0_3, %c0_4] : memref<1x128xf32, #tpu.memory_space<vmem>>, vector<1x128xf32>
    %4 = vector.broadcast %3 : vector<1x128xf32> to vector<128x128xf32>
    %5 = arith.addf %2, %4 : vector<128x128xf32>
    %6 = math.sin %5 : vector<128x128xf32>
    %7 = arith.truncf %6 : vector<128x128xf32> to vector<128x128xbf16>
    %c0_5 = arith.constant 0 : index
    %c0_6 = arith.constant 0 : index
    %c0_7 = arith.constant 0 : index
    %8 = vector.load %arg5[%c0_5, %c0_6, %c0_7] : memref<5x128x128xbf16, #tpu.memory_space<vmem>>, vector<1x128x128xbf16>
    %9 = vector.shape_cast %8 : vector<1x128x128xbf16> to vector<128x128xbf16>
    %cst_8 = arith.constant dense<0.000000e+00> : vector<128x128xf32>
    %10 = tpu.matmul %7, %9, %cst_8 {dimension_numbers = #tpu.dot_dimension_numbers<[1], [0], [0], [1], [0, 0, 1, 1], [], []>} : vector<128x128xbf16>, vector<128x128xbf16>, vector<128x128xf32> -> vector<128x128xf32>
    %c0_9 = arith.constant 0 : index
    %c0_10 = arith.constant 0 : index
    %11 = vector.load %arg4[%c0_9, %c0_10] : memref<5x128xf32, #tpu.memory_space<vmem>>, vector<5x128xf32>
    %cst_11 = arith.constant dense<0.000000e+00> : vector<128x128xf32>
    %12 = tpu.matmul %0, %11, %cst_11 {dimension_numbers = #tpu.dot_dimension_numbers<[1], [0], [0], [1], [0, 0, 1, 1], [], []>} : vector<128x5xf32>, vector<5x128xf32>, vector<128x128xf32> -> vector<128x128xf32>
    %13 = arith.addf %10, %12 : vector<128x128xf32>
    %c0_12 = arith.constant 0 : index
    %c0_13 = arith.constant 0 : index
    %14 = vector.load %arg6[%c0_12, %c0_13] : memref<5x128xf32, #tpu.memory_space<vmem>>, vector<1x128xf32>
    %15 = vector.shape_cast %14 : vector<1x128xf32> to vector<128xf32>
    %16 = vector.shape_cast %15 : vector<128xf32> to vector<1x128xf32>
    %17 = vector.broadcast %16 : vector<1x128xf32> to vector<128x128xf32>
    %18 = arith.addf %13, %17 : vector<128x128xf32>
    %cst_14 = arith.constant 0.000000e+00 : f32
    %19 = vector.broadcast %cst_14 : f32 to vector<128x128xf32>
    %20 = arith.maximumf %18, %19 : vector<128x128xf32>
    %21 = arith.truncf %20 : vector<128x128xf32> to vector<128x128xbf16>
    %c1 = arith.constant 1 : index
    %c0_15 = arith.constant 0 : index
    %c0_16 = arith.constant 0 : index
    %22 = vector.load %arg5[%c1, %c0_15, %c0_16] : memref<5x128x128xbf16, #tpu.memory_space<vmem>>, vector<1x128x128xbf16>
    %23 = vector.shape_cast %22 : vector<1x128x128xbf16> to vector<128x128xbf16>
    %cst_17 = arith.constant dense<0.000000e+00> : vector<128x128xf32>
    %24 = tpu.matmul %21, %23, %cst_17 {dimension_numbers = #tpu.dot_dimension_numbers<[1], [0], [0], [1], [0, 0, 1, 1], [], []>} : vector<128x128xbf16>, vector<128x128xbf16>, vector<128x128xf32> -> vector<128x128xf32>
    %c1_18 = arith.constant 1 : index
    %c0_19 = arith.constant 0 : index
    %25 = vector.load %arg6[%c1_18, %c0_19] : memref<5x128xf32, #tpu.memory_space<vmem>>, vector<1x128xf32>
    %26 = vector.shape_cast %25 : vector<1x128xf32> to vector<128xf32>
    %27 = vector.shape_cast %26 : vector<128xf32> to vector<1x128xf32>
    %28 = vector.broadcast %27 : vector<1x128xf32> to vector<128x128xf32>
    %29 = arith.addf %24, %28 : vector<128x128xf32>
    %cst_20 = arith.constant 0.000000e+00 : f32
    %30 = vector.broadcast %cst_20 : f32 to vector<128x128xf32>
    %31 = arith.maximumf %29, %30 : vector<128x128xf32>
    %32 = arith.truncf %31 : vector<128x128xf32> to vector<128x128xbf16>
    %c2 = arith.constant 2 : index
    %c0_21 = arith.constant 0 : index
    %c0_22 = arith.constant 0 : index
    %33 = vector.load %arg5[%c2, %c0_21, %c0_22] : memref<5x128x128xbf16, #tpu.memory_space<vmem>>, vector<1x128x128xbf16>
    %34 = vector.shape_cast %33 : vector<1x128x128xbf16> to vector<128x128xbf16>
    %cst_23 = arith.constant dense<0.000000e+00> : vector<128x128xf32>
    %35 = tpu.matmul %32, %34, %cst_23 {dimension_numbers = #tpu.dot_dimension_numbers<[1], [0], [0], [1], [0, 0, 1, 1], [], []>} : vector<128x128xbf16>, vector<128x128xbf16>, vector<128x128xf32> -> vector<128x128xf32>
    %c2_24 = arith.constant 2 : index
    %c0_25 = arith.constant 0 : index
    %36 = vector.load %arg6[%c2_24, %c0_25] : memref<5x128xf32, #tpu.memory_space<vmem>>, vector<1x128xf32>
    %37 = vector.shape_cast %36 : vector<1x128xf32> to vector<128xf32>
    %38 = vector.shape_cast %37 : vector<128xf32> to vector<1x128xf32>
    %39 = vector.broadcast %38 : vector<1x128xf32> to vector<128x128xf32>
    %40 = arith.addf %35, %39 : vector<128x128xf32>
    %cst_26 = arith.constant 0.000000e+00 : f32
    %41 = vector.broadcast %cst_26 : f32 to vector<128x128xf32>
    %42 = arith.maximumf %40, %41 : vector<128x128xf32>
    %43 = arith.truncf %42 : vector<128x128xf32> to vector<128x128xbf16>
    %c3 = arith.constant 3 : index
    %c0_27 = arith.constant 0 : index
    %c0_28 = arith.constant 0 : index
    %44 = vector.load %arg5[%c3, %c0_27, %c0_28] : memref<5x128x128xbf16, #tpu.memory_space<vmem>>, vector<1x128x128xbf16>
    %45 = vector.shape_cast %44 : vector<1x128x128xbf16> to vector<128x128xbf16>
    %cst_29 = arith.constant dense<0.000000e+00> : vector<128x128xf32>
    %46 = tpu.matmul %43, %45, %cst_29 {dimension_numbers = #tpu.dot_dimension_numbers<[1], [0], [0], [1], [0, 0, 1, 1], [], []>} : vector<128x128xbf16>, vector<128x128xbf16>, vector<128x128xf32> -> vector<128x128xf32>
    %c3_30 = arith.constant 3 : index
    %c0_31 = arith.constant 0 : index
    %47 = vector.load %arg6[%c3_30, %c0_31] : memref<5x128xf32, #tpu.memory_space<vmem>>, vector<1x128xf32>
    %48 = vector.shape_cast %47 : vector<1x128xf32> to vector<128xf32>
    %49 = vector.shape_cast %48 : vector<128xf32> to vector<1x128xf32>
    %50 = vector.broadcast %49 : vector<1x128xf32> to vector<128x128xf32>
    %51 = arith.addf %46, %50 : vector<128x128xf32>
    %cst_32 = arith.constant 0.000000e+00 : f32
    %52 = vector.broadcast %cst_32 : f32 to vector<128x128xf32>
    %53 = arith.maximumf %51, %52 : vector<128x128xf32>
    %54 = arith.truncf %53 : vector<128x128xf32> to vector<128x128xbf16>
    %c4 = arith.constant 4 : index
    %c0_33 = arith.constant 0 : index
    %c0_34 = arith.constant 0 : index
    %55 = vector.load %arg5[%c4, %c0_33, %c0_34] : memref<5x128x128xbf16, #tpu.memory_space<vmem>>, vector<1x128x128xbf16>
    %56 = vector.shape_cast %55 : vector<1x128x128xbf16> to vector<128x128xbf16>
    %cst_35 = arith.constant dense<0.000000e+00> : vector<128x128xf32>
    %57 = tpu.matmul %54, %56, %cst_35 {dimension_numbers = #tpu.dot_dimension_numbers<[1], [0], [0], [1], [0, 0, 1, 1], [], []>} : vector<128x128xbf16>, vector<128x128xbf16>, vector<128x128xf32> -> vector<128x128xf32>
    %c4_36 = arith.constant 4 : index
    %c0_37 = arith.constant 0 : index
    %58 = vector.load %arg6[%c4_36, %c0_37] : memref<5x128xf32, #tpu.memory_space<vmem>>, vector<1x128xf32>
    %59 = vector.shape_cast %58 : vector<1x128xf32> to vector<128xf32>
    %60 = vector.shape_cast %59 : vector<128xf32> to vector<1x128xf32>
    %61 = vector.broadcast %60 : vector<1x128xf32> to vector<128x128xf32>
    %62 = arith.addf %57, %61 : vector<128x128xf32>
    %cst_38 = arith.constant 0.000000e+00 : f32
    %63 = vector.broadcast %cst_38 : f32 to vector<128x128xf32>
    %64 = arith.maximumf %62, %63 : vector<128x128xf32>
    %65 = arith.truncf %64 : vector<128x128xf32> to vector<128x128xbf16>
    %c0_39 = arith.constant 0 : index
    %c0_40 = arith.constant 0 : index
    %66 = vector.load %arg7[%c0_39, %c0_40] : memref<128x8xbf16, #tpu.memory_space<vmem>>, vector<128x8xbf16>
    %cst_41 = arith.constant dense<0.000000e+00> : vector<128x8xf32>
    %67 = tpu.matmul %65, %66, %cst_41 {dimension_numbers = #tpu.dot_dimension_numbers<[1], [0], [0], [1], [0, 0, 1, 1], [], []>} : vector<128x128xbf16>, vector<128x8xbf16>, vector<128x8xf32> -> vector<128x8xf32>
    %c0_42 = arith.constant 0 : index
    %c0_43 = arith.constant 0 : index
    %68 = vector.load %arg8[%c0_42, %c0_43] : memref<1x8xf32, #tpu.memory_space<vmem>>, vector<1x8xf32>
    %69 = vector.broadcast %68 : vector<1x8xf32> to vector<128x8xf32>
    %70 = arith.addf %67, %69 : vector<128x8xf32>
    %c0_44 = arith.constant 0 : index
    %c0_45 = arith.constant 0 : index
    %71 = vector.load %arg9[%c0_44, %c0_45] : memref<128x8xf32, #tpu.memory_space<vmem>>, vector<128x8xf32>
    tpu.vector_store %arg9[%c0_44, %c0_45], %70 {strides = array<i32>} : memref<128x8xf32, #tpu.memory_space<vmem>>, vector<128x8xf32>,
    return
  }
  func.func @transform_0(%arg0: i32) -> (i32, i32) {
    %c0_i32 = arith.constant 0 : i32
    %c0_i32_0 = arith.constant 0 : i32
    return %arg0, %c0_i32 : i32, i32
  }
  func.func @transform_1(%arg0: i32) -> (i32, i32) {
    %c0_i32 = arith.constant 0 : i32
    %c0_i32_0 = arith.constant 0 : i32
    %c0_i32_1 = arith.constant 0 : i32
    return %c0_i32, %c0_i32_0 : i32, i32
  }
  func.func @transform_2(%arg0: i32) -> (i32, i32) {
    %c0_i32 = arith.constant 0 : i32
    %c0_i32_0 = arith.constant 0 : i32
    %c0_i32_1 = arith.constant 0 : i32
    return %c0_i32, %c0_i32_0 : i32, i32
  }
  func.func @transform_3(%arg0: i32) -> (i32, i32) {
    %c0_i32 = arith.constant 0 : i32
    %c0_i32_0 = arith.constant 0 : i32
    %c0_i32_1 = arith.constant 0 : i32
    return %c0_i32, %c0_i32_0 : i32, i32
  }
  func.func @transform_4(%arg0: i32) -> (i32, i32, i32) {
    %c0_i32 = arith.constant 0 : i32
    %c0_i32_0 = arith.constant 0 : i32
    %c0_i32_1 = arith.constant 0 : i32
    %c0_i32_2 = arith.constant 0 : i32
    return %c0_i32, %c0_i32_0, %c0_i32_1 : i32, i32, i32
  }
  func.func @transform_5(%arg0: i32) -> (i32, i32) {
    %c0_i32 = arith.constant 0 : i32
    %c0_i32_0 = arith.constant 0 : i32
    %c0_i32_1 = arith.constant 0 : i32
    return %c0_i32, %c0_i32_0 : i32, i32
  }
  func.func @transform_6(%arg0: i32) -> (i32, i32) {
    %c0_i32 = arith.constant 0 : i32
    %c0_i32_0 = arith.constant 0 : i32
    %c0_i32_1 = arith.constant 0 : i32
    return %c0_i32, %c0_i32_0 : i32, i32
  }
  func.func @transform_7(%arg0: i32) -> (i32, i32) {
    %c0_i32 = arith.constant 0 : i32
    %c0_i32_0 = arith.constant 0 : i32
    %c0_i32_1 = arith.constant 0 : i32
    return %c0_i32, %c0_i32_0 : i32, i32
  }
  func.func @transform_8(%arg0: i32) -> (i32, i32) {
    %c0_i32 = arith.constant 0 : i32
    %c0_i32_0 = arith.constant 0 : i32
    return %arg0, %c0_i32 : i32, i32
  }
}

</mosaic_0001>

<bundles_post_ra>
// kernel: tpu_custom_call.1
= control target key start
LH: loop header
LB: loop body
LE: loop exit
PB: predicated region body
PF: predicated region fallthrough
CT: control target
= control target key end

     0   :  { %13 = vsyncpa [#allocation3], 0  ;;  %s5183_s27 = smov [#allocation2]   ;;  %s7434_s0 = inlined_call_operand.vmem [shape: f32[16,5], index: 0, kind: input, shape index: {}]   ;;  %s7435_s1 = inlined_call_operand.vmem [shape: f32[5,128], index: 1, kind: input, shape index: {}]   ;;  %s7436_s2 = inlined_call_operand.vmem [shape: f32[1,128], index: 2, kind: input, shape index: {}]   ;;  %s7437_s3 = inlined_call_operand.vmem [shape: f32[5,128], index: 3, kind: input, shape index: {}]   ;;  %s7438_s4 = inlined_call_operand.hbm [shape: bf16[5,128,128], index: 4, kind: input, shape index: {}]   ;;  %s7439_s5 = inlined_call_operand.vmem [shape: f32[5,128], index: 5, kind: input, shape index: {}]   ;;  %s7440_s6 = inlined_call_operand.vmem [shape: bf16[128,8], index: 6, kind: input, shape index: {}]   ;;  %s7441_s7 = inlined_call_operand.vmem [shape: f32[1,8], index: 7, kind: input, shape index: {}]   ;;  %s7442_s8 = inlined_call_operand.vmem [shape: f32[16,8], index: 8, kind: output, shape index: {}]  }
   0x1   :  { %s27_s28 = sshll.u32 %s5183_s27, 4  ;;  %s28_s28 = int_to_ptr.vmem [resolvable:$true] %s27_s28 }
   0x2   :  { %s5169_s29 = scalar_lea.vmem %s28_s28, 5120  ;;  %p5174_p1 = scmp.lt.s32.totalorder %s28_s28, %s28_s28 }
   0x3   :  { %p5170_p0 = scmp.ne.s32.totalorder %s28_s28, %s5169_s29  ;;  %p5175_p2 = scmp.lt.s32.totalorder %s5169_s29, %s5169_s29 }
   0x5   :  { %p5176_p3 = por %p5175_p2, %p5174_p1 }
   0x7   :  { %p5177_p4 = pnand %p5176_p3, %p5170_p0 }
   0x9   :  { %5180 = shalt.err (!%p5177_p4)
}
   0xa   :  { %s5184_s30 = smov 64   ;;  %s5185_s9 = smov 4  }
   0xb   :  { %33 = dma.hbm_to_vmem [thread:$0]  %s7438_s4, 5120, %s28_s28, [#allocation3], %s5184_s30, %s5184_s30, %s5185_s9  }
   0xc   :  { %5181 = dma.done.wait [#allocation3], 5120  }
   0xd   :  { %5182 = vsyncadd [#allocation3], 4294962176  ;;  %vm117_vm0 = vcmask 1044480   ;;  %vm68_vm1 = vcmask 39936   ;;  %v60_v0 = vld [vmem:[%s7435_s1] sm:$0x1f] }
   0xe   :  { %v52_v1 = vld [vmem:[%s7434_s0 + $0x40] sm:$0xff]  ;;  %v53_v2 = vld [vmem:[%s7434_s0 + $0x48] sm:$0xff]  ;;  %v119_v3 = vsel %vm117_vm0, %v60_v0, 0  ;;  %v54_v8 = vld [vmem:[%s7434_s0 + $0x50] sm:$0xff] }
   0xf   :  { %v94_v4 = vsel %vm68_vm1, %v52_v1, 0  ;;  %v97_v5 = vsel %vm68_vm1, %v53_v2, 0  ;;  %v5255_v6 = vld [vmem:[%s7434_s0] sm:$0xff]  ;;  %v45_v7 = vld [vmem:[%s7434_s0 + $0x8] sm:$0xff]  ;;  %v5263_v9 = vand.u32 4294901760, %v119_v3  ;;  %v55_v13 = vld [vmem:[%s7434_s0 + $0x58] sm:$0xff] }
  0x10   :  { %v5265_v10 = vand.u32 4294901760, %v94_v4  ;;  %v5267_v11 = vand.u32 4294901760, %v97_v5  ;;  %v70_v12 = vsel %vm68_vm1, %v5255_v6, 0  ;;  %v46_v14 = vld [vmem:[%s7434_s0 + $0x10] sm:$0xff]  ;;  %v73_v16 = vsel %vm68_vm1, %v45_v7, 0  ;;  %v47_v35 = vld [vmem:[%s7434_s0 + $0x18] sm:$0xff] }
  0x11   :  { %v5277_v15 = vand.u32 4294901760, %v70_v12  ;;  %v100_v17 = vsel %vm68_vm1, %v54_v8, 0  ;;  %v103_v18 = vsel %vm68_vm1, %v55_v13, 0  ;;  %4959 = vmatprep.subr.mxu1 %v5263_v9  ;;  %v5287_v20 = vsub.f32 %v119_v3, %v5263_v9  ;;  %4585 = vmatprep.subr.mxu0 %v5263_v9  ;;  %v56_v36 = vld [vmem:[%s7434_s0 + $0x60] sm:$0xff]  ;;  %v57_v41 = vld [vmem:[%s7434_s0 + $0x68] sm:$0xff]  ;;  %v58_v56 = vld [vmem:[%s7434_s0 + $0x70] sm:$0xff] }
  0x12   :  { %v5284_v19 = vsub.f32 %v94_v4, %v5265_v10  ;;  %v5291_v21 = vsub.f32 %v97_v5, %v5267_v11  ;;  %v5293_v22 = vand.u32 4294901760, %v73_v16  ;;  %4960 = vmatpush3.msra.mxu1 %v5263_v9  ;;  %4586 = vmatpush3.msra.mxu0 %v5263_v9  ;;  %v5300_v24 = vand.u32 4294901760, %v100_v17  ;;  %v48_v46 = vld [vmem:[%s7434_s0 + $0x20] sm:$0xff]  ;;  %v49_v51 = vld [vmem:[%s7434_s0 + $0x28] sm:$0xff]  ;;  %v59_v1 = vld [vmem:[%s7434_s0 + $0x78] sm:$0xff] }
  0x13   :  { %v5298_v23 = vsub.f32 %v70_v12, %v5277_v15  ;;  %v5302_v25 = vand.u32 4294901760, %v103_v18  ;;  %v76_v26 = vsel %vm68_vm1, %v46_v14, 0  ;;  %v5307_v28 = vand.u32 4294901760, %v5287_v20  ;;  %4637 = vmatprep.subr.mxu0 %v5287_v20  ;;  %v50_v14 = vld [vmem:[%s7434_s0 + $0x30] sm:$0xff] }
  0x14   :  { %v269_v27 = vand.u32 4294901760, %v5284_v19  ;;  %v279_v29 = vand.u32 4294901760, %v5291_v21  ;;  %v5311_v30 = vsub.f32 %v73_v16, %v5293_v22  ;;  %v5316_v32 = vsub.f32 %v100_v17, %v5300_v24 }
  0x15   :  { %v189_v31 = vand.u32 4294901760, %v5298_v23  ;;  %v5319_v33 = vsub.f32 %v103_v18, %v5302_v25  ;;  %v5321_v34 = vand.u32 4294901760, %v76_v26  ;;  %v381_v38 = vsub.f32 %v5287_v20, %v5307_v28 }
  0x16   :  { %v270_v37 = vsub.f32 %v5284_v19, %v269_v27  ;;  %v280_v39 = vsub.f32 %v5291_v21, %v279_v29  ;;  %v199_v40 = vand.u32 4294901760, %v5311_v30  ;;  %v289_v43 = vand.u32 4294901760, %v5316_v32 }
  0x17   :  { %v190_v42 = vsub.f32 %v5298_v23, %v189_v31  ;;  %v299_v44 = vand.u32 4294901760, %v5319_v33  ;;  %v5347_v45 = vsub.f32 %v76_v26, %v5321_v34  ;;  %v382_v48 = vand.u32 4294901760, %v381_v38 }
  0x18   :  { %v271_v47 = vand.u32 4294901760, %v270_v37  ;;  %v281_v49 = vand.u32 4294901760, %v280_v39  ;;  %v200_v50 = vsub.f32 %v5311_v30, %v199_v40  ;;  %v290_v53 = vsub.f32 %v5316_v32, %v289_v43 }
  0x19   :  { %v191_v52 = vand.u32 4294901760, %v190_v42  ;;  %v300_v54 = vsub.f32 %v5319_v33, %v299_v44  ;;  %v209_v55 = vand.u32 4294901760, %v5347_v45  ;;  %4611 = vmatprep.subr.mxu1 %v382_v48  ;;  %v79_v58 = vsel %vm68_vm1, %v47_v35, 0 }
  0x1a   :  { %4599 = vmatprep.mubr.f32.mxu1 %v271_v47  ;;  %v201_v57 = vand.u32 4294901760, %v200_v50  ;;  %v106_v59 = vsel %vm68_vm1, %v56_v36, 0  ;;  %v109_v60 = vsel %vm68_vm1, %v57_v41, 0  ;;  %v291_v61 = vand.u32 4294901760, %v290_v53 }
  0x1b   :  { %4600 = vmatmul.mubr.f32.vlgmr.msra.gmra.mxu1 %v281_v49  ;;  %4587 = vmatprep.mubr.f32.mxu0 %v191_v52  ;;  %v301_v62 = vand.u32 4294901760, %v300_v54  ;;  %v210_v63 = vsub.f32 %v5347_v45, %v209_v55  ;;  %v5374_v0 = vand.u32 4294901760, %v79_v58  ;;  %v5379_v2 = vand.u32 4294901760, %v106_v59  ;;  %v51_v54 = vld [vmem:[%s7434_s0 + $0x38] sm:$0xff] }
  0x1c   :  { %4612 = vmatpush3.msra.mxu1 %v382_v48  ;;  %4588 = vmatmul.mubr.f32.vlgmr.msra.gmra.mxu0 %v201_v57  ;;  %v5381_v3 = vand.u32 4294901760, %v109_v60  ;;  %v82_v4 = vsel %vm68_vm1, %v48_v46, 0  ;;  %v85_v5 = vsel %vm68_vm1, %v49_v51, 0  ;;  %v112_v18 = vsel %vm68_vm1, %v58_v56, 0 }
  0x1d   :  { %4602 = vmatprep.mubr.f32.mxu1 %v291_v61  ;;  %v211_v7 = vand.u32 4294901760, %v210_v63  ;;  %v5386_v8 = vsub.f32 %v79_v58, %v5374_v0  ;;  %v5388_v12 = vand.u32 4294901760, %v82_v4  ;;  %v5390_v13 = vand.u32 4294901760, %v85_v5  ;;  %4663 = vmatprep.subr.mxu1 %v5263_v9 }
  0x1e   :  { %v5397_v16 = vsub.f32 %v106_v59, %v5379_v2  ;;  %v5400_v17 = vsub.f32 %v109_v60, %v5381_v3  ;;  %v115_v26 = vsel %vm68_vm1, %v59_v1, 0  ;;  %4638 = vmatpush3.msra.mxu0 %v5287_v20  ;;  %v5412_v38 = vand.u32 4294901760, %v112_v18 }
  0x1f   :  { %4603 = vmatmul.mubr.f32.gmra.mxu1 %v301_v62  ;;  %4590 = vmatprep.mubr.f32.mxu0 %v211_v7  ;;  %v219_v35 = vand.u32 4294901760, %v5386_v8  ;;  %v5407_v36 = vsub.f32 %v82_v4, %v5388_v12  ;;  %v5410_v37 = vsub.f32 %v85_v5, %v5390_v13  ;;  %v5416_v42 = vand.u32 4294901760, %v115_v26 }
  0x20   :  { %v309_v39 = vand.u32 4294901760, %v5397_v16  ;;  %v319_v41 = vand.u32 4294901760, %v5400_v17  ;;  %v88_v20 = vsel %vm68_vm1, %v50_v14, 0  ;;  %4689 = vmatprep.subr.mxu0 %v5307_v28  ;;  %v5426_v49 = vsub.f32 %v112_v18, %v5412_v38 }
  0x21   :  { %v220_v46 = vsub.f32 %v5386_v8, %v219_v35  ;;  %v229_v47 = vand.u32 4294901760, %v5407_v36  ;;  %v239_v48 = vand.u32 4294901760, %v5410_v37  ;;  %v5435_v52 = vsub.f32 %v115_v26, %v5416_v42 }
  0x22   :  { %v310_v50 = vsub.f32 %v5397_v16, %v309_v39  ;;  %v320_v51 = vsub.f32 %v5400_v17, %v319_v41  ;;  %v5437_v53 = vand.u32 4294901760, %v88_v20  ;;  %v329_v59 = vand.u32 4294901760, %v5426_v49 }
  0x23   :  { %v221_v56 = vand.u32 4294901760, %v220_v46  ;;  %v230_v57 = vsub.f32 %v5407_v36, %v229_v47  ;;  %v240_v58 = vsub.f32 %v5410_v37, %v239_v48  ;;  %v339_v62 = vand.u32 4294901760, %v5435_v52 }
  0x24   :  { %v311_v60 = vand.u32 4294901760, %v310_v50  ;;  %v321_v61 = vand.u32 4294901760, %v320_v51  ;;  %v5451_v63 = vsub.f32 %v88_v20, %v5437_v53  ;;  %v330_v5 = vsub.f32 %v5426_v49, %v329_v59 }
  0x25   :  { %4591 = vmatmul.mubr.f32.gmra.mxu0 %v221_v56  ;;  %v231_v1 = vand.u32 4294901760, %v230_v57  ;;  %v241_v4 = vand.u32 4294901760, %v240_v58  ;;  %v91_v7 = vsel %vm68_vm1, %v51_v54, 0  ;;  %v340_v14 = vsub.f32 %v5435_v52, %v339_v62 }
  0x26   :  { %4605 = vmatprep.mubr.f32.mxu1 %v311_v60  ;;  %v249_v18 = vand.u32 4294901760, %v5451_v63  ;;  %v5461_v26 = vand.u32 4294901760, %v91_v7  ;;  %v331_v20 = vand.u32 4294901760, %v330_v5 }
  0x27   :  { %4606 = vmatmul.mubr.f32.gmra.mxu1 %v321_v61  ;;  %4593 = vmatprep.mubr.f32.mxu0 %v231_v1  ;;  %v341_v46 = vand.u32 4294901760, %v340_v14 }
  0x28   :  { %v250_v50 = vsub.f32 %v5451_v63, %v249_v18  ;;  %v258_v51 = vsub.f32 %v91_v7, %v5461_v26  ;;  %4608 = vmatprep.mubr.f32.mxu1 %v331_v20 }
  0x29   :  { %4594 = vmatmul.mubr.f32.gmra.mxu0 %v241_v4 }
  0x2a   :  { %v251_v54 = vand.u32 4294901760, %v250_v50  ;;  %v259_v56 = vand.u32 4294901760, %v258_v51 }
  0x2b   :  { %4609 = vmatmul.mubr.f32.gmra.mxu1 %v341_v46 }
  0x2c   :  { %4596 = vmatprep.mubr.f32.mxu0 %v251_v54  ;;  %v260_v57 = vsub.f32 %v258_v51, %v259_v56  ;;  %4613 = vmatprep.mubr.f32.mxu1 %v5277_v15 }
  0x2e   :  { %v261_v58 = vand.u32 4294901760, %v260_v57 }
  0x2f   :  { %4614 = vmatmul.mubr.f32.vlgmr.msra.gmra.mxu1 %v5293_v22 }
  0x30   :  { %4597 = vmatmul.mubr.f32.gmra.mxu0 %v261_v58  ;;  %4664 = vmatpush3.msra.mxu1 %v5263_v9 }
  0x31   :  { %4639 = vmatprep.mubr.f32.mxu0 %v5298_v23  ;;  %4616 = vmatprep.mubr.f32.mxu1 %v5321_v34 }
  0x32   :  { %4715 = vmatprep.subr.mxu1 %v5263_v9 }
  0x33   :  { %4617 = vmatmul.mubr.f32.gmra.mxu1 %v5374_v0 }
  0x34   :  { %4640 = vmatmul.mubr.f32.vlgmr.msra.gmra.mxu0 %v5311_v30  ;;  %4619 = vmatprep.mubr.f32.mxu1 %v5388_v12 }
  0x35   :  { %4642 = vmatprep.mubr.f32.mxu0 %v5347_v45  ;;  %4690 = vmatpush3.msra.mxu0 %v5307_v28 }
  0x37   :  { %4620 = vmatmul.mubr.f32.gmra.mxu1 %v5390_v13 }
  0x38   :  { %4643 = vmatmul.mubr.f32.gmra.mxu0 %v5386_v8  ;;  %4622 = vmatprep.mubr.f32.mxu1 %v5437_v53 }
  0x39   :  { %4645 = vmatprep.mubr.f32.mxu0 %v5407_v36 }
  0x3b   :  { %4623 = vmatmul.mubr.f32.gmra.mxu1 %v5461_v26 }
  0x3c   :  { %4646 = vmatmul.mubr.f32.gmra.mxu0 %v5410_v37  ;;  %4625 = vmatprep.mubr.f32.mxu1 %v5265_v10 }
  0x3d   :  { %4648 = vmatprep.mubr.f32.mxu0 %v5451_v63 }
  0x3f   :  { %4626 = vmatmul.mubr.f32.gmra.mxu1 %v5267_v11 }
  0x40   :  { %4649 = vmatmul.mubr.f32.gmra.mxu0 %v258_v51  ;;  %4628 = vmatprep.mubr.f32.mxu1 %v5300_v24 }
  0x41   :  { %4651 = vmatprep.mubr.f32.mxu0 %v5284_v19 }
  0x43   :  { %4629 = vmatmul.mubr.f32.gmra.mxu1 %v5302_v25 }
  0x44   :  { %4652 = vmatmul.mubr.f32.gmra.mxu0 %v5291_v21  ;;  %4631 = vmatprep.mubr.f32.mxu1 %v5379_v2 }
  0x45   :  { %4654 = vmatprep.mubr.f32.mxu0 %v5316_v32 }
  0x47   :  { %4632 = vmatmul.mubr.f32.gmra.mxu1 %v5381_v3 }
  0x48   :  { %4655 = vmatmul.mubr.f32.gmra.mxu0 %v5319_v33  ;;  %4634 = vmatprep.mubr.f32.mxu1 %v5412_v38 }
  0x49   :  { %4657 = vmatprep.mubr.f32.mxu0 %v5397_v16 }
  0x4b   :  { %4635 = vmatmul.mubr.f32.gmra.mxu1 %v5416_v42 }
  0x4c   :  { %4658 = vmatmul.mubr.f32.gmra.mxu0 %v5400_v17  ;;  %4665 = vmatprep.mubr.f32.mxu1 %v189_v31 }
  0x4d   :  { %4660 = vmatprep.mubr.f32.mxu0 %v5426_v49 }
  0x4f   :  { %4666 = vmatmul.mubr.f32.vlgmr.msra.gmra.mxu1 %v199_v40 }
  0x50   :  { %4661 = vmatmul.mubr.f32.gmra.mxu0 %v5435_v52  ;;  %4716 = vmatpush3.msra.mxu1 %v5263_v9 }
  0x51   :  { %4691 = vmatprep.mubr.f32.mxu0 %v5277_v15  ;;  %4668 = vmatprep.mubr.f32.mxu1 %v209_v55 }
  0x53   :  { %4669 = vmatmul.mubr.f32.gmra.mxu1 %v219_v35 }
  0x54   :  { %4692 = vmatmul.mubr.f32.vlgmr.msra.gmra.mxu0 %v5293_v22  ;;  %4671 = vmatprep.mubr.f32.mxu1 %v229_v47 }
  0x55   :  { %4694 = vmatprep.mubr.f32.mxu0 %v5321_v34 }
  0x57   :  { %4672 = vmatmul.mubr.f32.gmra.mxu1 %v239_v48 }
  0x58   :  { %4695 = vmatmul.mubr.f32.gmra.mxu0 %v5374_v0  ;;  %4674 = vmatprep.mubr.f32.mxu1 %v249_v18 }
  0x59   :  { %4697 = vmatprep.mubr.f32.mxu0 %v5388_v12 }
  0x5b   :  { %4675 = vmatmul.mubr.f32.gmra.mxu1 %v259_v56 }
  0x5c   :  { %4698 = vmatmul.mubr.f32.gmra.mxu0 %v5390_v13  ;;  %4677 = vmatprep.mubr.f32.mxu1 %v269_v27 }
  0x5d   :  { %4700 = vmatprep.mubr.f32.mxu0 %v5437_v53 }
  0x5f   :  { %4678 = vmatmul.mubr.f32.gmra.mxu1 %v279_v29 }
  0x60   :  { %4701 = vmatmul.mubr.f32.gmra.mxu0 %v5461_v26  ;;  %4680 = vmatprep.mubr.f32.mxu1 %v289_v43 }
  0x61   :  { %4703 = vmatprep.mubr.f32.mxu0 %v5265_v10 }
  0x63   :  { %4681 = vmatmul.mubr.f32.gmra.mxu1 %v299_v44 }
  0x64   :  { %4704 = vmatmul.mubr.f32.gmra.mxu0 %v5267_v11  ;;  %4683 = vmatprep.mubr.f32.mxu1 %v309_v39 }
  0x65   :  { %4706 = vmatprep.mubr.f32.mxu0 %v5300_v24 }
  0x67   :  { %4684 = vmatmul.mubr.f32.gmra.mxu1 %v319_v41 }
  0x68   :  { %4707 = vmatmul.mubr.f32.gmra.mxu0 %v5302_v25  ;;  %4686 = vmatprep.mubr.f32.mxu1 %v329_v59 }
  0x69   :  { %4709 = vmatprep.mubr.f32.mxu0 %v5379_v2 }
  0x6b   :  { %4687 = vmatmul.mubr.f32.gmra.mxu1 %v339_v62 }
  0x6c   :  { %4710 = vmatmul.mubr.f32.gmra.mxu0 %v5381_v3  ;;  %4717 = vmatprep.mubr.f32.mxu1 %v5277_v15 }
  0x6d   :  { %4712 = vmatprep.mubr.f32.mxu0 %v5412_v38 }
  0x6f   :  { %4718 = vmatmul.mubr.f32.vlgmr.msra.gmra.mxu1 %v5293_v22 }
  0x70   :  { %4713 = vmatmul.mubr.f32.gmra.mxu0 %v5416_v42  ;;  %4720 = vmatprep.mubr.f32.mxu1 %v5321_v34 }
  0x71   :  { %4743 = vmatprep.mubr.msk.f32.mxu0 %vm68_vm1, %v5255_v6 }
  0x73   :  { %4721 = vmatmul.mubr.f32.gmra.mxu1 %v5374_v0 }
  0x74   :  { %4723 = vmatprep.mubr.f32.mxu1 %v5388_v12 }
  0x77   :  { %4724 = vmatmul.mubr.f32.gmra.mxu1 %v5390_v13 }
  0x78   :  { %4726 = vmatprep.mubr.f32.mxu1 %v5437_v53 }
  0x7b   :  { %4727 = vmatmul.mubr.f32.gmra.mxu1 %v5461_v26 }
  0x7c   :  { %4729 = vmatprep.mubr.f32.mxu1 %v5265_v10 }
  0x7f   :  { %4730 = vmatmul.mubr.f32.gmra.mxu1 %v5267_v11 }
  0x80   :  { %4732 = vmatprep.mubr.f32.mxu1 %v5300_v24 }
  0x83   :  { %4733 = vmatmul.mubr.f32.gmra.mxu1 %v5302_v25 }
  0x84   :  { %4735 = vmatprep.mubr.f32.mxu1 %v5379_v2 }
  0x87   :  { %4736 = vmatmul.mubr.f32.gmra.mxu1 %v5381_v3  ;;  %v5601_v3 = vld [vmem:[%s7436_s2] ss:$0 sm:$0xff] }
  0x88   :  { %4738 = vmatprep.mubr.f32.mxu1 %v5412_v38 }
  0x8b   :  { %4739 = vmatmul.mubr.f32.gmra.mxu1 %v5416_v42 }
  0xdb   :  { %v4601_v6 = vpop.f32.mrf.mxu1 }
  0xdc   :  { %v5562_v9 = vpop.f32.mrf.mxu0  ;;  %v284_v16 = vadd.f32 %v4601_v6, %v5601_v3 }
  0xdd   :  { %v273_v15 = vpop.f32.mrf.mxu1 }
  0xde   :  { %v5564_v10 = vpop.f32.mrf.mxu0  ;;  %v274_v36 = vadd.f32 %v5601_v3, %v273_v15 }
  0xdf   :  { %v4604_v19 = vpop.f32.mrf.mxu1 }
  0xe0   :  { %v304_v41 = vadd.f32 %v4604_v19, %v5601_v3 }
  0xe1   :  { %v293_v11 = vpop.f32.mrf.mxu1 }
  0xe2   :  { %v294_v49 = vadd.f32 %v5601_v3, %v293_v11 }
  0xe5   :  { %v5566_v21 = vpop.f32.mrf.mxu0 }
  0xe7   :  { %v5568_v22 = vpop.f32.mrf.mxu0  ;;  %v4607_v23 = vpop.f32.mrf.mxu1 }
  0xe8   :  { %v324_v60 = vadd.f32 %v4607_v23, %v5601_v3 }
  0xe9   :  { %v5570_v24 = vpop.f32.mrf.mxu0  ;;  %v313_v25 = vpop.f32.mrf.mxu1 }
  0xea   :  { %v314_v1 = vadd.f32 %v5601_v3, %v313_v25 }
  0xeb   :  { %v4610_v27 = vpop.f32.mrf.mxu1  ;;  %v5572_v28 = vpop.f32.mrf.mxu0 }
  0xec   :  { %v344_v14 = vadd.f32 %v4610_v27, %v5601_v3 }
  0xed   :  { %v333_v29 = vpop.f32.mrf.mxu1 }
  0xee   :  { %v334_v20 = vadd.f32 %v5601_v3, %v333_v29 }
  0xef   :  { %v5574_v30 = vpop.f32.mrf.mxu1 }
  0xf0   :  { %v5576_v31 = vpop.f32.mrf.mxu0 }
  0xf1   :  { %v5578_v32 = vpop.f32.mrf.mxu1 }
  0xf2   :  { %v5580_v33 = vpop.f32.mrf.mxu0 }
  0xf3   :  { %v5582_v34 = vpop.f32.mrf.mxu1 }
  0xf4   :  { %v5584_v40 = vpop.f32.mrf.mxu0 }
  0xf5   :  { %v5586_v43 = vpop.f32.mrf.mxu1 }
  0xf6   :  { %v5588_v44 = vpop.f32.mrf.mxu0 }
  0xf7   :  { %v5590_v45 = vpop.f32.mrf.mxu1 }
  0xf8   :  { %v5592_v55 = vpop.f32.mrf.mxu0 }
  0xf9   :  { %v5594_v0 = vpop.f32.mrf.mxu1 }
  0xfa   :  { %v5596_v2 = vpop.f32.mrf.mxu0 }
  0xfb   :  { %v5603_v8 = vpop.f32.mrf.mxu1 }
  0xfc   :  { %v5605_v12 = vpop.f32.mrf.mxu0 }
  0xfd   :  { %v5607_v13 = vpop.f32.mrf.mxu1 }
  0xfe   :  { %v5610_v17 = vpop.f32.mrf.mxu0 }
  0xff   :  { %v4627_v35 = vpop.f32.mrf.mxu1 }
 0x100   :  { %v5613_v37 = vpop.f32.mrf.mxu0  ;;  %v5615_v38 = vadd.f32 %v4627_v35, %v284_v16 }
 0x101   :  { %v467_v39 = vpop.f32.mrf.mxu1 }
 0x102   :  { %v5618_v42 = vpop.f32.mrf.mxu0  ;;  %v5620_v47 = vadd.f32 %v467_v39, %v274_v36  ;;  %v204_v36 = vadd.f32 %v5562_v9, %v5601_v3  ;;  %v214_v9 = vadd.f32 %v5601_v3, %v5568_v22 }
 0x103   :  { %v4630_v48 = vpop.f32.mrf.mxu1 }
 0x104   :  { %v5623_v52 = vpop.f32.mrf.mxu0  ;;  %v5625_v53 = vadd.f32 %v4630_v48, %v304_v41  ;;  %v194_v48 = vadd.f32 %v5601_v3, %v5564_v10  ;;  %v244_v10 = vadd.f32 %v5570_v24, %v5601_v3 }
 0x105   :  { %v479_v59 = vpop.f32.mrf.mxu1 }
 0x106   :  { %v5628_v61 = vpop.f32.mrf.mxu0  ;;  %v5630_v62 = vadd.f32 %v479_v59, %v294_v49  ;;  %v426_v59 = vadd.f32 %v5574_v30, %v204_v36  ;;  %v234_v30 = vadd.f32 %v5601_v3, %v5572_v28 }
 0x107   :  { %v4633_v63 = vpop.f32.mrf.mxu1 }
 0x108   :  { %v5633_v4 = vpop.f32.mrf.mxu0  ;;  %v5635_v5 = vadd.f32 %v4633_v63, %v324_v60  ;;  %v224_v63 = vadd.f32 %v5566_v21, %v5601_v3  ;;  %v264_v21 = vadd.f32 %v5576_v31, %v5601_v3 }
 0x109   :  { %v491_v7 = vpop.f32.mrf.mxu1 }
 0x10a   :  { %v5638_v18 = vadd.f32 %v491_v7, %v314_v1  ;;  %v5641_v46 = vpop.f32.mrf.mxu0  ;;  %v420_v7 = vadd.f32 %v5578_v32, %v194_v48  ;;  %v254_v32 = vadd.f32 %v5601_v3, %v5580_v33  ;;  %v462_v33 = vadd.f32 %v5603_v8, %v264_v21 }
 0x10b   :  { %v4636_v26 = vpop.f32.mrf.mxu1 }
 0x10c   :  { %v5643_v50 = vadd.f32 %v4636_v26, %v344_v14  ;;  %v5647_v57 = vpop.f32.mrf.mxu0  ;;  %v591_v26 = vadd.f32 %v5584_v40, %v426_v59  ;;  %v584_v22 = vadd.f32 %v5588_v44, %v420_v7  ;;  %v432_v40 = vadd.f32 %v5586_v43, %v214_v9 }
 0x10d   :  { %v503_v51 = vpop.f32.mrf.mxu1  ;;  %v450_v59 = vadd.f32 %v5590_v45, %v244_v10  ;;  %v640_v10 = vadd.f32 %v5628_v61, %v5620_v47 }
 0x10e   :  { %v5645_v54 = vadd.f32 %v503_v51, %v334_v20  ;;  %v5649_v15 = vpop.f32.mrf.mxu0  ;;  %v438_v51 = vadd.f32 %v5582_v34, %v224_v63  ;;  %v456_v34 = vadd.f32 %v5607_v13, %v254_v32  ;;  %v598_v7 = vadd.f32 %v5596_v2, %v432_v40 }
 0x10f   :  { %v4667_v56 = vpop.f32.mrf.mxu1 }
 0x110   :  { %v5651_v23 = vpop.f32.mrf.mxu0  ;;  %v771_v48 = vadd.f32 %v4667_v56, %v591_v26  ;;  %v605_v31 = vadd.f32 %v5592_v55, %v438_v51  ;;  %v626_v8 = vadd.f32 %v5618_v42, %v456_v34 }
 0x111   :  { %v762_v58 = vpop.f32.mrf.mxu1 }
 0x112   :  { %v5657_v29 = vpop.f32.mrf.mxu0  ;;  %v763_v28 = vadd.f32 %v762_v58, %v584_v22  ;;  %v619_v58 = vadd.f32 %v5605_v12, %v450_v59  ;;  %v5721_v12 = vadd.f32 %v5633_v4, %v5625_v53 }
 0x113   :  { %v4670_v6 = vpop.f32.mrf.mxu1 }
 0x114   :  { %v4693_v39 = vpop.f32.mrf.mxu0  ;;  %v787_v56 = vadd.f32 %v4670_v6, %v605_v31 }
 0x115   :  { %v778_v19 = vpop.f32.mrf.mxu1  ;;  %v963_v44 = vadd.f32 %v4693_v39, %v771_v48  ;;  %v647_v39 = vadd.f32 %v5623_v52, %v5615_v38  ;;  %v5729_v38 = vadd.f32 %v5647_v57, %v5635_v5  ;;  %v5743_v5 = vadd.f32 %v5651_v23, %v5643_v50 }
 0x116   :  { %v956_v60 = vpop.f32.mrf.mxu0  ;;  %v779_v52 = vadd.f32 %v778_v19, %v598_v7  ;;  %v5748_v19 = vadd.f32 %v5657_v29, %v5645_v54 }
 0x117   :  { %v4673_v11 = vpop.f32.mrf.mxu1  ;;  %v957_v43 = vadd.f32 %v956_v60, %v763_v28 }
 0x118   :  { %v4696_v20 = vpop.f32.mrf.mxu0 }
 0x119   :  { %v5653_v25 = vpop.f32.mrf.mxu1 }
 0x11b   :  { %v5655_v27 = vpop.f32.mrf.mxu1 }
 0x11d   :  { %v5659_v16 = vpop.f32.mrf.mxu1 }
 0x11f   :  { %v5661_v35 = vpop.f32.mrf.mxu1 }
 0x120   :  { %v5765_v59 = vadd.f32 %v5661_v35, %v647_v39 }
 0x121   :  { %v5665_v41 = vpop.f32.mrf.mxu1 }
 0x123   :  { %v5669_v49 = vpop.f32.mrf.mxu1 }
 0x125   :  { %v5674_v1 = vpop.f32.mrf.mxu1 }
 0x126   :  { %7528 = vst [vmem:[#allocation6_spill] sm:$0xff] %v5674_v1  ;;  %v444_v1 = vadd.f32 %v5594_v0, %v234_v30  ;;  %v633_v0 = vadd.f32 %v5613_v37, %v462_v33  ;;  %v975_v37 = vadd.f32 %v4696_v20, %v787_v56  ;;  %v5768_v33 = vadd.f32 %v5665_v41, %v640_v10 }
 0x127   :  { %v5677_v14 = vpop.f32.mrf.mxu1  ;;  %v7454_v41 = vmov 2475754826  }
 0x128   :  { %7529 = vst [vmem:[#allocation7_spill] sm:$0xff] %v5677_v14  ;;  %v968_v14 = vpop.f32.mrf.mxu0  ;;  %v612_v55 = vadd.f32 %v5610_v17, %v444_v1  ;;  %v5725_v17 = vadd.f32 %v5641_v46, %v5630_v62  ;;  %v803_v1 = vadd.f32 %v4673_v11, %v619_v58  ;;  %v5739_v62 = vadd.f32 %v5649_v15, %v5638_v18 }
 0x129   :  { %v5691_v36 = vpop.f32.mrf.mxu1  ;;  %v819_v11 = vadd.f32 %v5655_v27, %v633_v0  ;;  %v969_v32 = vadd.f32 %v968_v14, %v779_v52  ;;  %v5760_v27 = vadd.f32 %v5659_v16, %v626_v8  ;;  %v7449_v0 = vmov 2131351028  }
 0x12a   :  { %v4699_v9 = vpop.f32.mrf.mxu0  ;;  %v795_v46 = vadd.f32 %v5653_v25, %v612_v55 }
 0x12b   :  { %v5694_v24 = vpop.f32.mrf.mxu1  ;;  %v5753_v18 = vadd.f32 %v4699_v9, %v803_v1  ;;  %v7459_v9 = vmov 683565275  }
 0x12c   :  { %v980_v26 = vpop.f32.mrf.mxu0 }
 0x12d   :  { %v5702_v3 = vpop.f32.mrf.mxu1  ;;  %v5757_v29 = vadd.f32 %v980_v26, %v795_v46 }
 0x12e   :  { %v4702_v15 = vpop.f32.mrf.mxu0 }
 0x12f   :  { %v4719_v63 = vpop.f32.mrf.mxu1  ;;  %v5762_v14 = vadd.f32 %v4702_v15, %v819_v11 }
 0x130   :  { %v5705_v45 = vadd.f32 %v4719_v63, %v963_v44 }
 0x131   :  { %v1118_v13 = vpop.f32.mrf.mxu1 }
 0x132   :  { %v1316_v6 = vand.u32 2147483647, %v5705_v45  ;;  %v1319_v2 = vand.u32 2139095040, %v5705_v45  ;;  %v5715_v60 = vadd.f32 %v1118_v13, %v957_v43  ;;  %v7447_v13 = vmov 2102212464  }
 0x133   :  { %v4722_v42 = vpop.f32.mrf.mxu1 }
 0x134   :  { %v1320_v30 = vshrl.u32 %v1319_v2, 23  ;;  %v1323_v47 = vand.u32 8388607, %v1316_v6  ;;  %v1212_v53 = vand.u32 2147483647, %v5715_v60  ;;  %v1215_v61 = vand.u32 2139095040, %v5715_v60 }
 0x135   :  { %v5735_v4 = vadd.f32 %v4722_v42, %v975_v37  ;;  %v1130_v54 = vpop.f32.mrf.mxu1  ;;  %v7465_v2 = vmov 920167782  }
 0x136   :  { %v4239_v57 = vadd.s32 4294967169, %v1320_v30  ;;  %v1216_v20 = vshrl.u32 %v1215_v61, 23  ;;  %v1219_v21 = vand.u32 8388607, %v1212_v53  ;;  %v1324_v23 = vor.u32 8388608, %v1323_v47 }
 0x137   :  { %7530 = vst [vmem:[#allocation8_spill] sm:$0xff] %v5735_v4  ;;  %v1527_v50 = vand.u32 2139095040, %v5735_v4  ;;  %v1524_v48 = vand.u32 2147483647, %v5735_v4  ;;  %v5770_v56 = vadd.f32 %v1130_v54, %v969_v32  ;;  %v7451_v30 = vmov 1326507024  }
 0x138   :  { %v1326_v51 = vadd.s32 1, %v4239_v57  ;;  %v4235_v25 = vadd.s32 4294967169, %v1216_v20  ;;  %v1220_v22 = vor.u32 8388608, %v1219_v21  ;;  %v5772_v63 = vshll.u32 %v1324_v23, 8 }
 0x139   :  { %v1528_v40 = vshrl.u32 %v1527_v50, 23  ;;  %v5780_v43 = vand.u32 8388607, %v1524_v48 }
 0x13a   :  { %vm1327_vm2 = vcmp.gt.s32.totalorder %v1326_v51, 0  ;;  %v1222_v31 = vadd.s32 1, %v4235_v25  ;;  %v5774_v16 = vshll.u32 %v1220_v22, 8 }
 0x13b   :  { %v1328_v28 = vsel %vm1327_vm2, %v1326_v51, 0  ;;  %v5776_v7 = vadd.s32 4294967169, %v1528_v40 }
 0x13c   :  { %v1329_v34 = vshrl.u32 %v1328_v28, 5  ;;  %v1330_v44 = vand.u32 31, %v1328_v28  ;;  %vm1223_vm3 = vcmp.gt.s32.totalorder %v1222_v31, 0 }
 0x13d   :  { %v1224_v11 = vsel %vm1223_vm3, %v1222_v31, 0 }
 0x13e   :  { %v1331_v35 = vsub.s32 32, %v1330_v44  ;;  %v1333_v58 = vshll.u32 %v7459_v9, %v1330_v44  ;;  %v1336_v55 = vshll.u32 %v7454_v41, %v1330_v44  ;;  %v1339_v8 = vshll.u32 %v7449_v0, %v1330_v44 }
 0x13f   :  { %v1342_v39 = vshll.u32 %v7447_v13, %v1330_v44  ;;  %v1345_v10 = vshll.u32 %v7465_v2, %v1330_v44  ;;  %vm1348_vm4 = vcmp.lt.s32.totalorder %v1329_v34, 1  ;;  %vm1349_vm5 = vcmp.lt.s32.totalorder %v1329_v34, 2 }
 0x140   :  { %v1334_v37 = vshrl.u32 %v7454_v41, %v1331_v35  ;;  %v1337_v42 = vshrl.u32 %v7449_v0, %v1331_v35  ;;  %v1340_v52 = vshrl.u32 %v7447_v13, %v1331_v35  ;;  %v1332_v1 = vshrl.u32 %v7459_v9, %v1331_v35 }
 0x141   :  { %v1343_v26 = vshrl.u32 %v7465_v2, %v1331_v35  ;;  %v1346_v47 = vshrl.u32 %v7451_v30, %v1331_v35  ;;  %vm1350_vm6 = vcmp.lt.s32.totalorder %v1329_v34, 3  ;;  %vm1351_vm7 = vcmp.lt.s32.totalorder %v1329_v34, 4 }
 0x142   :  { %v1335_v61 = vor.u32 %v1334_v37, %v1333_v58  ;;  %v1338_v46 = vor.u32 %v1337_v42, %v1336_v55  ;;  %v1341_v57 = vor.u32 %v1340_v52, %v1339_v8  ;;  %v1226_v32 = vand.u32 31, %v1224_v11 }
 0x143   :  { %v1344_v20 = vor.u32 %v1343_v26, %v1342_v39  ;;  %v1347_v21 = vor.u32 %v1346_v47, %v1345_v10  ;;  %v1225_v35 = vshrl.u32 %v1224_v11, 5 }
 0x144   :  { %v1352_v15 = vsel %vm1348_vm4, %v1332_v1, %v1335_v61  ;;  %v1353_v51 = vsel %vm1351_vm7, %v1341_v57, 2102212464  ;;  %v1356_v50 = vsel %vm1348_vm4, %v1335_v61, %v1338_v46  ;;  %v1360_v23 = vsel %vm1348_vm4, %v1338_v46, %v1341_v57  ;;  %v992_v61 = vpop.f32.mrf.mxu0 }
 0x145   :  { %v1354_v25 = vsel %vm1350_vm6, %v1338_v46, %v1353_v51  ;;  %v1357_v22 = vsel %vm1351_vm7, %v1344_v20, 920167782  ;;  %v1361_v54 = vsel %vm1351_vm7, %v1347_v21, 1326507024  ;;  %v1227_v40 = vsub.s32 32, %v1226_v32 }
 0x146   :  { %v1355_v28 = vsel %vm1349_vm5, %v1352_v15, %v1354_v25  ;;  %v1358_v31 = vsel %vm1350_vm6, %v1341_v57, %v1357_v22  ;;  %v1362_v44 = vsel %vm1350_vm6, %v1344_v20, %v1361_v54  ;;  %v1229_v39 = vshll.u32 %v7459_v9, %v1226_v32  ;;  %v4705_v54 = vpop.f32.mrf.mxu0 }
 0x147   :  { %v1359_v58 = vsel %vm1349_vm5, %v1356_v50, %v1358_v31  ;;  %v1363_v55 = vsel %vm1349_vm5, %v1360_v23, %v1362_v44  ;;  %v1371_v8 = vmul.u32 %v5772_v63, %v1355_v28  ;;  %v1228_v1 = vshrl.u32 %v7459_v9, %v1227_v40 }
 0x148   :  { %v5806_v10 = vmul.u32.u64.low %v5772_v63, %v1363_v55  ;;  %v5807_v37 = vmul.u32.u64.high %v5772_v63, %v1363_v55, %v5806_v10  ;;  %v5810_v42 = vmul.u32.u64.low %v5772_v63, %v1359_v58  ;;  %v5811_v52 = vmul.u32.u64.high %v5772_v63, %v1359_v58, %v5810_v42 }
 0x149   :  { %v1230_v26 = vshrl.u32 %v7454_v41, %v1227_v40  ;;  %v1232_v34 = vshll.u32 %v7454_v41, %v1226_v32  ;;  %v1233_v47 = vshrl.u32 %v7449_v0, %v1227_v40  ;;  %v1235_v46 = vshll.u32 %v7449_v0, %v1226_v32 }
 0x14a   :  { %v1236_v57 = vshrl.u32 %v7447_v13, %v1227_v40  ;;  %v1238_v11 = vshll.u32 %v7447_v13, %v1226_v32  ;;  %v1239_v20 = vshrl.u32 %v7465_v2, %v1227_v40  ;;  %v1241_v15 = vshll.u32 %v7465_v2, %v1226_v32 }
 0x14b   :  { %v1231_v63 = vor.u32 %v1230_v26, %v1229_v39  ;;  %v1234_v21 = vor.u32 %v1233_v47, %v1232_v34  ;;  %v1242_v51 = vshrl.u32 %v7451_v30, %v1227_v40  ;;  %vm1373_vm8 = vc.u32 %v5807_v37, %v5810_v42 }
 0x14c   :  { %v1374_v50 = vadd.s32 1, %v5811_v52  ;;  %v1237_v23 = vor.u32 %v1236_v57, %v1235_v46  ;;  %vm1244_vm9 = vcmp.lt.s32.totalorder %v1225_v35, 1  ;;  %v1240_v25 = vor.u32 %v1239_v20, %v1238_v11 }
 0x14d   :  { %v1243_v22 = vor.u32 %v1242_v51, %v1241_v15  ;;  %vm1245_vm10 = vcmp.lt.s32.totalorder %v1225_v35, 2  ;;  %vm1246_vm11 = vcmp.lt.s32.totalorder %v1225_v35, 3  ;;  %vm1247_vm12 = vcmp.lt.s32.totalorder %v1225_v35, 4 }
 0x14e   :  { %v1375_v28 = vsel %vm1373_vm8, %v1374_v50, %v5811_v52  ;;  %v1248_v31 = vsel %vm1244_vm9, %v1228_v1, %v1231_v63  ;;  %v1252_v44 = vsel %vm1244_vm9, %v1231_v63, %v1234_v21  ;;  %v1249_v58 = vsel %vm1247_vm12, %v1237_v23, 2102212464  ;;  %v1004_v1 = vpop.f32.mrf.mxu0 }
 0x14f   :  { %v1376_v32 = vadd.s32 %v1375_v28, %v1371_v8  ;;  %v1253_v40 = vsel %vm1247_vm12, %v1240_v25, 920167782  ;;  %v1256_v55 = vsel %vm1244_vm9, %v1234_v21, %v1237_v23  ;;  %v1250_v39 = vsel %vm1246_vm11, %v1234_v21, %v1249_v58 }
 0x150   :  { %v1254_v10 = vsel %vm1246_vm11, %v1237_v23, %v1253_v40  ;;  %v1257_v26 = vsel %vm1247_vm12, %v1243_v22, 1326507024  ;;  %v1534_v34 = vadd.s32 1, %v5776_v7  ;;  %v1423_v52 = vand.u32 2139095040, %v5770_v56  ;;  %v7531_v22 = vld [vmem:[#allocation6_spill] sm:$0xff] }
 0x151   :  { %v1377_v47 = vadd.s32 536870912, %v1376_v32  ;;  %v1255_v46 = vsel %vm1245_vm10, %v1252_v44, %v1254_v10  ;;  %v1258_v57 = vsel %vm1246_vm11, %v1240_v25, %v1257_v26  ;;  %v1251_v8 = vsel %vm1245_vm10, %v1248_v31, %v1250_v39 }
 0x152   :  { %v1259_v11 = vsel %vm1245_vm10, %v1256_v55, %v1258_v57  ;;  %v5837_v20 = vmul.u32.u64.low %v5774_v16, %v1255_v46  ;;  %v5838_v63 = vmul.u32.u64.high %v5774_v16, %v1255_v46, %v5837_v20  ;;  %vm1535_vm13 = vcmp.gt.s32.totalorder %v1534_v34, 0 }
 0x153   :  { %v5841_v21 = vshrl.u32 %v1377_v47, 30  ;;  %v5844_v7 = vmul.u32.u64.low %v5774_v16, %v1259_v11  ;;  %v5845_v15 = vmul.u32.u64.high %v5774_v16, %v1259_v11, %v5844_v7  ;;  %v5848_v51 = vadd.f32 %v992_v61, %v5760_v27  ;;  %v7532_v27 = vld [vmem:[#allocation7_spill] sm:$0xff] }
 0x154   :  { %v5851_v50 = vadd.f32 %v4705_v54, %v5765_v59  ;;  %v5855_v35 = vadd.f32 %v5669_v49, %v5721_v12  ;;  %v1536_v23 = vsel %vm1535_vm13, %v1534_v34, 0  ;;  %v5858_v25 = vadd.f32 %v1004_v1, %v5768_v33 }
 0x155   :  { %v5862_v28 = vadd.f32 %v7531_v22, %v5725_v17  ;;  %v1379_v31 = vshll.u32 %v5841_v21, 30  ;;  %v1538_v44 = vand.u32 31, %v1536_v23  ;;  %v5867_v61 = vadd.f32 %v7532_v27, %v5729_v38 }
 0x156   :  { %v1267_v59 = vmul.u32 %v5774_v16, %v1251_v8  ;;  %v1270_v49 = vadd.s32 1, %v5838_v63  ;;  %v1532_v12 = vor.u32 8388608, %v5780_v43  ;;  %vm1269_vm14 = vc.u32 %v5845_v15, %v5837_v20 }
 0x157   :  { %v5872_v54 = vsub.s32 %v1376_v32, %v1379_v31  ;;  %v1539_v17 = vsub.s32 32, %v1538_v44  ;;  %v1424_v33 = vshrl.u32 %v1423_v52, 23  ;;  %v1537_v40 = vshrl.u32 %v1536_v23, 5  ;;  %v4708_v32 = vpop.f32.mrf.mxu0 }
 0x158   :  { %v1271_v58 = vsel %vm1269_vm14, %v1270_v49, %v5838_v63  ;;  %v1541_v55 = vshll.u32 %v7459_v9, %v1538_v44  ;;  %v1544_v38 = vshll.u32 %v7454_v41, %v1538_v44  ;;  %v1547_v43 = vshll.u32 %v7449_v0, %v1538_v44 }
 0x159   :  { %v1382_v16 = vsub.s32 0, %v5872_v54  ;;  %v1272_v39 = vadd.s32 %v1271_v58, %v1267_v59  ;;  %v1542_v10 = vshrl.u32 %v7454_v41, %v1539_v17  ;;  %v1545_v26 = vshrl.u32 %v7449_v0, %v1539_v17  ;;  %v1016_v49 = vpop.f32.mrf.mxu0 }
 0x15a   :  { %v1548_v34 = vshrl.u32 %v7447_v13, %v1539_v17  ;;  %v1550_v47 = vshll.u32 %v7447_v13, %v1538_v44  ;;  %v1551_v46 = vshrl.u32 %v7465_v2, %v1539_v17  ;;  %v1553_v8 = vshll.u32 %v7465_v2, %v1538_v44 }
 0x15b   :  { %v4240_v57 = vmin.u32 %v1382_v16, %v5872_v54  ;;  %v1273_v52 = vadd.s32 536870912, %v1272_v39  ;;  %v1543_v1 = vor.u32 %v1542_v10, %v1541_v55  ;;  %v1546_v11 = vor.u32 %v1545_v26, %v1544_v38 }
 0x15c   :  { %v1549_v63 = vor.u32 %v1548_v34, %v1547_v43  ;;  %v1552_v7 = vor.u32 %v1551_v46, %v1550_v47  ;;  %v1554_v23 = vshrl.u32 %v7451_v30, %v1539_v17  ;;  %v5891_v27 = vshll.u32 %v1532_v12, 8  ;;  %v4711_v47 = vpop.f32.mrf.mxu0 }
 0x15d   :  { %v1384_v22 = vclz %v4240_v57  ;;  %v5889_v31 = vshrl.u32 %v1273_v52, 30  ;;  %v4243_v59 = vadd.s32 4294967169, %v1424_v33  ;;  %vm1556_vm15 = vcmp.lt.s32.totalorder %v1537_v40, 1 }
 0x15e   :  { %v1555_v58 = vor.u32 %v1554_v23, %v1553_v8  ;;  %vm1557_vm2 = vcmp.lt.s32.totalorder %v1537_v40, 2  ;;  %vm1558_vm3 = vcmp.lt.s32.totalorder %v1537_v40, 3  ;;  %vm1559_vm4 = vcmp.lt.s32.totalorder %v1537_v40, 4 }
 0x15f   :  { %v4241_v16 = vadd.s32 4294967294, %v1384_v22  ;;  %v1275_v55 = vshll.u32 %v5889_v31, 30  ;;  %v1564_v44 = vsel %vm1556_vm15, %v1543_v1, %v1546_v11  ;;  %v1540_v38 = vshrl.u32 %v7459_v9, %v1539_v17 }
 0x160   :  { %v1561_v10 = vsel %vm1559_vm4, %v1549_v63, 2102212464  ;;  %v1565_v43 = vsel %vm1559_vm4, %v1552_v7, 920167782  ;;  %v1569_v26 = vsel %vm1559_vm4, %v1555_v58, 1326507024  ;;  %v1568_v34 = vsel %vm1556_vm15, %v1546_v11, %v1549_v63 }
 0x161   :  { %vm4242_vm5 = vcmp.lt.s32.totalorder %v4241_v16, 0  ;;  %v5896_v12 = vsub.s32 %v1272_v39, %v1275_v55  ;;  %v1566_v33 = vsel %vm1558_vm3, %v1549_v63, %v1565_v43  ;;  %v1560_v57 = vsel %vm1556_vm15, %v1540_v38, %v1543_v1  ;;  %v1028_v38 = vpop.f32.mrf.mxu0 }
 0x162   :  { %v1387_v46 = vsel %vm4242_vm5, 0, %v4241_v16  ;;  %v1567_v52 = vsel %vm1557_vm2, %v1564_v44, %v1566_v33  ;;  %v1570_v8 = vsel %vm1558_vm3, %v1552_v7, %v1569_v26  ;;  %v1562_v58 = vsel %vm1558_vm3, %v1546_v11, %v1561_v10 }
 0x163   :  { %v1388_v23 = vsub.s32 32, %v1387_v46  ;;  %v1392_v17 = vsub.s32 4294967266, %v1387_v46  ;;  %v1278_v22 = vsub.s32 0, %v5896_v12  ;;  %v1571_v39 = vsel %vm1557_vm2, %v1568_v34, %v1570_v8 }
 0x164   :  { %v5907_v55 = vmul.u32.u64.low %v5891_v27, %v1567_v52  ;;  %v5908_v43 = vmul.u32.u64.high %v5891_v27, %v1567_v52, %v5907_v55  ;;  %v1430_v63 = vadd.s32 1, %v4243_v59  ;;  %v1372_v1 = vadd.s32 %v5810_v42, %v5807_v37 }
 0x165   :  { %v1393_v16 = vadd.s32 127, %v1392_v17  ;;  %v4236_v7 = vmin.u32 %v1278_v22, %v5896_v12  ;;  %v7445_v44 = vand.u32 2147483647, %v5770_v56  ;;  %v1563_v26 = vsel %vm1557_vm2, %v1560_v57, %v1562_v58 }
 0x166   :  { %v5917_v11 = vmul.u32.u64.low %v5891_v27, %v1571_v39  ;;  %v5918_v10 = vmul.u32.u64.high %v5891_v27, %v1571_v39, %v5917_v11  ;;  %vm1431_vm6 = vcmp.gt.s32.totalorder %v1430_v63, 0  ;;  %v5921_v33 = vadd.f32 %v4708_v32, %v5855_v35  ;;  %v4714_v32 = vpop.f32.mrf.mxu0 }
 0x167   :  { %v1394_v59 = vshll.u32 %v1393_v16, 23  ;;  %v1280_v34 = vclz %v4236_v7  ;;  %v1432_v52 = vsel %vm1431_vm6, %v1430_v63, 0  ;;  %v859_v37 = vadd.f32 %v5691_v36, %v5739_v62 }
 0x168   :  { %v1390_v42 = vshrl.u32 %v1372_v1, %v1388_v23  ;;  %v1582_v8 = vadd.s32 1, %v5908_v43  ;;  %v1434_v17 = vand.u32 31, %v1432_v52  ;;  %v883_v40 = vadd.f32 %v5694_v24, %v5743_v5  ;;  %v4725_v5 = vpop.f32.mrf.mxu1 }
 0x169   :  { %v4237_v57 = vadd.s32 4294967294, %v1280_v34  ;;  %v1579_v22 = vmul.u32 %v5891_v27, %v1563_v26  ;;  %v1427_v35 = vand.u32 8388607, %v7445_v44  ;;  %v1389_v58 = vshll.u32 %v5872_v54, %v1387_v46 }
 0x16a   :  { %v1395_v39 = vor.u32 4788187, %v1394_v59  ;;  %vm1581_vm7 = vc.u32 %v5918_v10, %v5907_v55  ;;  %v1435_v36 = vsub.s32 32, %v1434_v17  ;;  %v5935_v62 = vadd.f32 %v1016_v49, %v5862_v28 }
 0x16b   :  { %v5938_v23 = vadd.f32 %v4711_v47, %v5867_v61  ;;  %vm4238_vm8 = vcmp.lt.s32.totalorder %v4237_v57, 0  ;;  %v1583_v24 = vsel %vm1581_vm7, %v1582_v8, %v5908_v43  ;;  %v5943_v27 = vadd.f32 %v5702_v3, %v5748_v19 }
 0x16c   :  { %v1391_v54 = vor.u32 %v1390_v42, %v1389_v58  ;;  %v1283_v46 = vsel %vm4238_vm8, 0, %v4237_v57  ;;  %v1584_v63 = vadd.s32 %v1583_v24, %v1579_v22  ;;  %v5945_v1 = vadd.f32 %v1028_v38, %v859_v37 }
 0x16d   :  { %v5947_v16 = vadd.f32 %v4714_v32, %v883_v40  ;;  %v1288_v28 = vsub.s32 4294967266, %v1283_v46  ;;  %v1428_v49 = vor.u32 8388608, %v1427_v35  ;;  %v1396_v7 = vand.u32 2147483647, %v1395_v39 }
 0x16e   :  { %v1585_v61 = vadd.s32 536870912, %v1584_v63  ;;  %v1438_v47 = vshrl.u32 %v7454_v41, %v1435_v36  ;;  %v5951_v43 = vadd.f32 %v4725_v5, %v5753_v18  ;;  %v1284_v26 = vsub.s32 32, %v1283_v46 }
 0x16f   :  { %v1289_v11 = vadd.s32 127, %v1288_v28  ;;  %v1441_v3 = vshrl.u32 %v7449_v0, %v1435_v36  ;;  %v1444_v19 = vshrl.u32 %v7447_v13, %v1435_v36  ;;  %v1398_v59 = vcvt.s32.f32 %v1391_v54 }
 0x170   :  { %7533 = vst [vmem:[#allocation6_spill] sm:$0xff] %v5951_v43  ;;  %v1268_v38 = vadd.s32 %v5837_v20, %v5845_v15  ;;  %v5957_v34 = vshrl.u32 %v1585_v61, 30  ;;  %v1447_v37 = vshrl.u32 %v7465_v2, %v1435_v36  ;;  %v1437_v8 = vshll.u32 %v7459_v9, %v1434_v17 }
 0x171   :  { %v1290_v42 = vshll.u32 %v1289_v11, 23  ;;  %v1440_v18 = vshll.u32 %v7454_v41, %v1434_v17  ;;  %v1443_v40 = vshll.u32 %v7449_v0, %v1434_v17  ;;  %v1399_v57 = vmul.f32 %v1398_v59, %v1396_v7 }
 0x172   :  { %v1587_v22 = vshll.u32 %v5957_v34, 30  ;;  %v1433_v35 = vshrl.u32 %v1432_v52, 5  ;;  %v1446_v32 = vshll.u32 %v7447_v13, %v1434_v17  ;;  %v1286_v58 = vshrl.u32 %v1268_v38, %v1284_v26 }
 0x173   :  { %v1439_v39 = vor.u32 %v1438_v47, %v1437_v8  ;;  %v1442_v20 = vor.u32 %v1441_v3, %v1440_v18  ;;  %v1445_v15 = vor.u32 %v1444_v19, %v1443_v40  ;;  %v1449_v54 = vshll.u32 %v7465_v2, %v1434_v17 }
 0x174   :  { %v5965_v24 = vsub.s32 %v1584_v63, %v1587_v22  ;;  %v1448_v5 = vor.u32 %v1447_v37, %v1446_v32  ;;  %v1450_v28 = vshrl.u32 %v7451_v30, %v1435_v36  ;;  %v1285_v61 = vshll.u32 %v5896_v12, %v1283_v46 }
 0x175   :  { %v1291_v11 = vor.u32 4788187, %v1290_v42  ;;  %v1468_v7 = vshll.u32 %v1428_v49, 8  ;;  %v1735_v59 = vand.u32 2139095040, %v5951_v43  ;;  %v1436_v26 = vshrl.u32 %v7459_v9, %v1435_v36 }
 0x176   :  { %v1590_v52 = vsub.s32 0, %v5965_v24  ;;  %v1451_v47 = vor.u32 %v1450_v28, %v1449_v54  ;;  %vm1452_vm9 = vcmp.lt.s32.totalorder %v1433_v35, 1  ;;  %v1400_v3 = vxor.u32 2147483648, %v1399_v57 }
 0x177   :  { %v1287_v63 = vor.u32 %v1286_v58, %v1285_v61  ;;  %vm1455_vm10 = vcmp.lt.s32.totalorder %v1433_v35, 4  ;;  %v1460_v19 = vsel %vm1452_vm9, %v1439_v39, %v1442_v20  ;;  %vm1454_vm11 = vcmp.lt.s32.totalorder %v1433_v35, 3 }
 0x178   :  { %v4248_v17 = vmin.u32 %v1590_v52, %v5965_v24  ;;  %v1457_v38 = vsel %vm1455_vm10, %v1445_v15, 2102212464  ;;  %v1461_v37 = vsel %vm1455_vm10, %v1448_v5, 920167782  ;;  %v1292_v12 = vand.u32 2147483647, %v1291_v11  ;;  %v1040_v11 = vpop.f32.mrf.mxu0 }
 0x179   :  { %vm1453_vm12 = vcmp.lt.s32.totalorder %v1433_v35, 2  ;;  %v1462_v46 = vsel %vm1454_vm11, %v1445_v15, %v1461_v37  ;;  %v1464_v49 = vsel %vm1452_vm9, %v1442_v20, %v1445_v15  ;;  %v1456_v8 = vsel %vm1452_vm9, %v1436_v26, %v1439_v39 }
 0x17a   :  { %v1592_v42 = vclz %v4248_v17  ;;  %v1463_v18 = vsel %vm1453_vm12, %v1460_v19, %v1462_v46  ;;  %v1465_v36 = vsel %vm1455_vm10, %v1451_v47, 1326507024  ;;  %v1458_v40 = vsel %vm1454_vm11, %v1442_v20, %v1457_v38 }
 0x17b   :  { %v1466_v22 = vsel %vm1454_vm11, %v1448_v5, %v1465_v36  ;;  %v5975_v32 = vmul.u32.u64.low %v1468_v7, %v1463_v18  ;;  %v5976_v58 = vmul.u32.u64.high %v1468_v7, %v1463_v18, %v5975_v32  ;;  %vm7505_vm13 = vcmp.lt.s32.totalorder %v5705_v45, 0 }
 0x17c   :  { %v4249_v54 = vadd.s32 4294967294, %v1592_v42  ;;  %v1467_v28 = vsel %vm1453_vm12, %v1464_v49, %v1466_v22  ;;  %v7444_v61 = vand.u32 2147483647, %v5951_v43  ;;  %v1294_v15 = vcvt.s32.f32 %v1287_v63 }
 0x17d   :  { %v5982_v52 = vmul.u32.u64.low %v1468_v7, %v1467_v28  ;;  %v5983_v39 = vmul.u32.u64.high %v1468_v7, %v1467_v28, %v5982_v52  ;;  %v1736_v26 = vshrl.u32 %v1735_v59, 23  ;;  %v1401_v20 = vsel %vm7505_vm13, %v1400_v3, %v1399_v57 }
 0x17e   :  { %vm4250_vm14 = vcmp.lt.s32.totalorder %v4249_v54, 0  ;;  %v1610_v5 = vsub.s32 4, %v5957_v34  ;;  %v1459_v47 = vsel %vm1453_vm12, %v1456_v8, %v1458_v40  ;;  %v1295_v19 = vmul.f32 %v1294_v15, %v1292_v12  ;;  %v1142_v12 = vpop.f32.mrf.mxu1 }
 0x17f   :  { %v1595_v17 = vsel %vm4250_vm14, 0, %v4249_v54  ;;  %v1478_v38 = vadd.s32 1, %v5976_v58  ;;  %v4255_v37 = vadd.s32 4294967169, %v1736_v26  ;;  %v5991_v46 = vadd.f32 %v1040_v11, %v5943_v27 }
 0x180   :  { %vm5995_vm15 = vcmp.le.f32.partialorder %v1316_v6, 0.7853982  ;;  %v1596_v57 = vsub.s32 32, %v1595_v17  ;;  %v1600_v3 = vsub.s32 4294967266, %v1595_v17  ;;  %vm1526_vm2 = vcmp.lt.s32.totalorder %v5735_v4, 0 }
 0x181   :  { %v1475_v35 = vmul.u32 %v1468_v7, %v1459_v47  ;;  %vm1477_vm3 = vc.u32 %v5983_v39, %v5975_v32  ;;  %v1742_v63 = vadd.s32 1, %v4255_v37  ;;  %v1404_v27 = vsel %vm5995_vm15, %v5705_v45, %v1401_v20 }
 0x182   :  { %v1580_v6 = vadd.s32 %v5907_v55, %v5918_v10  ;;  %v6010_v49 = vsel %vm1526_vm2, %v1610_v5, %v5957_v34  ;;  %v1479_v42 = vsel %vm1477_vm3, %v1478_v38, %v5976_v58  ;;  %v1296_v7 = vxor.u32 2147483648, %v1295_v19 }
 0x183   :  { %v1480_v8 = vadd.s32 %v1479_v42, %v1475_v35  ;;  %v1739_v18 = vand.u32 8388607, %v7444_v61  ;;  %vm1743_vm4 = vcmp.gt.s32.totalorder %v1742_v63, 0  ;;  %v1601_v40 = vadd.s32 127, %v1600_v3  ;;  %v4728_v35 = vpop.f32.mrf.mxu1 }
 0x184   :  { %v1598_v36 = vshrl.u32 %v1580_v6, %v1596_v57  ;;  %v1744_v22 = vsel %vm1743_vm4, %v1742_v63, 0  ;;  %v6016_v54 = vadd.f32 %v1142_v12, %v5757_v29  ;;  %5082 = vcosq.f32 %v1404_v27 }
 0x185   :  { %vm6020_vm5 = vcmp.le.f32.partialorder %v1524_v48, 0.7853982  ;;  %v1481_v10 = vadd.s32 536870912, %v1480_v8  ;;  %v1746_v34 = vand.u32 31, %v1744_v22  ;;  %5084 = vsinq.f32 %v1404_v27 }
 0x186   :  { %7536 = vst [vmem:[#allocation7_spill] sm:$0xff] %v6016_v54  ;;  %vm1214_vm6 = vcmp.lt.s32.totalorder %v5715_v60, 0  ;;  %v1597_v58 = vshll.u32 %v5965_v24, %v1595_v17  ;;  %v1613_v28 = vsel %vm6020_vm5, 0, %v6010_v49  ;;  %v1740_v48 = vor.u32 8388608, %v1739_v18 }
 0x187   :  { %v6031_v29 = vsel %vm1214_vm6, %v1296_v7, %v1295_v19  ;;  %v6033_v11 = vshrl.u32 %v1481_v10, 30  ;;  %v1747_v15 = vsub.s32 32, %v1746_v34  ;;  %v1602_v26 = vshll.u32 %v1601_v40, 23 }
 0x188   :  { %v6035_v52 = vor.u32 %v1598_v36, %v1597_v58  ;;  %v7443_v20 = vand.u32 2147483647, %v6016_v54  ;;  %v1631_v5 = vand.u32 2139095040, %v6016_v54  ;;  %v1749_v47 = vshll.u32 %v7459_v9, %v1746_v34 }
 0x189   :  { %v1483_v24 = vshll.u32 %v6033_v11, 30  ;;  %v1750_v17 = vshrl.u32 %v7454_v41, %v1747_v15  ;;  %v1752_v19 = vshll.u32 %v7454_v41, %v1746_v34  ;;  %v1753_v38 = vshrl.u32 %v7449_v0, %v1747_v15 }
 0x18a   :  { %v1755_v37 = vshll.u32 %v7449_v0, %v1746_v34  ;;  %v1756_v57 = vshrl.u32 %v7447_v13, %v1747_v15  ;;  %v1759_v3 = vshrl.u32 %v7465_v2, %v1747_v15  ;;  %v1745_v12 = vshrl.u32 %v1744_v22, 5 }
 0x18b   :  { %v6047_v63 = vsub.s32 %v1480_v8, %v1483_v24  ;;  %v1758_v27 = vshll.u32 %v7447_v13, %v1746_v34  ;;  %v1762_v6 = vshrl.u32 %v7451_v30, %v1747_v15  ;;  %v1751_v42 = vor.u32 %v1750_v17, %v1749_v47 }
 0x18c   :  { %v1754_v7 = vor.u32 %v1753_v38, %v1752_v19  ;;  %v1757_v18 = vor.u32 %v1756_v57, %v1755_v37  ;;  %v1761_v36 = vshll.u32 %v7465_v2, %v1746_v34  ;;  %vm6054_vm7 = vcmp.le.f32.partialorder %v1212_v53, 0.7853982 }
 0x18d   :  { %v1486_v10 = vsub.s32 0, %v6047_v63  ;;  %v1760_v8 = vor.u32 %v1759_v3, %v1758_v27  ;;  %v1780_v58 = vshll.u32 %v1740_v48, 8  ;;  %v6060_v22 = vadd.f32 %v4728_v35, %v5762_v14 }
 0x18e   :  { %v1603_v24 = vor.u32 4788187, %v1602_v26  ;;  %v1606_v47 = vcvt.s32.f32 %v6035_v52  ;;  %v1763_v17 = vor.u32 %v1762_v6, %v1761_v36  ;;  %v1635_v34 = vand.u32 8388607, %v7443_v20 }
 0x18f   :  { %7541 = vst [vmem:[#allocation9_spill] sm:$0xff] %v6060_v22  ;;  %v4244_v19 = vmin.u32 %v1486_v10, %v6047_v63  ;;  %v1748_v53 = vshrl.u32 %v7459_v9, %v1747_v15  ;;  %vm1764_vm8 = vcmp.lt.s32.totalorder %v1745_v12, 1  ;;  %vm1767_vm9 = vcmp.lt.s32.totalorder %v1745_v12, 4 }
 0x190   :  { %vm1765_vm10 = vcmp.lt.s32.totalorder %v1745_v12, 2  ;;  %v1769_v38 = vsel %vm1767_vm9, %v1757_v18, 2102212464  ;;  %v1772_v37 = vsel %vm1764_vm8, %v1751_v42, %v1754_v7  ;;  %v1632_v48 = vshrl.u32 %v1631_v5, 23 }
 0x191   :  { %v1488_v57 = vclz %v4244_v19  ;;  %vm1766_vm11 = vcmp.lt.s32.totalorder %v1745_v12, 3  ;;  %v1768_v14 = vsel %vm1764_vm8, %v1748_v53, %v1751_v42  ;;  %v1773_v26 = vsel %vm1767_vm9, %v1760_v8, 920167782  ;;  %v6067_v3 = vpop.eup %5082 }
 0x192   :  { %7542 = vst [vmem:[#allocation10_spill] sm:$0xff] %v6067_v3  ;;  %v1770_v52 = vsel %vm1766_vm11, %v1754_v7, %v1769_v38  ;;  %v1774_v35 = vsel %vm1766_vm11, %v1757_v18, %v1773_v26  ;;  %v1776_v27 = vsel %vm1764_vm8, %v1754_v7, %v1757_v18  ;;  %v1777_v6 = vsel %vm1767_vm9, %v1763_v17, 1326507024  ;;  %v6069_v36 = vpop.eup %5084 }
 0x193   :  { %v1604_v10 = vand.u32 2147483647, %v1603_v24  ;;  %v4245_v15 = vadd.s32 4294967294, %v1488_v57  ;;  %v1775_v20 = vsel %vm1765_vm10, %v1772_v37, %v1774_v35  ;;  %v1778_v61 = vsel %vm1766_vm11, %v1760_v8, %v1777_v6  ;;  %v1154_v6 = vpop.f32.mrf.mxu1 }
 0x194   :  { %v1779_v44 = vsel %vm1765_vm10, %v1776_v27, %v1778_v61  ;;  %v6073_v5 = vmul.u32.u64.low %v1780_v58, %v1775_v20  ;;  %v6074_v19 = vmul.u32.u64.high %v1780_v58, %v1775_v20, %v6073_v5  ;;  %v4251_v42 = vadd.s32 4294967169, %v1632_v48 }
 0x195   :  { %vm4246_vm12 = vcmp.lt.s32.totalorder %v4245_v15, 0  ;;  %v1771_v53 = vsel %vm1765_vm10, %v1768_v14, %v1770_v52  ;;  %v6078_v38 = vmul.u32.u64.low %v1780_v58, %v1779_v44  ;;  %v6079_v7 = vmul.u32.u64.high %v1780_v58, %v1779_v44, %v6078_v38  ;;  %v4731_v55 = vpop.f32.mrf.mxu1 }
 0x196   :  { %v1300_v18 = vsel %vm6054_vm7, %v5715_v60, %v6031_v29  ;;  %v1476_v8 = vadd.s32 %v5975_v32, %v5983_v39  ;;  %v1491_v61 = vsel %vm4246_vm12, 0, %v4245_v15  ;;  %v1638_v24 = vadd.s32 1, %v4251_v42 }
 0x197   :  { %v6087_v20 = vmul.f32 %v1606_v47, %v1604_v10  ;;  %v1492_v17 = vsub.s32 32, %v1491_v61  ;;  %v1496_v37 = vsub.s32 4294967266, %v1491_v61  ;;  %v7446_v12 = vand.u32 2147483647, %v6060_v22 }
 0x198   :  { %v1787_v48 = vmul.u32 %v1780_v58, %v1771_v53  ;;  %v1790_v44 = vadd.s32 1, %v6074_v19  ;;  %vm1639_vm14 = vcmp.gt.s32.totalorder %v1638_v24, 0  ;;  %v1943_v57 = vand.u32 2139095040, %v6060_v22 }
 0x199   :  { %v1494_v14 = vshrl.u32 %v1476_v8, %v1492_v17  ;;  %v1497_v26 = vadd.s32 127, %v1496_v37  ;;  %vm1789_vm3 = vc.u32 %v6079_v7, %v6073_v5  ;;  %v1636_v32 = vor.u32 8388608, %v1635_v34 }
 0x19a   :  { %v6098_v39 = vadd.s32 3, %v1613_v28  ;;  %v1791_v29 = vsel %vm1789_vm3, %v1790_v44, %v6074_v19  ;;  %v1640_v58 = vsel %vm1639_vm14, %v1638_v24, 0  ;;  %v1944_v47 = vshrl.u32 %v1943_v57, 23 }
 0x19b   :  { %5086 = vcosq.f32 %v1300_v18  ;;  %v1493_v52 = vshll.u32 %v6047_v63, %v1491_v61  ;;  %v1498_v35 = vshll.u32 %v1497_v26, 23  ;;  %v1792_v27 = vadd.s32 %v1791_v29, %v1787_v48 }
 0x19c   :  { %5088 = vsinq.f32 %v1300_v18  ;;  %v1608_v10 = vxor.u32 2147483648, %v6087_v20  ;;  %v1642_v15 = vand.u32 31, %v1640_v58  ;;  %v6104_v28 = vshll.u32 %v1636_v32, 8 }
 0x19d   :  { %v1495_v42 = vor.u32 %v1494_v14, %v1493_v52  ;;  %v1793_v49 = vadd.s32 536870912, %v1792_v27  ;;  %v6108_v19 = vand.u32 8388607, %v7446_v12  ;;  %v1641_v53 = vshrl.u32 %v1640_v58, 5 }
 0x19e   :  { %v1643_v38 = vsub.s32 32, %v1642_v15  ;;  %v4263_v63 = vadd.s32 4294967169, %v1944_v47  ;;  %v6111_v8 = vadd.f32 %v1154_v6, %v5848_v51  ;;  %v1499_v18 = vor.u32 4788187, %v1498_v35 }
 0x19f   :  { %v6113_v61 = vshrl.u32 %v1793_v49, 30  ;;  %v1645_v24 = vshll.u32 %v7459_v9, %v1642_v15  ;;  %v1648_v17 = vshll.u32 %v7454_v41, %v1642_v15  ;;  %v1651_v44 = vshll.u32 %v7449_v0, %v1642_v15 }
 0x1a0   :  { %7543 = vst [vmem:[#allocation11_spill] sm:$0xff] %v6111_v8  ;;  %v1646_v37 = vshrl.u32 %v7454_v41, %v1643_v38  ;;  %v1649_v48 = vshrl.u32 %v7449_v0, %v1643_v38  ;;  %v1652_v57 = vshrl.u32 %v7447_v13, %v1643_v38  ;;  %v1654_v51 = vshll.u32 %v7447_v13, %v1642_v15 }
 0x1a1   :  { %7544 = vst [vmem:[#allocation12_spill] sm:$0xff] %v6113_v61  ;;  %v1795_v14 = vshll.u32 %v6113_v61, 30  ;;  %v1655_v26 = vshrl.u32 %v7465_v2, %v1643_v38  ;;  %v1658_v32 = vshrl.u32 %v7451_v30, %v1643_v38  ;;  %v1657_v52 = vshll.u32 %v7465_v2, %v1642_v15 }
 0x1a2   :  { %v1647_v29 = vor.u32 %v1646_v37, %v1645_v24  ;;  %v1650_v58 = vor.u32 %v1649_v48, %v1648_v17  ;;  %v1653_v47 = vor.u32 %v1652_v57, %v1651_v44  ;;  %v1500_v35 = vand.u32 2147483647, %v1499_v18 }
 0x1a3   :  { %v6126_v6 = vsub.s32 %v1792_v27, %v1795_v14  ;;  %v1656_v49 = vor.u32 %v1655_v26, %v1654_v51  ;;  %vm1660_vm4 = vcmp.lt.s32.totalorder %v1641_v53, 1  ;;  %v1644_v12 = vshrl.u32 %v7459_v9, %v1643_v38 }
 0x1a4   :  { %v1659_v34 = vor.u32 %v1658_v32, %v1657_v52  ;;  %vm1663_vm8 = vcmp.lt.s32.totalorder %v1641_v53, 4  ;;  %v1668_v13 = vsel %vm1660_vm4, %v1647_v29, %v1650_v58  ;;  %vm1662_vm9 = vcmp.lt.s32.totalorder %v1641_v53, 3 }
 0x1a5   :  { %v1798_v0 = vsub.s32 0, %v6126_v6  ;;  %v1665_v30 = vsel %vm1663_vm8, %v1653_v47, 2102212464  ;;  %v1669_v24 = vsel %vm1663_vm8, %v1656_v49, 920167782  ;;  %v1502_v17 = vcvt.s32.f32 %v1495_v42 }
 0x1a6   :  { %vm1661_vm10 = vcmp.lt.s32.totalorder %v1641_v53, 2  ;;  %v1664_v15 = vsel %vm1660_vm4, %v1644_v12, %v1647_v29  ;;  %v1670_v27 = vsel %vm1662_vm9, %v1653_v47, %v1669_v24  ;;  %v1666_v37 = vsel %vm1662_vm9, %v1650_v58, %v1665_v30 }
 0x1a7   :  { %v4256_v18 = vmin.u32 %v1798_v0, %v6126_v6  ;;  %v1671_v38 = vsel %vm1661_vm10, %v1668_v13, %v1670_v27  ;;  %v1672_v48 = vsel %vm1660_vm4, %v1650_v58, %v1653_v47  ;;  %v1673_v57 = vsel %vm1663_vm8, %v1659_v34, 1326507024 }
 0x1a8   :  { %v6137_v44 = vpop.eup %5086  ;;  %v6140_v14 = vmul.u32.u64.low %v6104_v28, %v1671_v38  ;;  %v6141_v51 = vmul.u32.u64.high %v6104_v28, %v1671_v38, %v6140_v14  ;;  %v1948_v12 = vor.u32 8388608, %v6108_v19  ;;  %v6147_v26 = vmul.f32 %v1502_v17, %v1500_v35 }
 0x1a9   :  { %v6145_v42 = vpop.eup %5088  ;;  %v1800_v0 = vclz %v4256_v18  ;;  %v1674_v30 = vsel %vm1662_vm9, %v1656_v49, %v1673_v57  ;;  %v1950_v13 = vadd.s32 1, %v4263_v63  ;;  %v1667_v32 = vsel %vm1661_vm10, %v1664_v15, %v1666_v37 }
 0x1aa   :  { %v1675_v29 = vsel %vm1661_vm10, %v1672_v48, %v1674_v30  ;;  %v7453_v34 = vand.u32 2147483647, %v6111_v8  ;;  %v1839_v58 = vand.u32 2139095040, %v6111_v8  ;;  %v6163_v63 = vsel %vm1526_vm2, %v1608_v10, %v6087_v20 }
 0x1ab   :  { %v4257_v47 = vadd.s32 4294967294, %v1800_v0  ;;  %v6155_v52 = vmul.u32.u64.low %v6104_v28, %v1675_v29  ;;  %v6156_v19 = vmul.u32.u64.high %v6104_v28, %v1675_v29, %v6155_v52  ;;  %vm1951_vm11 = vcmp.gt.s32.totalorder %v1950_v13, 0 }
 0x1ac   :  { %v1788_v53 = vadd.s32 %v6073_v5, %v6079_v7  ;;  %v1952_v35 = vsel %vm1951_vm11, %v1950_v13, 0  ;;  %v1840_v49 = vshrl.u32 %v1839_v58, 23  ;;  %v1686_v24 = vadd.s32 1, %v6141_v51 }
 0x1ad   :  { %vm4258_vm12 = vcmp.lt.s32.totalorder %v4257_v47, 0  ;;  %v1954_v17 = vand.u32 31, %v1952_v35  ;;  %v6168_v15 = vshll.u32 %v1948_v12, 8  ;;  %v1504_v27 = vxor.u32 2147483648, %v6147_v26 }
 0x1ae   :  { %v1803_v18 = vsel %vm4258_vm12, 0, %v4257_v47  ;;  %v1683_v37 = vmul.u32 %v6104_v28, %v1667_v32  ;;  %v6172_v38 = vshrl.u32 %v1952_v35, 5  ;;  %v4259_v48 = vadd.s32 4294967169, %v1840_v49 }
 0x1af   :  { %v1804_v20 = vsub.s32 32, %v1803_v18  ;;  %v1808_v10 = vsub.s32 4294967266, %v1803_v18  ;;  %v6176_v5 = vand.u32 8388607, %v7453_v34  ;;  %v1805_v7 = vshll.u32 %v6126_v6, %v1803_v18 }
 0x1b0   :  { %vm1685_vm2 = vc.u32 %v6156_v19, %v6140_v14  ;;  %v1955_v57 = vsub.s32 32, %v1954_v17  ;;  %v1957_v12 = vshll.u32 %v7459_v9, %v1954_v17  ;;  %v1960_v13 = vshll.u32 %v7454_v41, %v1954_v17 }
 0x1b1   :  { %v1806_v0 = vshrl.u32 %v1788_v53, %v1804_v20  ;;  %v1809_v30 = vadd.s32 127, %v1808_v10  ;;  %v1687_v28 = vsel %vm1685_vm2, %v1686_v24, %v6141_v51  ;;  %vm1422_vm14 = vcmp.lt.s32.totalorder %v5770_v56, 0 }
 0x1b2   :  { %v1688_v32 = vadd.s32 %v1687_v28, %v1683_v37  ;;  %v1958_v29 = vshrl.u32 %v7454_v41, %v1955_v57  ;;  %v7545_v58 = vmov 2131351028   ;;  %v1956_v49 = vshrl.u32 %v7459_v9, %v1955_v57 }
 0x1b3   :  { %v1961_v47 = vshrl.u32 %v7545_v58, %v1955_v57  ;;  %v1963_v6 = vshll.u32 %v7545_v58, %v1954_v17  ;;  %v1807_v52 = vor.u32 %v1806_v0, %v1805_v7  ;;  %v1810_v35 = vshll.u32 %v1809_v30, 23 }
 0x1b4   :  { %v7546_v18 = vmov 2102212464   ;;  %v1689_v20 = vadd.s32 536870912, %v1688_v32  ;;  %v1959_v10 = vor.u32 %v1958_v29, %v1957_v12  ;;  %v1967_v24 = vshrl.u32 %v7465_v2, %v1955_v57 }
 0x1b5   :  { %v1964_v53 = vshrl.u32 %v7546_v18, %v1955_v57  ;;  %v1966_v51 = vshll.u32 %v7546_v18, %v1954_v17  ;;  %v1811_v34 = vor.u32 4788187, %v1810_v35  ;;  %v1814_v37 = vcvt.s32.f32 %v1807_v52 }
 0x1b6   :  { %v1962_v28 = vor.u32 %v1961_v47, %v1960_v13  ;;  %v6192_v61 = vshrl.u32 %v1689_v20, 30  ;;  %v1969_v7 = vshll.u32 %v7465_v2, %v1954_v17  ;;  %v7548_v0 = vmov 1326507024  }
 0x1b7   :  { %v1965_v41 = vor.u32 %v1964_v53, %v1963_v6  ;;  %v1968_v3 = vor.u32 %v1967_v24, %v1966_v51  ;;  %v1970_v30 = vshrl.u32 %v7548_v0, %v1955_v57  ;;  %v1812_v9 = vand.u32 2147483647, %v1811_v34 }
 0x1b8   :  { %7547 = vst [vmem:[#allocation13_spill] sm:$0xff] %v6192_v61  ;;  %vm1972_vm3 = vcmp.lt.s32.totalorder %v6172_v38, 1  ;;  %vm1973_vm4 = vcmp.lt.s32.totalorder %v6172_v38, 2  ;;  %vm1975_vm8 = vcmp.lt.s32.totalorder %v6172_v38, 4  ;;  %v7549_v12 = vand.u32 2147483647, %v5770_v56 }
 0x1b9   :  { %v1691_v13 = vshll.u32 %v6192_v61, 30  ;;  %v1971_v47 = vor.u32 %v1970_v30, %v1969_v7  ;;  %vm1974_vm10 = vcmp.lt.s32.totalorder %v6172_v38, 3  ;;  %v1977_v34 = vsel %vm1975_vm8, %v1965_v41, 2102212464 }
 0x1ba   :  { %vm6201_vm9 = vcmp.le.f32.partialorder %v7549_v12, 0.7853982  ;;  %vm7484_vm11 = vcmp.lt.s32.totalorder %v5951_v43, 0  ;;  %v1815_v17 = vmul.f32 %v1814_v37, %v1812_v9  ;;  %v1976_v57 = vsel %vm1972_vm3, %v1956_v49, %v1959_v10 }
 0x1bb   :  { %v1980_v6 = vsel %vm1972_vm3, %v1959_v10, %v1962_v28  ;;  %v1981_v52 = vsel %vm1975_vm8, %v1968_v3, 920167782  ;;  %v6216_v35 = vsub.s32 %v1688_v32, %v1691_v13  ;;  %v1978_v53 = vsel %vm1974_vm10, %v1962_v28, %v1977_v34 }
 0x1bc   :  { %v1982_v20 = vsel %vm1974_vm10, %v1965_v41, %v1981_v52  ;;  %v1984_v9 = vsel %vm1972_vm3, %v1962_v28, %v1965_v41  ;;  %v1612_v49 = vsel %vm6020_vm5, %v5735_v4, %v6163_v63  ;;  %v1505_v10 = vsel %vm1422_vm14, %v1504_v27, %v6147_v26 }
 0x1bd   :  { %v1983_v32 = vsel %vm1973_vm4, %v1980_v6, %v1982_v20  ;;  %v1985_v51 = vsel %vm1975_vm8, %v1971_v47, 1326507024  ;;  %v1694_v24 = vsub.s32 0, %v6216_v35  ;;  %v1816_v63 = vxor.u32 2147483648, %v1815_v17 }
 0x1be   :  { %v1986_v41 = vsel %vm1974_vm10, %v1968_v3, %v1985_v51  ;;  %v6239_v37 = vmul.u32.u64.low %v6168_v15, %v1983_v32  ;;  %v6240_v28 = vmul.u32.u64.high %v6168_v15, %v1983_v32, %v6239_v37  ;;  %v1979_v26 = vsel %vm1973_vm4, %v1976_v57, %v1978_v53 }
 0x1bf   :  { %v1987_v27 = vsel %vm1973_vm4, %v1984_v9, %v1986_v41  ;;  %v1846_v7 = vadd.s32 1, %v4259_v48  ;;  %v4252_v30 = vmin.u32 %v1694_v24, %v6216_v35  ;;  %v1844_v3 = vor.u32 8388608, %v6176_v5 }
 0x1c0   :  { %v6249_v12 = vmul.u32.u64.low %v6168_v15, %v1987_v27  ;;  %v6250_v13 = vmul.u32.u64.high %v6168_v15, %v1987_v27, %v6249_v12  ;;  %5090 = vcosq.f32 %v1612_v49  ;;  %v7552_v47 = vsub.s32 4, %v6033_v11 }
 0x1c1   :  { %vm1847_vm5 = vcmp.gt.s32.totalorder %v1846_v7, 0  ;;  %v6261_v38 = vadd.f32 %v4731_v55, %v5851_v50  ;;  %5092 = vsinq.f32 %v1612_v49  ;;  %v1696_v48 = vclz %v4252_v30 }
 0x1c2   :  { %v6258_v34 = vsel %vm1422_vm14, %v7552_v47, %v6033_v11  ;;  %v1998_v57 = vadd.s32 1, %v6240_v28  ;;  %v1848_v6 = vsel %vm1847_vm5, %v1846_v7, 0  ;;  %v6267_v5 = vsel %vm6201_vm9, %v5770_v56, %v1505_v10 }
 0x1c3   :  { %7553 = vst [vmem:[#allocation14_spill] sm:$0xff] %v6261_v38  ;;  %v1684_v52 = vadd.s32 %v6140_v14, %v6156_v19  ;;  %v1995_v11 = vmul.u32 %v6168_v15, %v1979_v26  ;;  %v1850_v53 = vand.u32 31, %v1848_v6  ;;  %v6274_v50 = vsel %vm7484_vm11, %v1816_v63, %v1815_v17 }
 0x1c4   :  { %v4253_v20 = vadd.s32 4294967294, %v1696_v48  ;;  %vm1997_vm12 = vc.u32 %v6250_v13, %v6239_v37  ;;  %v6278_v9 = vshll.u32 %v1844_v3, 8  ;;  %v6281_v10 = vshrl.u32 %v1848_v6, 5 }
 0x1c5   :  { %v1999_v49 = vsel %vm1997_vm12, %v1998_v57, %v6240_v28  ;;  %v1851_v32 = vsub.s32 32, %v1850_v53  ;;  %v7554_v15 = vmov 683565275   ;;  %v7555_v24 = vmov 2475754826  }
 0x1c6   :  { %vm4254_vm2 = vcmp.lt.s32.totalorder %v4253_v20, 0  ;;  %v2000_v19 = vadd.s32 %v1999_v49, %v1995_v11  ;;  %v1853_v51 = vshll.u32 %v7554_v15, %v1850_v53  ;;  %v1856_v17 = vshll.u32 %v7555_v24, %v1850_v53 }
 0x1c7   :  { %v1699_v41 = vsel %vm4254_vm2, 0, %v4253_v20  ;;  %v1854_v55 = vshrl.u32 %v7555_v24, %v1851_v32  ;;  %v1857_v63 = vshrl.u32 %v7545_v58, %v1851_v32  ;;  %v1859_v26 = vshll.u32 %v7545_v58, %v1850_v53 }
 0x1c8   :  { %v1700_v27 = vsub.s32 32, %v1699_v41  ;;  %v1704_v28 = vsub.s32 4294967266, %v1699_v41  ;;  %v2001_v7 = vadd.s32 536870912, %v2000_v19  ;;  %v1862_v30 = vshll.u32 %v7546_v18, %v1850_v53 }
 0x1c9   :  { %v1701_v12 = vshll.u32 %v6216_v35, %v1699_v41  ;;  %v1855_v3 = vor.u32 %v1854_v55, %v1853_v51  ;;  %v1860_v47 = vshrl.u32 %v7546_v18, %v1851_v32  ;;  %v1863_v48 = vshrl.u32 %v7465_v2, %v1851_v32 }
 0x1ca   :  { %v1702_v57 = vshrl.u32 %v1684_v52, %v1700_v27  ;;  %v1705_v6 = vadd.s32 127, %v1704_v28  ;;  %v6293_v11 = vshrl.u32 %v2001_v7, 30  ;;  %v1858_v20 = vor.u32 %v1857_v63, %v1856_v17 }
 0x1cb   :  { %v7557_v49 = vand.u32 2147483647, %v5951_v43  ;;  %v7558_v14 = vmov 0  ;;  %v1861_v61 = vor.u32 %v1860_v47, %v1859_v26  ;;  %v1864_v4 = vor.u32 %v1863_v48, %v1862_v30 }
 0x1cc   :  { %7556 = vst [vmem:[#allocation15_spill] sm:$0xff] %v6293_v11  ;;  %v1865_v35 = vshll.u32 %v7465_v2, %v1850_v53  ;;  %v1866_v51 = vshrl.u32 %v7548_v0, %v1851_v32  ;;  %v1703_v41 = vor.u32 %v1702_v57, %v1701_v12  ;;  %v1706_v55 = vshll.u32 %v1705_v6, 23 }
 0x1cd   :  { %vm6297_vm14 = vcmp.le.f32.partialorder %v7557_v49, 0.7853982  ;;  %v2003_v52 = vshll.u32 %v6293_v11, 30  ;;  %v2151_v27 = vand.u32 2139095040, %v6261_v38  ;;  %v1852_v17 = vshrl.u32 %v7554_v15, %v1851_v32  ;;  %v6308_v28 = vpop.eup %5090 }
 0x1ce   :  { %v7559_v14 = vsel %vm6297_vm14, 4294967295, %v7558_v14  ;;  %v1867_v63 = vor.u32 %v1866_v51, %v1865_v35  ;;  %vm1868_vm3 = vcmp.lt.s32.totalorder %v6281_v10, 1  ;;  %vm1869_vm4 = vcmp.lt.s32.totalorder %v6281_v10, 2  ;;  %7561 = vst [vmem:[#allocation17_spill] sm:$0xff] %v6308_v28  ;;  %v6314_v53 = vpop.eup %5092 }
 0x1cf   :  { %7560 = vst [vmem:[#allocation16_spill] sm:$0xff] %v7559_v14  ;;  %v1707_v26 = vor.u32 4788187, %v1706_v55  ;;  %v6310_v7 = vsub.s32 %v2000_v19, %v2003_v52  ;;  %vm1870_vm8 = vcmp.lt.s32.totalorder %v6281_v10, 3  ;;  %vm1871_vm10 = vcmp.lt.s32.totalorder %v6281_v10, 4  ;;  %7562 = vst [vmem:[#allocation18_spill] sm:$0xff] %v6314_v53 }
 0x1d0   :  { %v1710_v30 = vcvt.s32.f32 %v1703_v41  ;;  %v1873_v12 = vsel %vm1871_vm10, %v1861_v61, 2102212464  ;;  %v1876_v32 = vsel %vm1868_vm3, %v1855_v3, %v1858_v20  ;;  %v1877_v47 = vsel %vm1871_vm10, %v1864_v4, 920167782 }
 0x1d1   :  { %vm7504_vm5 = vcmp.lt.s32.totalorder %v6016_v54, 0  ;;  %v1708_v48 = vand.u32 2147483647, %v1707_v26  ;;  %v2006_v57 = vsub.s32 0, %v6310_v7  ;;  %v1878_v19 = vsel %vm1870_vm8, %v1861_v61, %v1877_v47 }
 0x1d2   :  { %v1880_v6 = vsel %vm1868_vm3, %v1858_v20, %v1861_v61  ;;  %v1872_v49 = vsel %vm1868_vm3, %v1852_v17, %v1855_v3  ;;  %v1879_v35 = vsel %vm1869_vm4, %v1876_v32, %v1878_v19  ;;  %v1881_v51 = vsel %vm1871_vm10, %v1867_v63, 1326507024 }
 0x1d3   :  { %v2152_v41 = vshrl.u32 %v2151_v27, 23  ;;  %v1711_v55 = vmul.f32 %v1710_v30, %v1708_v48  ;;  %v4264_v52 = vmin.u32 %v2006_v57, %v6310_v7  ;;  %v1874_v26 = vsel %vm1870_vm8, %v1858_v20, %v1873_v12  ;;  %v1166_v12 = vpop.f32.mrf.mxu1 }
 0x1d4   :  { %v1882_v47 = vsel %vm1870_vm8, %v1864_v4, %v1881_v51  ;;  %v7563_v2 = vand.u32 2147483647, %v6016_v54  ;;  %v7564_v61 = vmov 0  ;;  %v6350_v4 = vsel %vm6297_vm14, %v5951_v43, %v6274_v50 }
 0x1d5   :  { %v1883_v3 = vsel %vm1869_vm4, %v1880_v6, %v1882_v47  ;;  %v6342_v27 = vmul.u32.u64.low %v6278_v9, %v1879_v35  ;;  %v6343_v17 = vmul.u32.u64.high %v6278_v9, %v1879_v35, %v6342_v27  ;;  %v4271_v63 = vadd.s32 4294967169, %v2152_v41 }
 0x1d6   :  { %vm6335_vm12 = vcmp.le.f32.partialorder %v7563_v2, 0.7853982  ;;  %v2008_v20 = vclz %v4264_v52  ;;  %v6353_v2 = vmul.u32.u64.low %v6278_v9, %v1883_v3  ;;  %v6354_v30 = vmul.u32.u64.high %v6278_v9, %v1883_v3, %v6353_v2 }
 0x1d7   :  { %v7565_v61 = vsel %vm6335_vm12, 4294967295, %v7564_v61  ;;  %5094 = vcosq.f32 %v6267_v5  ;;  %v1712_v32 = vxor.u32 2147483648, %v1711_v55  ;;  %v1875_v48 = vsel %vm1869_vm4, %v1872_v49, %v1874_v26 }
 0x1d8   :  { %7566 = vst [vmem:[#allocation19_spill] sm:$0xff] %v7565_v61  ;;  %v2158_v57 = vadd.s32 1, %v4271_v63  ;;  %5096 = vsinq.f32 %v6267_v5  ;;  %v4265_v50 = vadd.s32 4294967294, %v2008_v20  ;;  %v7567_v6 = vand.u32 2147483647, %v6261_v38  ;;  %v4734_v5 = vpop.f32.mrf.mxu1 }
 0x1d9   :  { %5098 = vcosq.f32 %v6350_v4  ;;  %v1894_v51 = vadd.s32 1, %v6343_v17  ;;  %v6370_v10 = vadd.f32 %v1166_v12, %v5858_v25  ;;  %v1996_v49 = vadd.s32 %v6239_v37, %v6250_v13 }
 0x1da   :  { %v6365_v35 = vand.u32 8388607, %v7567_v6  ;;  %vm2159_vm2 = vcmp.gt.s32.totalorder %v2158_v57, 0  ;;  %vm4266_vm3 = vcmp.lt.s32.totalorder %v4265_v50, 0  ;;  %v1891_v41 = vmul.u32 %v6278_v9, %v1875_v48 }
 0x1db   :  { %7568 = vst [vmem:[#allocation20_spill] sm:$0xff] %v6370_v10  ;;  %vm1893_vm4 = vc.u32 %v6354_v30, %v6342_v27  ;;  %v1713_v52 = vsel %vm7504_vm5, %v1712_v32, %v1711_v55  ;;  %v2011_v26 = vsel %vm4266_vm3, 0, %v4265_v50  ;;  %v2160_v3 = vsel %vm2159_vm2, %v2158_v57, 0 }
 0x1dc   :  { %v1895_v47 = vsel %vm1893_vm4, %v1894_v51, %v6343_v17  ;;  %v2012_v63 = vsub.s32 32, %v2011_v26  ;;  %v2016_v25 = vsub.s32 4294967266, %v2011_v26  ;;  %v2156_v2 = vor.u32 8388608, %v6365_v35 }
 0x1dd   :  { %v1896_v20 = vadd.s32 %v1895_v47, %v1891_v41  ;;  %v2162_v37 = vand.u32 31, %v2160_v3  ;;  %v2047_v9 = vand.u32 2139095040, %v6370_v10  ;;  %v6384_v12 = vadd.f32 %v4734_v5, %v5921_v33 }
 0x1de   :  { %v6389_v55 = vsel %vm6335_vm12, %v6016_v54, %v1713_v52  ;;  %v2014_v17 = vshrl.u32 %v1996_v49, %v2012_v63  ;;  %v2017_v32 = vadd.s32 127, %v2016_v25  ;;  %v2013_v57 = vshll.u32 %v6310_v7, %v2011_v26 }
 0x1df   :  { %7569 = vst [vmem:[#allocation21_spill] sm:$0xff] %v6384_v12  ;;  %v1897_v48 = vadd.s32 536870912, %v1896_v20  ;;  %v2161_v50 = vshrl.u32 %v2160_v3, 5  ;;  %v2163_v6 = vsub.s32 32, %v2162_v37  ;;  %v2165_v35 = vshll.u32 %v7554_v15, %v2162_v37 }
 0x1e0   :  { %v2018_v51 = vshll.u32 %v2017_v32, 23  ;;  %v2168_v33 = vshll.u32 %v7555_v24, %v2162_v37  ;;  %v2171_v5 = vshll.u32 %v7545_v58, %v2162_v37  ;;  %v2015_v47 = vor.u32 %v2014_v17, %v2013_v57 }
 0x1e1   :  { %v6393_v41 = vshrl.u32 %v1897_v48, 30  ;;  %v2166_v52 = vshrl.u32 %v7555_v24, %v2163_v6  ;;  %v2169_v49 = vshrl.u32 %v7545_v58, %v2163_v6  ;;  %v2172_v63 = vshrl.u32 %v7546_v18, %v2163_v6 }
 0x1e2   :  { %v2019_v25 = vor.u32 4788187, %v2018_v51  ;;  %v2174_v26 = vshll.u32 %v7546_v18, %v2162_v37  ;;  %v7571_v3 = vmov 920167782   ;;  %v2178_v61 = vshrl.u32 %v7548_v0, %v2163_v6 }
 0x1e3   :  { %7570 = vst [vmem:[#allocation22_spill] sm:$0xff] %v6393_v41  ;;  %v1899_v7 = vshll.u32 %v6393_v41, 30  ;;  %v2175_v32 = vshrl.u32 %v7571_v3, %v2163_v6  ;;  %v2167_v48 = vor.u32 %v2166_v52, %v2165_v35  ;;  %v2170_v19 = vor.u32 %v2169_v49, %v2168_v33 }
 0x1e4   :  { %v2173_v13 = vor.u32 %v2172_v63, %v2171_v5  ;;  %v2177_v11 = vshll.u32 %v7571_v3, %v2162_v37  ;;  %v6404_v14 = vpop.eup %5094  ;;  %v2020_v17 = vand.u32 2147483647, %v2019_v25  ;;  %v2022_v41 = vcvt.s32.f32 %v2015_v47 }
 0x1e5   :  { %v6406_v57 = vsub.s32 %v1896_v20, %v1899_v7  ;;  %v2176_v43 = vor.u32 %v2175_v32, %v2174_v26  ;;  %v6409_v51 = vpop.eup %5096  ;;  %v2164_v54 = vshrl.u32 %v7554_v15, %v2163_v6  ;;  %vm2180_vm8 = vcmp.lt.s32.totalorder %v2161_v50, 1 }
 0x1e6   :  { %v2048_v28 = vshrl.u32 %v2047_v9, 23  ;;  %v6412_v35 = vpop.eup %5098  ;;  %v2179_v37 = vor.u32 %v2178_v61, %v2177_v11  ;;  %vm2182_vm10 = vcmp.lt.s32.totalorder %v2161_v50, 3  ;;  %vm2183_vm2 = vcmp.lt.s32.totalorder %v2161_v50, 4 }
 0x1e7   :  { %7572 = vst [vmem:[#allocation23_spill] sm:$0xff] %v6412_v35  ;;  %v1902_v33 = vsub.s32 0, %v6406_v57  ;;  %v2023_v5 = vmul.f32 %v2022_v41, %v2020_v17  ;;  %v2185_v20 = vsel %vm2183_vm2, %v2173_v13, 2102212464  ;;  %v2188_v52 = vsel %vm2180_vm8, %v2167_v48, %v2170_v19 }
 0x1e8   :  { %v2189_v49 = vsel %vm2183_vm2, %v2176_v43, 920167782  ;;  %vm2181_vm3 = vcmp.lt.s32.totalorder %v2161_v50, 2  ;;  %v2192_v6 = vsel %vm2180_vm8, %v2170_v19, %v2173_v13  ;;  %v2193_v25 = vsel %vm2183_vm2, %v2179_v37, 1326507024 }
 0x1e9   :  { %v4260_v63 = vmin.u32 %v1902_v33, %v6406_v57  ;;  %v2190_v47 = vsel %vm2182_vm10, %v2173_v13, %v2189_v49  ;;  %v2196_v7 = vshll.u32 %v2156_v2, 8  ;;  %v4267_v26 = vadd.s32 4294967169, %v2048_v28 }
 0x1ea   :  { %v2191_v9 = vsel %vm2181_vm3, %v2188_v52, %v2190_v47  ;;  %v7573_v11 = vand.u32 2147483647, %v6060_v22  ;;  %v7574_v61 = vmov 0  ;;  %v2184_v32 = vsel %vm2180_vm8, %v2164_v54, %v2167_v48 }
 0x1eb   :  { %v1904_v41 = vclz %v4260_v63  ;;  %v2186_v17 = vsel %vm2182_vm10, %v2170_v19, %v2185_v20  ;;  %v2194_v33 = vsel %vm2182_vm10, %v2176_v43, %v2193_v25  ;;  %v2024_v49 = vxor.u32 2147483648, %v2023_v5 }
 0x1ec   :  { %vm6422_vm4 = vcmp.le.f32.partialorder %v7573_v11, 0.7853982  ;;  %v2195_v13 = vsel %vm2181_vm3, %v2192_v6, %v2194_v33  ;;  %v6430_v52 = vmul.u32.u64.low %v2196_v7, %v2191_v9  ;;  %v6431_v37 = vmul.u32.u64.high %v2196_v7, %v2191_v9, %v6430_v52 }
 0x1ed   :  { %v7575_v61 = vsel %vm6422_vm4, 4294967295, %v7574_v61  ;;  %v4261_v28 = vadd.s32 4294967294, %v1904_v41  ;;  %v6434_v2 = vmul.u32.u64.low %v2196_v7, %v2195_v13  ;;  %v6435_v47 = vmul.u32.u64.high %v2196_v7, %v2195_v13, %v6434_v2 }
 0x1ee   :  { %7576 = vst [vmem:[#allocation24_spill] sm:$0xff] %v7575_v61  ;;  %v7577_v11 = vand.u32 2147483647, %v6370_v10  ;;  %5100 = vsinq.f32 %v6350_v4  ;;  %vm7483_vm8 = vcmp.lt.s32.totalorder %v6060_v22, 0  ;;  %v2187_v43 = vsel %vm2181_vm3, %v2184_v32, %v2186_v17 }
 0x1ef   :  { %v2054_v54 = vadd.s32 1, %v4267_v26  ;;  %5102 = vcosq.f32 %v6389_v55  ;;  %v1892_v19 = vadd.s32 %v6342_v27, %v6354_v30  ;;  %vm4262_vm10 = vcmp.lt.s32.totalorder %v4261_v28, 0 }
 0x1f0   :  { %v2051_v63 = vand.u32 8388607, %v7577_v11  ;;  %v2359_v48 = vand.u32 2139095040, %v6384_v12  ;;  %v2025_v20 = vsel %vm7483_vm8, %v2024_v49, %v2023_v5  ;;  %v1907_v6 = vsel %vm4262_vm10, 0, %v4261_v28 }
 0x1f1   :  { %v2206_v9 = vadd.s32 1, %v6431_v37  ;;  %vm2055_vm2 = vcmp.gt.s32.totalorder %v2054_v54, 0  ;;  %v1908_v4 = vsub.s32 32, %v1907_v6  ;;  %v1912_v25 = vsub.s32 4294967266, %v1907_v6 }
 0x1f2   :  { %v2203_v50 = vmul.u32 %v2196_v7, %v2187_v43  ;;  %v2052_v41 = vor.u32 8388608, %v2051_v63  ;;  %v1909_v26 = vshll.u32 %v6406_v57, %v1907_v6  ;;  %vm2205_vm3 = vc.u32 %v6435_v47, %v6430_v52 }
 0x1f3   :  { %v2056_v27 = vsel %vm2055_vm2, %v2054_v54, 0  ;;  %v2360_v30 = vshrl.u32 %v2359_v48, 23  ;;  %v1910_v32 = vshrl.u32 %v1892_v19, %v1908_v4  ;;  %v1913_v17 = vadd.s32 127, %v1912_v25 }
 0x1f4   :  { %v2207_v33 = vsel %vm2205_vm3, %v2206_v9, %v6431_v37  ;;  %v6453_v5 = vshrl.u32 %v2056_v27, 5  ;;  %v6458_v49 = vsel %vm6422_vm4, %v6060_v22, %v2025_v20  ;;  %v2058_v13 = vand.u32 31, %v2056_v27 }
 0x1f5   :  { %v2208_v7 = vadd.s32 %v2207_v33, %v2203_v50  ;;  %v1911_v28 = vor.u32 %v1910_v32, %v1909_v26  ;;  %v1914_v2 = vshll.u32 %v1913_v17, 23  ;;  %v6461_v11 = vshll.u32 %v2052_v41, 8 }
 0x1f6   :  { %v4279_v63 = vadd.s32 4294967169, %v2360_v30  ;;  %v2059_v54 = vsub.s32 32, %v2058_v13  ;;  %v2061_v37 = vshll.u32 %v7554_v15, %v2058_v13  ;;  %vm2076_vm10 = vcmp.lt.s32.totalorder %v6453_v5, 1 }
 0x1f7   :  { %v2209_v43 = vadd.s32 536870912, %v2208_v7  ;;  %v1915_v19 = vor.u32 4788187, %v1914_v2  ;;  %v1918_v48 = vcvt.s32.f32 %v1911_v28  ;;  %v2064_v20 = vshll.u32 %v7555_v24, %v2058_v13 }
 0x1f8   :  { %v2067_v6 = vshll.u32 %v7545_v58, %v2058_v13  ;;  %vm7497_vm2 = vcmp.lt.s32.totalorder %v6111_v8, 0  ;;  %v2062_v4 = vshrl.u32 %v7555_v24, %v2059_v54  ;;  %v2065_v25 = vshrl.u32 %v7545_v58, %v2059_v54 }
 0x1f9   :  { %v6468_v9 = vshrl.u32 %v2209_v43, 30  ;;  %v2070_v50 = vshll.u32 %v7546_v18, %v2058_v13  ;;  %v1916_v41 = vand.u32 2147483647, %v1915_v19  ;;  %v2068_v26 = vshrl.u32 %v7546_v18, %v2059_v54 }
 0x1fa   :  { %v2071_v27 = vshrl.u32 %v7571_v3, %v2059_v54  ;;  %v2073_v30 = vshll.u32 %v7571_v3, %v2058_v13  ;;  %v2063_v17 = vor.u32 %v2062_v4, %v2061_v37  ;;  %v2066_v33 = vor.u32 %v2065_v25, %v2064_v20 }
 0x1fb   :  { %7578 = vst [vmem:[#allocation25_spill] sm:$0xff] %v6468_v9  ;;  %v2211_v32 = vshll.u32 %v6468_v9, 30  ;;  %v2074_v28 = vshrl.u32 %v7548_v0, %v2059_v54  ;;  %v6478_v2 = vpop.eup %5100  ;;  %v1919_v43 = vmul.f32 %v1918_v48, %v1916_v41  ;;  %v2060_v57 = vshrl.u32 %v7554_v15, %v2059_v54  ;;  %v1178_v48 = vpop.f32.mrf.mxu1 }
 0x1fc   :  { %7579 = vst [vmem:[#allocation26_spill] sm:$0xff] %v6478_v2  ;;  %v2069_v61 = vor.u32 %v2068_v26, %v2067_v6  ;;  %v2072_v22 = vor.u32 %v2071_v27, %v2070_v50  ;;  %v6481_v19 = vpop.eup %5102  ;;  %vm2078_vm3 = vcmp.lt.s32.totalorder %v6453_v5, 3  ;;  %vm2079_vm8 = vcmp.lt.s32.totalorder %v6453_v5, 4 }
 0x1fd   :  { %v6483_v35 = vsub.s32 %v2208_v7, %v2211_v32  ;;  %v2075_v53 = vor.u32 %v2074_v28, %v2073_v30  ;;  %v1920_v13 = vxor.u32 2147483648, %v1919_v43  ;;  %v2084_v20 = vsel %vm2076_vm10, %v2063_v17, %v2066_v33 }
 0x1fe   :  { %v2081_v37 = vsel %vm2079_vm8, %v2069_v61, 2102212464  ;;  %v2085_v4 = vsel %vm2079_vm8, %v2072_v22, 920167782  ;;  %vm2077_vm11 = vcmp.lt.s32.totalorder %v6453_v5, 2  ;;  %v2088_v6 = vsel %vm2076_vm10, %v2066_v33, %v2069_v61 }
 0x1ff   :  { %v2214_v54 = vsub.s32 0, %v6483_v35  ;;  %v2086_v7 = vsel %vm2078_vm3, %v2069_v61, %v2085_v4  ;;  %v2080_v25 = vsel %vm2076_vm10, %v2060_v57, %v2063_v17  ;;  %v2082_v50 = vsel %vm2078_vm3, %v2066_v33, %v2081_v37 }
 0x200   :  { %v2087_v41 = vsel %vm2077_vm11, %v2084_v20, %v2086_v7  ;;  %v2089_v26 = vsel %vm2079_vm8, %v2075_v53, 1326507024  ;;  %v7580_v32 = vand.u32 2147483647, %v6384_v12  ;;  %v6507_v4 = vadd.f32 %v1178_v48, %v5935_v62 }
 0x201   :  { %v4272_v27 = vmin.u32 %v2214_v54, %v6483_v35  ;;  %v2090_v30 = vsel %vm2078_vm3, %v2072_v22, %v2089_v26  ;;  %v1921_v61 = vsel %vm7497_vm2, %v1920_v13, %v1919_v43  ;;  %v2083_v37 = vsel %vm2077_vm11, %v2080_v25, %v2082_v50 }
 0x202   :  { %v6504_v28 = vand.u32 8388607, %v7580_v32  ;;  %v2091_v57 = vsel %vm2077_vm11, %v2088_v6, %v2090_v30  ;;  %v6512_v17 = vmul.u32.u64.low %v6461_v11, %v2087_v41  ;;  %v6513_v33 = vmul.u32.u64.high %v6461_v11, %v2087_v41, %v6512_v17  ;;  %v5034_v32 = vld [vmem:[#allocation2 + $0x38] sm:$0xff]  }
 0x203   :  { %v2216_v53 = vclz %v4272_v27  ;;  %v6517_v22 = vmul.u32.u64.low %v6461_v11, %v2091_v57  ;;  %v6518_v5 = vmul.u32.u64.high %v6461_v11, %v2091_v57, %v6517_v22  ;;  %v7581_v62 = vsel %vm6201_vm9, 0, %v6258_v34  ;;  %4767 = vmatprep.subr.bf16.mxu1 %v5034_v32 }
 0x204   :  { %v6524_v20 = vadd.s32 3, %v7581_v62  ;;  %5104 = vsinq.f32 %v6389_v55  ;;  %v7582_v43 = vand.u32 2147483647, %v6111_v8  ;;  %v7583_v13 = vmov 0  ;;  %4768 = vmatpush3.bf16.msra.mxu1 %v5034_v32 }
 0x205   :  { %v2366_v48 = vadd.s32 1, %v4279_v63  ;;  %5106 = vcosq.f32 %v6458_v49  ;;  %v2204_v29 = vadd.s32 %v6430_v52, %v6435_v47  ;;  %v4273_v34 = vadd.s32 4294967294, %v2216_v53 }
 0x206   :  { %vm6529_vm8 = vcmp.le.f32.partialorder %v7582_v43, 0.7853982  ;;  %v2099_v55 = vmul.u32 %v6461_v11, %v2083_v37  ;;  %v2102_v7 = vadd.s32 1, %v6513_v33  ;;  %vm2101_vm10 = vc.u32 %v6518_v5, %v6512_v17 }
 0x207   :  { %v7584_v13 = vsel %vm6529_vm8, 4294967295, %v7583_v13  ;;  %v6537_v54 = vsel %vm6529_vm8, %v6111_v8, %v1921_v61  ;;  %vm2367_vm9 = vcmp.gt.s32.totalorder %v2366_v48, 0  ;;  %vm4274_vm11 = vcmp.lt.s32.totalorder %v4273_v34, 0 }
 0x208   :  { %7585 = vst [vmem:[#allocation27_spill] sm:$0xff] %v7584_v13  ;;  %v2368_v63 = vsel %vm2367_vm9, %v2366_v48, 0  ;;  %v2219_v50 = vsel %vm4274_vm11, 0, %v4273_v34  ;;  %v2103_v41 = vsel %vm2101_vm10, %v2102_v7, %v6513_v33  ;;  %5108 = vsinq.f32 %v6458_v49 }
 0x209   :  { %v6548_v26 = vshrl.u32 %v2368_v63, 5  ;;  %v2370_v52 = vand.u32 31, %v2368_v63  ;;  %v2220_v47 = vsub.s32 32, %v2219_v50  ;;  %v2221_v11 = vshll.u32 %v6483_v35, %v2219_v50 }
 0x20a   :  { %v2224_v27 = vsub.s32 4294967266, %v2219_v50  ;;  %v2104_v30 = vadd.s32 %v2103_v41, %v2099_v55  ;;  %v5035_v41 = vld [vmem:[#allocation2 + $0x30] sm:$0xff]   ;;  %5110 = vcosq.f32 %v6537_v54 }
 0x20b   :  { %v2371_v61 = vsub.s32 32, %v2370_v52  ;;  %v2373_v57 = vshll.u32 %v7554_v15, %v2370_v52  ;;  %v2376_v53 = vshll.u32 %v7555_v24, %v2370_v52  ;;  %v2379_v37 = vshll.u32 %v7545_v58, %v2370_v52  ;;  %4769 = vmatprep.subr.bf16.mxu1 %v5035_v41 }
 0x20c   :  { %v2222_v22 = vshrl.u32 %v2204_v29, %v2220_v47  ;;  %v2225_v62 = vadd.s32 127, %v2224_v27  ;;  %v2105_v43 = vadd.s32 536870912, %v2104_v30  ;;  %v2382_v33 = vshll.u32 %v7546_v18, %v2370_v52  ;;  %4770 = vmatpush3.bf16.msra.mxu1 %v5035_v41 }
 0x20d   :  { %v2372_v48 = vshrl.u32 %v7554_v15, %v2371_v61  ;;  %v2374_v35 = vshrl.u32 %v7555_v24, %v2371_v61  ;;  %v2377_v34 = vshrl.u32 %v7545_v58, %v2371_v61  ;;  %v2380_v55 = vshrl.u32 %v7546_v18, %v2371_v61 }
 0x20e   :  { %v2223_v7 = vor.u32 %v2222_v22, %v2221_v11  ;;  %v2226_v63 = vshll.u32 %v2225_v62, 23  ;;  %v6559_v50 = vshrl.u32 %v2105_v43, 30  ;;  %v2383_v29 = vshrl.u32 %v7571_v3, %v2371_v61 }
 0x20f   :  { %v2375_v47 = vor.u32 %v2374_v35, %v2373_v57  ;;  %v2378_v27 = vor.u32 %v2377_v34, %v2376_v53  ;;  %v2381_v25 = vor.u32 %v2380_v55, %v2379_v37  ;;  %v2385_v6 = vshll.u32 %v7571_v3, %v2370_v52  ;;  %v5036_v37 = vld [vmem:[#allocation2 + $0x28] sm:$0xff]  }
 0x210   :  { %7586 = vst [vmem:[#allocation28_spill] sm:$0xff] %v6559_v50  ;;  %v2227_v9 = vor.u32 4788187, %v2226_v63  ;;  %v2230_v13 = vcvt.s32.f32 %v2223_v7  ;;  %v2107_v8 = vshll.u32 %v6559_v50, 30  ;;  %v2384_v2 = vor.u32 %v2383_v29, %v2382_v33  ;;  %4771 = vmatprep.subr.bf16.mxu1 %v5036_v37 }
 0x211   :  { %v2386_v32 = vshrl.u32 %v7548_v0, %v2371_v61  ;;  %vm2388_vm3 = vcmp.lt.s32.totalorder %v6548_v26, 1  ;;  %vm2389_vm9 = vcmp.lt.s32.totalorder %v6548_v26, 2  ;;  %vm2390_vm11 = vcmp.lt.s32.totalorder %v6548_v26, 3  ;;  %v6568_v11 = vpop.eup %5104  ;;  %4772 = vmatpush3.bf16.msra.mxu1 %v5036_v37 }
 0x212   :  { %v2228_v57 = vand.u32 2147483647, %v2227_v9  ;;  %v6570_v53 = vsub.s32 %v2104_v30, %v2107_v8  ;;  %vm2391_vm10 = vcmp.lt.s32.totalorder %v6548_v26, 4  ;;  %v2392_v52 = vsel %vm2388_vm3, %v2372_v48, %v2375_v47  ;;  %v6575_v22 = vpop.eup %5106 }
 0x213   :  { %7587 = vst [vmem:[#allocation29_spill] sm:$0xff] %v6575_v22  ;;  %v2387_v61 = vor.u32 %v2386_v32, %v2385_v6  ;;  %v2393_v62 = vsel %vm2391_vm10, %v2381_v25, 2102212464  ;;  %v2396_v43 = vsel %vm2388_vm3, %v2375_v47, %v2378_v27  ;;  %v2397_v33 = vsel %vm2391_vm10, %v2384_v2, 920167782  ;;  %v4737_v47 = vpop.f32.mrf.mxu1  ;;  %v5037_v32 = vld [vmem:[#allocation2 + $0x20] sm:$0xff]  }
 0x214   :  { %v2231_v35 = vmul.f32 %v2230_v13, %v2228_v57  ;;  %v2110_v34 = vsub.s32 0, %v6570_v53  ;;  %v2394_v8 = vsel %vm2390_vm11, %v2378_v27, %v2393_v62  ;;  %v2398_v9 = vsel %vm2390_vm11, %v2381_v25, %v2397_v33  ;;  %4773 = vmatprep.subr.bf16.mxu1 %v5037_v32 }
 0x215   :  { %v2399_v30 = vsel %vm2389_vm9, %v2396_v43, %v2398_v9  ;;  %v2400_v6 = vsel %vm2388_vm3, %v2378_v27, %v2381_v25  ;;  %v2401_v48 = vsel %vm2391_vm10, %v2387_v61, 1326507024  ;;  %v7588_v55 = vor.u32 8388608, %v6504_v28  ;;  %4774 = vmatpush3.bf16.msra.mxu1 %v5037_v32  ;;  %v5038_v9 = vld [vmem:[#allocation2 + $0x18] sm:$0xff]  }
 0x216   :  { %v4268_v13 = vmin.u32 %v2110_v34, %v6570_v53  ;;  %v2395_v63 = vsel %vm2389_vm9, %v2392_v52, %v2394_v8  ;;  %v2402_v29 = vsel %vm2390_vm11, %v2384_v2, %v2401_v48  ;;  %v7493_v41 = vand.u32 2147483647, %v6507_v4  ;;  %v1190_v48 = vpop.f32.mrf.mxu1  ;;  %4775 = vmatprep.subr.bf16.mxu1 %v5038_v9 }
 0x217   :  { %v2404_v7 = vshll.u32 %v7588_v55, 8  ;;  %v2403_v25 = vsel %vm2389_vm9, %v2400_v6, %v2402_v29  ;;  %v7589_v28 = vand.u32 2139095040, %v6507_v4  ;;  %v2232_v61 = vxor.u32 2147483648, %v2231_v35  ;;  %v5039_v29 = vld [vmem:[#allocation2 + $0x10] sm:$0xff]  }
 0x218   :  { %v2112_v62 = vclz %v4268_v13  ;;  %v6608_v2 = vand.u32 3, %v6098_v39  ;;  %v6612_v33 = vadd.f32 %v4737_v47, %v5938_v23  ;;  %v6615_v34 = vand.u32 3, %v6524_v20 }
 0x219   :  { %v6598_v27 = vmul.u32.u64.low %v2404_v7, %v2399_v30  ;;  %v6599_v57 = vmul.u32.u64.high %v2404_v7, %v2399_v30, %v6598_v27  ;;  %v2256_v37 = vshrl.u32 %v7589_v28, 23  ;;  %vm7491_vm3 = vcmp.lt.s32.totalorder %v6261_v38, 0  ;;  %4776 = vmatpush3.bf16.msra.mxu1 %v5038_v9 }
 0x21a   :  { %v6604_v52 = vmul.u32.u64.low %v2404_v7, %v2403_v25  ;;  %v6605_v43 = vmul.u32.u64.high %v2404_v7, %v2403_v25, %v6604_v52  ;;  %v4269_v8 = vadd.s32 4294967294, %v2112_v62  ;;  %v2100_v39 = vadd.s32 %v6512_v17, %v6518_v5  ;;  %4777 = vmatprep.subr.bf16.mxu1 %v5039_v29 }
 0x21b   :  { %v4275_v26 = vadd.s32 4294967169, %v2256_v37  ;;  %v2411_v30 = vmul.u32 %v2404_v7, %v2395_v63  ;;  %v2414_v49 = vadd.s32 1, %v6599_v57  ;;  %v2233_v23 = vsel %vm7491_vm3, %v2232_v61, %v2231_v35 }
 0x21c   :  { %vm4270_vm9 = vcmp.lt.s32.totalorder %v4269_v8, 0  ;;  %vm2413_vm11 = vc.u32 %v6605_v43, %v6598_v27  ;;  %v6628_v20 = vand.u32 8388607, %v7493_v41  ;;  %v2567_v5 = vand.u32 2139095040, %v6612_v33  ;;  %v5041_v41 = vld [vmem:[#allocation2] sm:$0xff]  }
 0x21d   :  { %v2262_v6 = vadd.s32 1, %v4275_v26  ;;  %v2115_v55 = vsel %vm4270_vm9, 0, %v4269_v8  ;;  %v2415_v17 = vsel %vm2413_vm11, %v2414_v49, %v6599_v57  ;;  %v7492_v63 = vand.u32 2147483647, %v6612_v33  ;;  %4778 = vmatpush3.bf16.msra.mxu1 %v5039_v29 }
 0x21e   :  { %v2116_v7 = vsub.s32 32, %v2115_v55  ;;  %v2120_v13 = vsub.s32 4294967266, %v2115_v55  ;;  %v2416_v35 = vadd.s32 %v2415_v17, %v2411_v30  ;;  %5112 = vsinq.f32 %v6537_v54 }
 0x21f   :  { %vm2263_vm10 = vcmp.gt.s32.totalorder %v2262_v6, 0  ;;  %v7590_v47 = vand.u32 2147483647, %v6261_v38  ;;  %v7591_v32 = vmov 0  ;;  %v6641_v57 = vadd.f32 %v1190_v48, %v5945_v1 }
 0x220   :  { %v2264_v25 = vsel %vm2263_vm10, %v2262_v6, 0  ;;  %v2117_v28 = vshll.u32 %v6570_v53, %v2115_v55  ;;  %v2118_v37 = vshrl.u32 %v2100_v39, %v2116_v7  ;;  %v2121_v61 = vadd.s32 127, %v2120_v13  ;;  %v5040_v39 = vld [vmem:[#allocation2 + $0x8] sm:$0xff]   ;;  %v2900_v55 = vld [vmem:[%s7437_s3] sm:$0x1f] }
 0x221   :  { %vm6636_vm3 = vcmp.le.f32.partialorder %v7590_v47, 0.7853982  ;;  %v2417_v62 = vadd.s32 536870912, %v2416_v35  ;;  %v2266_v26 = vand.u32 31, %v2264_v25  ;;  %v2568_v8 = vshrl.u32 %v2567_v5, 23  ;;  %4741 = vmatprep.subr.msk.mxu0 %vm117_vm0, %v2900_v55  ;;  %4779 = vmatprep.subr.bf16.mxu1 %v5040_v39 }
 0x222   :  { %v7592_v32 = vsel %vm6636_vm3, 4294967295, %v7591_v32  ;;  %v6647_v54 = vsel %vm6636_vm3, %v6261_v38, %v2233_v23  ;;  %v2119_v9 = vor.u32 %v2118_v37, %v2117_v28  ;;  %v2122_v30 = vshll.u32 %v2121_v61, 23  ;;  %4742 = vmatpush3.msk.msra.mxu0 %vm117_vm0, %v2900_v55  ;;  %v6671_v37 = vpop.eup %5108  ;;  %4780 = vmatpush3.bf16.msra.mxu1 %v5040_v39 }
 0x223   :  { %7593 = vst [vmem:[#allocation30_spill] sm:$0xff] %v7592_v32  ;;  %v6650_v1 = vshrl.u32 %v2417_v62, 30  ;;  %v6654_v53 = vand.u32 8388607, %v7492_v63  ;;  %v6656_v49 = vshrl.u32 %v2264_v25, 5  ;;  %v2267_v6 = vsub.s32 32, %v2266_v26  ;;  %v6681_v52 = vpop.eup %5110  ;;  %4781 = vmatprep.subr.bf16.mxu1 %v5041_v41 }
 0x224   :  { %v2269_v23 = vshll.u32 %v7554_v15, %v2266_v26  ;;  %v2272_v48 = vshll.u32 %v7555_v24, %v2266_v26  ;;  %v2123_v17 = vor.u32 4788187, %v2122_v30  ;;  %v2126_v5 = vcvt.s32.f32 %v2119_v9  ;;  %7595 = vst [vmem:[#allocation32_spill] sm:$0xff] %v6671_v37  ;;  %v5146_v63 = vld [vmem:[%s7434_s0 + $0x8] sm:$0xff] }
 0x225   :  { %7594 = vst [vmem:[#allocation31_spill] sm:$0xff] %v6650_v1  ;;  %v2419_v7 = vshll.u32 %v6650_v1, 30  ;;  %v2275_v13 = vshll.u32 %v7545_v58, %v2266_v26  ;;  %v2270_v29 = vshrl.u32 %v7555_v24, %v2267_v6  ;;  %v2273_v47 = vshrl.u32 %v7545_v58, %v2267_v6  ;;  %4744 = vmatmul.mubr.msk.f32.vlgmr.msra.gmra.mxu0 %vm68_vm1, %v5146_v63 }
 0x226   :  { %v2276_v25 = vshrl.u32 %v7546_v18, %v2267_v6  ;;  %v2278_v28 = vshll.u32 %v7546_v18, %v2266_v26  ;;  %v2124_v61 = vand.u32 2147483647, %v2123_v17  ;;  %v2279_v9 = vshrl.u32 %v7571_v3, %v2267_v6  ;;  %v5147_v17 = vld [vmem:[%s7434_s0 + $0x10] sm:$0xff]  ;;  %4782 = vmatpush3.bf16.msra.mxu1 %v5041_v41 }
 0x227   :  { %v6673_v62 = vsub.s32 %v2416_v35, %v2419_v7  ;;  %v2281_v30 = vshll.u32 %v7571_v3, %v2266_v26  ;;  %v2271_v55 = vor.u32 %v2270_v29, %v2269_v23  ;;  %v2274_v1 = vor.u32 %v2273_v47, %v2272_v48  ;;  %4746 = vmatprep.mubr.msk.f32.mxu0 %vm68_vm1, %v5147_v17 }
 0x228   :  { %v2277_v32 = vor.u32 %v2276_v25, %v2275_v13  ;;  %v2282_v35 = vshrl.u32 %v7548_v0, %v2267_v6  ;;  %v2280_v39 = vor.u32 %v2279_v9, %v2278_v28  ;;  %vm2284_vm0 = vcmp.lt.s32.totalorder %v6656_v49, 1  ;;  %v5149_v28 = vld [vmem:[%s7434_s0 + $0x20] sm:$0xff] }
 0x229   :  { %v2422_v26 = vsub.s32 0, %v6673_v62  ;;  %v4287_v63 = vadd.s32 4294967169, %v2568_v8  ;;  %vm7503_vm9 = vcmp.lt.s32.totalorder %v6370_v10, 0  ;;  %v2127_v23 = vmul.f32 %v2126_v5, %v2124_v61  ;;  %v5148_v8 = vld [vmem:[%s7434_s0 + $0x18] sm:$0xff] }
 0x22a   :  { %v2268_v48 = vshrl.u32 %v7554_v15, %v2267_v6  ;;  %v2283_v7 = vor.u32 %v2282_v35, %v2281_v30  ;;  %vm2287_vm11 = vcmp.lt.s32.totalorder %v6656_v49, 4  ;;  %vm2285_vm10 = vcmp.lt.s32.totalorder %v6656_v49, 2  ;;  %4747 = vmatmul.mubr.msk.f32.gmra.mxu0 %vm68_vm1, %v5148_v8 }
 0x22b   :  { %v4280_v13 = vmin.u32 %v2422_v26, %v6673_v62  ;;  %v2289_v29 = vsel %vm2287_vm11, %v2277_v32, 2102212464  ;;  %v2292_v47 = vsel %vm2284_vm0, %v2271_v55, %v2274_v1  ;;  %vm2286_vm2 = vcmp.lt.s32.totalorder %v6656_v49, 3  ;;  %4749 = vmatprep.mubr.msk.f32.mxu0 %vm68_vm1, %v5149_v28  ;;  %v6708_v41 = vpop.eup %5112 }
 0x22c   :  { %v2293_v6 = vsel %vm2287_vm11, %v2280_v39, 920167782  ;;  %v2296_v5 = vsel %vm2284_vm0, %v2274_v1, %v2277_v32  ;;  %v2297_v25 = vsel %vm2287_vm11, %v2283_v7, 1326507024  ;;  %v2288_v9 = vsel %vm2284_vm0, %v2268_v48, %v2271_v55  ;;  %v5151_v48 = vld [vmem:[%s7434_s0 + $0x30] sm:$0xff] }
 0x22d   :  { %v2424_v61 = vclz %v4280_v13  ;;  %v2290_v30 = vsel %vm2286_vm2, %v2274_v1, %v2289_v29  ;;  %v2294_v35 = vsel %vm2286_vm2, %v2277_v32, %v2293_v6  ;;  %5114 = vcosq.f32 %v6647_v54  ;;  %v5150_v1 = vld [vmem:[%s7434_s0 + $0x28] sm:$0xff] }
 0x22e   :  { %v2295_v17 = vsel %vm2285_vm10, %v2292_v47, %v2294_v35  ;;  %v2298_v26 = vsel %vm2286_vm2, %v2280_v39, %v2297_v25  ;;  %v7596_v7 = vor.u32 8388608, %v6628_v20  ;;  %v2128_v38 = vxor.u32 2147483648, %v2127_v23  ;;  %4750 = vmatmul.mubr.msk.f32.gmra.mxu0 %vm68_vm1, %v5150_v1 }
 0x22f   :  { %v4281_v50 = vadd.s32 4294967294, %v2424_v61  ;;  %v2299_v28 = vsel %vm2285_vm10, %v2296_v5, %v2298_v26  ;;  %v2574_v13 = vadd.s32 1, %v4287_v63  ;;  %v2291_v32 = vsel %vm2285_vm10, %v2288_v9, %v2290_v30  ;;  %4752 = vmatprep.mubr.msk.f32.mxu0 %vm68_vm1, %v5151_v48  ;;  %v5152_v30 = vld [vmem:[%s7434_s0 + $0x38] sm:$0xff] }
 0x230   :  { %v2300_v8 = vshll.u32 %v7596_v7, 8  ;;  %v2572_v20 = vor.u32 8388608, %v6654_v53  ;;  %v2412_v49 = vadd.s32 %v6598_v27, %v6605_v43  ;;  %v6742_v53 = vsel %vm7503_vm9, %v2128_v38, %v2127_v23  ;;  %v5153_v38 = vld [vmem:[%s7434_s0 + $0x40] sm:$0xff] }
 0x231   :  { %vm4282_vm2 = vcmp.lt.s32.totalorder %v4281_v50, 0  ;;  %vm2575_vm0 = vcmp.gt.s32.totalorder %v2574_v13, 0  ;;  %v2463_v43 = vand.u32 2139095040, %v6641_v57  ;;  %5116 = vsinq.f32 %v6647_v54 }
 0x232   :  { %v6725_v55 = vmul.u32.u64.low %v2300_v8, %v2299_v28  ;;  %v6726_v39 = vmul.u32.u64.high %v2300_v8, %v2299_v28, %v6725_v55  ;;  %v6733_v63 = vmul.u32.u64.low %v2300_v8, %v2295_v17  ;;  %v6734_v29 = vmul.u32.u64.high %v2300_v8, %v2295_v17, %v6733_v63  ;;  %4753 = vmatmul.mubr.msk.f32.gmra.mxu0 %vm68_vm1, %v5152_v30 }
 0x233   :  { %v2427_v47 = vsel %vm4282_vm2, 0, %v4281_v50  ;;  %v2576_v6 = vsel %vm2575_vm0, %v2574_v13, 0  ;;  %v2307_v9 = vmul.u32 %v2300_v8, %v2291_v32  ;;  %v6750_v27 = vshll.u32 %v2572_v20, 8  ;;  %4755 = vmatprep.mubr.msk.f32.mxu0 %vm68_vm1, %v5153_v38  ;;  %v5154_v20 = vld [vmem:[%s7434_s0 + $0x48] sm:$0xff] }
 0x234   :  { %v2428_v25 = vsub.s32 32, %v2427_v47  ;;  %v2432_v61 = vsub.s32 4294967266, %v2427_v47  ;;  %vm2309_vm11 = vc.u32 %v6726_v39, %v6733_v63  ;;  %v2578_v50 = vand.u32 31, %v2576_v6 }
 0x235   :  { %v2429_v23 = vshll.u32 %v6673_v62, %v2427_v47  ;;  %v2310_v26 = vadd.s32 1, %v6734_v29  ;;  %v6759_v7 = vshrl.u32 %v2576_v6, 5  ;;  %vm7516_vm2 = vcmp.lt.s32.totalorder %v6384_v12, 0 }
 0x236   :  { %v2430_v35 = vshrl.u32 %v2412_v49, %v2428_v25  ;;  %v2433_v17 = vadd.s32 127, %v2432_v61  ;;  %v2579_v8 = vsub.s32 32, %v2578_v50  ;;  %v2581_v28 = vshll.u32 %v7554_v15, %v2578_v50  ;;  %4756 = vmatmul.mubr.msk.f32.gmra.mxu0 %vm68_vm1, %v5154_v20  ;;  %v5155_v25 = vld [vmem:[%s7434_s0 + $0x50] sm:$0xff] }
 0x237   :  { %v2584_v13 = vshll.u32 %v7555_v24, %v2578_v50  ;;  %v2311_v55 = vsel %vm2309_vm11, %v2310_v26, %v6734_v29  ;;  %v2587_v62 = vshll.u32 %v7545_v58, %v2578_v50  ;;  %v2590_v6 = vshll.u32 %v7546_v18, %v2578_v50  ;;  %4758 = vmatprep.mubr.msk.f32.mxu0 %vm68_vm1, %v5155_v25 }
 0x238   :  { %v2431_v1 = vor.u32 %v2430_v35, %v2429_v23  ;;  %v2434_v32 = vshll.u32 %v2433_v17, 23  ;;  %v2312_v48 = vadd.s32 %v2311_v55, %v2307_v9  ;;  %v2582_v49 = vshrl.u32 %v7555_v24, %v2579_v8 }
 0x239   :  { %v2585_v47 = vshrl.u32 %v7545_v58, %v2579_v8  ;;  %v7597_v29 = vand.u32 2147483647, %v6370_v10  ;;  %v7598_v61 = vmov 0  ;;  %v2588_v38 = vshrl.u32 %v7546_v18, %v2579_v8 }
 0x23a   :  { %v2435_v30 = vor.u32 4788187, %v2434_v32  ;;  %v2438_v9 = vcvt.s32.f32 %v2431_v1  ;;  %v2591_v23 = vshrl.u32 %v7571_v3, %v2579_v8  ;;  %v2313_v35 = vadd.s32 536870912, %v2312_v48  ;;  %v6788_v20 = vpop.eup %5114  ;;  %v5156_v1 = vld [vmem:[%s7434_s0 + $0x58] sm:$0xff] }
 0x23b   :  { %vm6781_vm10 = vcmp.le.f32.partialorder %v7597_v29, 0.7853982  ;;  %v2583_v17 = vor.u32 %v2582_v49, %v2581_v28  ;;  %v2586_v26 = vor.u32 %v2585_v47, %v2584_v13  ;;  %v2593_v55 = vshll.u32 %v7571_v3, %v2578_v50  ;;  %7601 = vst [vmem:[#allocation34_spill] sm:$0xff] %v6788_v20  ;;  %4759 = vmatmul.mubr.msk.f32.gmra.mxu0 %vm68_vm1, %v5156_v1  ;;  %v5157_v13 = vld [vmem:[%s7434_s0 + $0x60] sm:$0xff] }
 0x23c   :  { %v7599_v61 = vsel %vm6781_vm10, 4294967295, %v7598_v61  ;;  %v2436_v25 = vand.u32 2147483647, %v2435_v30  ;;  %v2589_v29 = vor.u32 %v2588_v38, %v2587_v62  ;;  %v2592_v5 = vor.u32 %v2591_v23, %v2590_v6  ;;  %4761 = vmatprep.mubr.msk.f32.mxu0 %vm68_vm1, %v5157_v13 }
 0x23d   :  { %7600 = vst [vmem:[#allocation33_spill] sm:$0xff] %v7599_v61  ;;  %v2594_v22 = vshrl.u32 %v7548_v0, %v2579_v8  ;;  %v6796_v32 = vshrl.u32 %v2313_v35, 30  ;;  %v2580_v28 = vshrl.u32 %v7554_v15, %v2579_v8  ;;  %vm2596_vm0 = vcmp.lt.s32.totalorder %v6759_v7, 1  ;;  %v5158_v35 = vld [vmem:[%s7434_s0 + $0x68] sm:$0xff] }
 0x23e   :  { %v2464_v50 = vshrl.u32 %v2463_v43, 23  ;;  %v2439_v62 = vmul.f32 %v2438_v9, %v2436_v25  ;;  %vm2598_vm11 = vcmp.lt.s32.totalorder %v6759_v7, 3  ;;  %vm2599_vm9 = vcmp.lt.s32.totalorder %v6759_v7, 4  ;;  %v6903_v20 = vpop.eup %5116 }
 0x23f   :  { %7602 = vst [vmem:[#allocation35_spill] sm:$0xff] %v6796_v32  ;;  %v2595_v49 = vor.u32 %v2594_v22, %v2593_v55  ;;  %v7603_v47 = vand.u32 2147483647, %v6384_v12  ;;  %v7604_v6 = vmov 0  ;;  %v2315_v43 = vshll.u32 %v6796_v32, 30  ;;  %4762 = vmatmul.mubr.msk.f32.gmra.mxu0 %vm68_vm1, %v5158_v35 }
 0x240   :  { %v2601_v8 = vsel %vm2599_vm9, %v2589_v29, 2102212464  ;;  %v2604_v30 = vsel %vm2596_vm0, %v2583_v17, %v2586_v26  ;;  %v2605_v38 = vsel %vm2599_vm9, %v2592_v5, 920167782  ;;  %vm2597_vm13 = vcmp.lt.s32.totalorder %v6759_v7, 2 }
 0x241   :  { %vm6808_vm5 = vcmp.le.f32.partialorder %v7603_v47, 0.7853982  ;;  %v2600_v22 = vsel %vm2596_vm0, %v2580_v28, %v2583_v17  ;;  %v2606_v9 = vsel %vm2598_vm11, %v2589_v29, %v2605_v38  ;;  %v2608_v23 = vsel %vm2596_vm0, %v2586_v26, %v2589_v29  ;;  %v5159_v17 = vld [vmem:[%s7434_s0 + $0x70] sm:$0xff] }
 0x242   :  { %v7605_v6 = vsel %vm6808_vm5, 4294967295, %v7604_v6  ;;  %v2440_v55 = vxor.u32 2147483648, %v2439_v62  ;;  %v6826_v25 = vsub.s32 %v2312_v48, %v2315_v43  ;;  %v2607_v1 = vsel %vm2597_vm13, %v2604_v30, %v2606_v9  ;;  %4764 = vmatprep.mubr.msk.f32.mxu0 %vm68_vm1, %v5159_v17  ;;  %v4740_v43 = vpop.f32.mrf.mxu1 }
 0x243   :  { %7606 = vst [vmem:[#allocation36_spill] sm:$0xff] %v7605_v6  ;;  %v2609_v13 = vsel %vm2599_vm9, %v2595_v49, 1326507024  ;;  %v2602_v29 = vsel %vm2598_vm11, %v2586_v26, %v2601_v8  ;;  %v6839_v47 = vmul.u32.u64.low %v6750_v27, %v2607_v1  ;;  %v6840_v48 = vmul.u32.u64.high %v6750_v27, %v2607_v1, %v6839_v47  ;;  %v5160_v1 = vld [vmem:[%s7434_s0 + $0x78] sm:$0xff] }
 0x244   :  { %v2610_v28 = vsel %vm2598_vm11, %v2592_v5, %v2609_v13  ;;  %v2132_v49 = vsel %vm6781_vm10, %v6370_v10, %v6742_v53  ;;  %v2318_v30 = vsub.s32 0, %v6826_v25  ;;  %v4283_v26 = vadd.s32 4294967169, %v2464_v50  ;;  %4765 = vmatmul.mubr.msk.f32.gmra.mxu0 %vm68_vm1, %v5160_v1 }
 0x245   :  { %v2611_v38 = vsel %vm2597_vm13, %v2608_v23, %v2610_v28  ;;  %v7607_v9 = vand.u32 2147483647, %v6641_v57  ;;  %v2441_v53 = vsel %vm7516_vm2, %v2440_v55, %v2439_v62  ;;  %v2603_v54 = vsel %vm2597_vm13, %v2600_v22, %v2602_v29 }
 0x246   :  { %v6852_v5 = vmul.u32.u64.low %v6750_v27, %v2611_v38  ;;  %v6853_v8 = vmul.u32.u64.high %v6750_v27, %v2611_v38, %v6852_v5  ;;  %v4276_v50 = vmin.u32 %v2318_v30, %v6826_v25  ;;  %v2470_v23 = vadd.s32 1, %v4283_v26  ;;  %v1202_v38 = vpop.f32.mrf.mxu1 }
 0x247   :  { %v2467_v35 = vand.u32 8388607, %v7607_v9  ;;  %5118 = vcosq.f32 %v2132_v49  ;;  %v2622_v13 = vadd.s32 1, %v6840_v48  ;;  %v6868_v28 = vadd.f32 %v4740_v43, %v5947_v16 }
 0x248   :  { %5120 = vsinq.f32 %v2132_v49  ;;  %v2308_v5 = vadd.s32 %v6733_v63, %v6726_v39  ;;  %v2320_v9 = vclz %v4276_v50  ;;  %vm2471_vm1 = vcmp.gt.s32.totalorder %v2470_v23, 0 }
 0x249   :  { %v2468_v17 = vor.u32 8388608, %v2467_v35  ;;  %v6875_v7 = vsel %vm6808_vm5, %v6384_v12, %v2441_v53  ;;  %v2619_v62 = vmul.u32 %v6750_v27, %v2603_v54  ;;  %vm2621_vm13 = vc.u32 %v6853_v8, %v6839_v47  ;;  %v5042_v12 = vld [vmem:[#allocation2 + $0x78] sm:$0xff]  }
 0x24a   :  { %v2472_v22 = vsel %vm2471_vm1, %v2470_v23, 0  ;;  %v4277_v16 = vadd.s32 4294967294, %v2320_v9  ;;  %v2623_v55 = vsel %vm2621_vm13, %v2622_v13, %v6840_v48  ;;  %v6882_v43 = vadd.f32 %v1202_v38, %v5991_v46  ;;  %4799 = vmatprep.subr.bf16.mxu0 %v5042_v12 }
 0x24b   :  { %v2474_v29 = vand.u32 31, %v2472_v22  ;;  %v2624_v39 = vadd.s32 %v2623_v55, %v2619_v62  ;;  %v6884_v63 = vshrl.u32 %v2472_v22, 5  ;;  %v6886_v49 = vshll.u32 %v2468_v17, 8  ;;  %4800 = vmatpush3.bf16.msra.mxu0 %v5042_v12 }
 0x24c   :  { %vm4278_vm9 = vcmp.lt.s32.totalorder %v4277_v16, 0  ;;  %vm7525_vm0 = vcmp.lt.s32.totalorder %v6507_v4, 0  ;;  %5122 = vcosq.f32 %v6875_v7 }
 0x24d   :  { %v2475_v27 = vsub.s32 32, %v2474_v29  ;;  %v2477_v26 = vshll.u32 %v7554_v15, %v2474_v29  ;;  %v2323_v1 = vsel %vm4278_vm9, 0, %v4277_v16  ;;  %v2625_v53 = vadd.s32 536870912, %v2624_v39 }
 0x24e   :  { %v2480_v48 = vshll.u32 %v7555_v24, %v2474_v29  ;;  %v2483_v46 = vshll.u32 %v7545_v58, %v2474_v29  ;;  %v2324_v50 = vsub.s32 32, %v2323_v1  ;;  %v2325_v54 = vshll.u32 %v6826_v25, %v2323_v1 }
 0x24f   :  { %v2328_v23 = vsub.s32 4294967266, %v2323_v1  ;;  %v2486_v13 = vshll.u32 %v7546_v18, %v2474_v29  ;;  %v6895_v17 = vshrl.u32 %v2625_v53, 30  ;;  %v2478_v38 = vshrl.u32 %v7555_v24, %v2475_v27  ;;  %v5043_v53 = vld [vmem:[#allocation2 + $0x70] sm:$0xff]  }
 0x250   :  { %v2481_v9 = vshrl.u32 %v7545_v58, %v2475_v27  ;;  %v2484_v62 = vshrl.u32 %v7546_v18, %v2475_v27  ;;  %v2326_v22 = vshrl.u32 %v2308_v5, %v2324_v50  ;;  %v2487_v55 = vshrl.u32 %v7571_v3, %v2475_v27  ;;  %4801 = vmatprep.subr.bf16.mxu0 %v5043_v53 }
 0x251   :  { %7608 = vst [vmem:[#allocation37_spill] sm:$0xff] %v6895_v17  ;;  %v2329_v16 = vadd.s32 127, %v2328_v23  ;;  %v2489_v35 = vshll.u32 %v7571_v3, %v2474_v29  ;;  %v2627_v30 = vshll.u32 %v6895_v17, 30  ;;  %v2479_v25 = vor.u32 %v2478_v38, %v2477_v26  ;;  %4802 = vmatpush3.bf16.msra.mxu0 %v5043_v53 }
 0x252   :  { %v2482_v1 = vor.u32 %v2481_v9, %v2480_v48  ;;  %v2485_v6 = vor.u32 %v2484_v62, %v2483_v46  ;;  %v2327_v32 = vor.u32 %v2326_v22, %v2325_v54  ;;  %v2488_v10 = vor.u32 %v2487_v55, %v2486_v13 }
 0x253   :  { %v2330_v61 = vshll.u32 %v2329_v16, 23  ;;  %v2490_v37 = vshrl.u32 %v7548_v0, %v2475_v27  ;;  %v6907_v5 = vsub.s32 %v2624_v39, %v2627_v30  ;;  %v2476_v29 = vshrl.u32 %v7554_v15, %v2475_v27 }
 0x254   :  { %vm2492_vm11 = vcmp.lt.s32.totalorder %v6884_v63, 1  ;;  %v7609_v26 = vand.u32 2147483647, %v6868_v28  ;;  %v6913_v46 = vpop.eup %5118  ;;  %vm2493_vm1 = vcmp.lt.s32.totalorder %v6884_v63, 2  ;;  %vm2495_vm13 = vcmp.lt.s32.totalorder %v6884_v63, 4 }
 0x255   :  { %v2331_v50 = vor.u32 4788187, %v2330_v61  ;;  %v2491_v54 = vor.u32 %v2490_v37, %v2489_v35  ;;  %v6917_v23 = vpop.eup %5120  ;;  %v2630_v39 = vsub.s32 0, %v6907_v5  ;;  %vm2494_vm9 = vcmp.lt.s32.totalorder %v6884_v63, 3  ;;  %v5044_v61 = vld [vmem:[#allocation2 + $0x68] sm:$0xff]  }
 0x256   :  { %v2779_v48 = vand.u32 8388607, %v7609_v26  ;;  %v2497_v30 = vsel %vm2495_vm13, %v2485_v6, 2102212464  ;;  %v2500_v27 = vsel %vm2492_vm11, %v2479_v25, %v2482_v1  ;;  %v7610_v37 = vand.u32 2147483647, %v6507_v4  ;;  %4803 = vmatprep.subr.bf16.mxu0 %v5044_v61 }
 0x257   :  { %v7611_v35 = vmov 0  ;;  %v2332_v12 = vand.u32 2147483647, %v2331_v50  ;;  %v2334_v13 = vcvt.s32.f32 %v2327_v32  ;;  %v2501_v38 = vsel %vm2495_vm13, %v2488_v10, 920167782  ;;  %4804 = vmatpush3.bf16.msra.mxu0 %v5044_v61 }
 0x258   :  { %vm6927_vm2 = vcmp.le.f32.partialorder %v7610_v37, 0.7853982  ;;  %v2504_v9 = vsel %vm2492_vm11, %v2482_v1, %v2485_v6  ;;  %v4288_v62 = vmin.u32 %v2630_v39, %v6907_v5  ;;  %v2496_v22 = vsel %vm2492_vm11, %v2476_v29, %v2479_v25 }
 0x259   :  { %v7612_v35 = vsel %vm6927_vm2, 4294967295, %v7611_v35  ;;  %v2502_v16 = vsel %vm2494_vm9, %v2485_v6, %v2501_v38  ;;  %v2505_v55 = vsel %vm2495_vm13, %v2491_v54, 1326507024  ;;  %v2335_v26 = vmul.f32 %v2334_v13, %v2332_v12 }
 0x25a   :  { %7613 = vst [vmem:[#allocation38_spill] sm:$0xff] %v7612_v35  ;;  %v2498_v32 = vsel %vm2494_vm9, %v2482_v1, %v2497_v30  ;;  %v2503_v50 = vsel %vm2493_vm1, %v2500_v27, %v2502_v16  ;;  %v2506_v37 = vsel %vm2494_vm9, %v2488_v10, %v2505_v55  ;;  %v2632_v39 = vclz %v4288_v62 }
 0x25b   :  { %v2507_v25 = vsel %vm2493_vm1, %v2504_v9, %v2506_v37  ;;  %v6951_v6 = vmul.u32.u64.low %v6886_v49, %v2503_v50  ;;  %v6952_v29 = vmul.u32.u64.high %v6886_v49, %v2503_v50, %v6951_v6  ;;  %v2336_v54 = vxor.u32 2147483648, %v2335_v26 }
 0x25c   :  { %v6955_v12 = vmul.u32.u64.low %v6886_v49, %v2507_v25  ;;  %v6956_v1 = vmul.u32.u64.high %v6886_v49, %v2507_v25, %v6955_v12  ;;  %v7614_v30 = vand.u32 2139095040, %v6868_v28  ;;  %v4289_v10 = vadd.s32 4294967294, %v2632_v39 }
 0x25d   :  { %v2499_v53 = vsel %vm2493_vm1, %v2496_v22, %v2498_v32  ;;  %v1298_v13 = vsub.s32 4, %v5889_v31  ;;  %v2337_v38 = vsel %vm7525_vm0, %v2336_v54, %v2335_v26  ;;  %v2780_v62 = vor.u32 8388608, %v2779_v48 }
 0x25e   :  { %v2776_v27 = vshrl.u32 %v7614_v30, 23  ;;  %v2671_v16 = vand.u32 2139095040, %v6882_v43  ;;  %5124 = vsinq.f32 %v6875_v7  ;;  %v2620_v55 = vadd.s32 %v6839_v47, %v6853_v8 }
 0x25f   :  { %vm4290_vm11 = vcmp.lt.s32.totalorder %v4289_v10, 0  ;;  %v2518_v50 = vadd.s32 1, %v6952_v29  ;;  %v2515_v22 = vmul.u32 %v6886_v49, %v2499_v53  ;;  %vm2517_vm1 = vc.u32 %v6956_v1, %v6951_v6 }
 0x260   :  { %v4295_v9 = vadd.s32 4294967169, %v2776_v27  ;;  %v2635_v63 = vsel %vm4290_vm11, 0, %v4289_v10  ;;  %v7517_v26 = vand.u32 2147483647, %v6882_v43  ;;  %v2340_v48 = vsel %vm6927_vm2, %v6507_v4, %v2337_v38 }
 0x261   :  { %v2636_v61 = vsub.s32 32, %v2635_v63  ;;  %v2640_v32 = vsub.s32 4294967266, %v2635_v63  ;;  %v6980_v47 = vsel %vm1214_vm6, %v1298_v13, %v5889_v31  ;;  %v2519_v8 = vsel %vm2517_vm1, %v2518_v50, %v6952_v29 }
 0x262   :  { %v2782_v7 = vadd.s32 1, %v4295_v9  ;;  %v6983_v37 = vshll.u32 %v2780_v62, 8  ;;  %v2672_v49 = vshrl.u32 %v2671_v16, 23  ;;  %v2637_v39 = vshll.u32 %v6907_v5, %v2635_v63 }
 0x263   :  { %v2638_v25 = vshrl.u32 %v2620_v55, %v2636_v61  ;;  %v2641_v54 = vadd.s32 127, %v2640_v32  ;;  %v2520_v12 = vadd.s32 %v2519_v8, %v2515_v22  ;;  %5126 = vcosq.f32 %v2340_v48  ;;  %v7012_v8 = vpop.eup %5122 }
 0x264   :  { %v6987_v30 = vadd.s32 %v6951_v6, %v6956_v1  ;;  %vm2783_vm13 = vcmp.gt.s32.totalorder %v2782_v7, 0  ;;  %v4291_v27 = vadd.s32 4294967169, %v2672_v49  ;;  %5128 = vsinq.f32 %v2340_v48  ;;  %7619 = vst [vmem:[#allocation40_spill] sm:$0xff] %v7012_v8 }
 0x265   :  { %v2639_v10 = vor.u32 %v2638_v25, %v2637_v39  ;;  %v2642_v31 = vshll.u32 %v2641_v54, 23  ;;  %v2521_v53 = vadd.s32 536870912, %v2520_v12  ;;  %v2784_v13 = vsel %vm2783_vm13, %v2782_v7, 0 }
 0x266   :  { %vm7524_vm6 = vcmp.lt.s32.totalorder %v6612_v33, 0  ;;  %v2786_v29 = vand.u32 31, %v2784_v13  ;;  %v6992_v5 = vand.u32 8388607, %v7517_v26  ;;  %v1301_v38 = vsel %vm6054_vm7, 0, %v6980_v47 }
 0x267   :  { %v7615_v6 = vand.u32 2147483647, %v6612_v33  ;;  %v7616_v1 = vmov 0  ;;  %v2643_v9 = vor.u32 4788187, %v2642_v31  ;;  %v7003_v62 = vshrl.u32 %v2521_v53, 30 }
 0x268   :  { %v2785_v16 = vshrl.u32 %v2784_v13, 5  ;;  %v7005_v55 = vadd.s32 1, %v4291_v27  ;;  %v2646_v50 = vcvt.s32.f32 %v2639_v10  ;;  %v2787_v63 = vsub.s32 32, %v2786_v29  ;;  %v5045_v53 = vld [vmem:[#allocation2 + $0x60] sm:$0xff]  }
 0x269   :  { %vm6999_vm9 = vcmp.le.f32.partialorder %v7615_v6, 0.7853982  ;;  %7618 = vst [vmem:[#allocation39_spill] sm:$0xff] %v7003_v62  ;;  %v2789_v22 = vshll.u32 %v7554_v15, %v2786_v29  ;;  %v2792_v48 = vshll.u32 %v7555_v24, %v2786_v29  ;;  %v2644_v40 = vand.u32 2147483647, %v2643_v9  ;;  %4805 = vmatprep.subr.bf16.mxu0 %v5045_v53 }
 0x26a   :  { %v7617_v1 = vsel %vm6999_vm9, 4294967295, %v7616_v1  ;;  %v2523_v61 = vshll.u32 %v7003_v62, 30  ;;  %v2795_v32 = vshll.u32 %v7545_v58, %v2786_v29  ;;  %v2798_v47 = vshll.u32 %v7546_v18, %v2786_v29  ;;  %4806 = vmatpush3.bf16.msra.mxu0 %v5045_v53 }
 0x26b   :  { %v2790_v7 = vshrl.u32 %v7555_v24, %v2787_v63  ;;  %v2793_v49 = vshrl.u32 %v7545_v58, %v2787_v63  ;;  %v2796_v39 = vshrl.u32 %v7546_v18, %v2787_v63  ;;  %v2801_v25 = vshll.u32 %v7571_v3, %v2786_v29  ;;  %v7022_v13 = vpop.eup %5124 }
 0x26c   :  { %v2647_v54 = vmul.f32 %v2646_v50, %v2644_v40  ;;  %v7018_v27 = vsub.s32 %v2520_v12, %v2523_v61  ;;  %v2799_v10 = vshrl.u32 %v7571_v3, %v2787_v63  ;;  %v2802_v31 = vshrl.u32 %v7548_v0, %v2787_v63  ;;  %v5046_v40 = vld [vmem:[#allocation2 + $0x58] sm:$0xff]  }
 0x26d   :  { %v2788_v6 = vshrl.u32 %v7554_v15, %v2787_v63  ;;  %v2791_v9 = vor.u32 %v2790_v7, %v2789_v22  ;;  %v2794_v26 = vor.u32 %v2793_v49, %v2792_v48  ;;  %v2797_v17 = vor.u32 %v2796_v39, %v2795_v32  ;;  %4807 = vmatprep.subr.bf16.mxu0 %v5046_v40 }
 0x26e   :  { %v2648_v8 = vxor.u32 2147483648, %v2647_v54  ;;  %v2526_v62 = vsub.s32 0, %v7018_v27  ;;  %v2800_v35 = vor.u32 %v2799_v10, %v2798_v47  ;;  %vm2804_vm7 = vcmp.lt.s32.totalorder %v2785_v16, 1  ;;  %4808 = vmatpush3.bf16.msra.mxu0 %v5046_v40 }
 0x26f   :  { %v2803_v12 = vor.u32 %v2802_v31, %v2801_v25  ;;  %vm2806_vm11 = vcmp.lt.s32.totalorder %v2785_v16, 3  ;;  %vm2807_vm1 = vcmp.lt.s32.totalorder %v2785_v16, 4  ;;  %v2808_v29 = vsel %vm2804_vm7, %v2788_v6, %v2791_v9 }
 0x270   :  { %v2649_v50 = vsel %vm7524_vm6, %v2648_v8, %v2647_v54  ;;  %v4284_v63 = vmin.u32 %v2526_v62, %v7018_v27  ;;  %v2809_v22 = vsel %vm2807_vm1, %v2797_v17, 2102212464  ;;  %v2812_v48 = vsel %vm2804_vm7, %v2791_v9, %v2794_v26  ;;  %v7039_v7 = vpop.eup %5126 }
 0x271   :  { %v7035_v61 = vsel %vm6999_vm9, %v6612_v33, %v2649_v50  ;;  %vm2805_vm13 = vcmp.lt.s32.totalorder %v2785_v16, 2  ;;  %v2810_v32 = vsel %vm2806_vm11, %v2794_v26, %v2809_v22  ;;  %v2813_v47 = vsel %vm2807_vm1, %v2800_v35, 920167782  ;;  %v7047_v53 = vpop.eup %5128 }
 0x272   :  { %v2528_v8 = vclz %v4284_v63  ;;  %v2811_v62 = vsel %vm2805_vm13, %v2808_v29, %v2810_v32  ;;  %v2814_v49 = vsel %vm2806_vm11, %v2797_v17, %v2813_v47  ;;  %v2816_v39 = vsel %vm2804_vm7, %v2794_v26, %v2797_v17 }
 0x273   :  { %v2815_v25 = vsel %vm2805_vm13, %v2812_v48, %v2814_v49  ;;  %v2817_v54 = vsel %vm2807_vm1, %v2803_v12, 1326507024  ;;  %v2676_v10 = vor.u32 8388608, %v6992_v5  ;;  %v1305_v31 = vadd.s32 3, %v1301_v38 }
 0x274   :  { %v4285_v6 = vadd.s32 4294967294, %v2528_v8  ;;  %v2818_v9 = vsel %vm2806_vm11, %v2800_v35, %v2817_v54  ;;  %v7051_v29 = vmul.u32.u64.low %v6983_v37, %v2815_v25  ;;  %v7052_v50 = vmul.u32.u64.high %v6983_v37, %v2815_v25, %v7051_v29 }
 0x275   :  { %5130 = vcosq.f32 %v7035_v61  ;;  %v2819_v17 = vsel %vm2805_vm13, %v2816_v39, %v2818_v9  ;;  %v2827_v26 = vmul.u32 %v6983_v37, %v2811_v62  ;;  %vm2679_vm7 = vcmp.gt.s32.totalorder %v7005_v55, 0 }
 0x276   :  { %vm4286_vm1 = vcmp.lt.s32.totalorder %v4285_v6, 0  ;;  %v7060_v5 = vmul.u32.u64.low %v6983_v37, %v2819_v17  ;;  %v7061_v38 = vmul.u32.u64.high %v6983_v37, %v2819_v17, %v7060_v5  ;;  %v2680_v35 = vsel %vm2679_vm7, %v7005_v55, 0 }
 0x277   :  { %v2531_v12 = vsel %vm4286_vm1, 0, %v4285_v6  ;;  %v2682_v63 = vand.u32 31, %v2680_v35  ;;  %v7064_v22 = vshll.u32 %v2676_v10, 8  ;;  %v7066_v48 = vand.u32 3, %v1305_v31 }
 0x278   :  { %v2532_v40 = vsub.s32 32, %v2531_v12  ;;  %v2536_v16 = vsub.s32 4294967266, %v2531_v12  ;;  %v2830_v32 = vadd.s32 1, %v7052_v50  ;;  %v2681_v47 = vshrl.u32 %v2680_v35, 5 }
 0x279   :  { %v2533_v8 = vshll.u32 %v7018_v27, %v2531_v12  ;;  %v2683_v62 = vsub.s32 32, %v2682_v63  ;;  %v2685_v49 = vshll.u32 %v7554_v15, %v2682_v63  ;;  %v2688_v37 = vshll.u32 %v7555_v24, %v2682_v63 }
 0x27a   :  { %v2534_v55 = vshrl.u32 %v6987_v30, %v2532_v40  ;;  %v2537_v39 = vadd.s32 127, %v2536_v16  ;;  %vm2829_vm11 = vc.u32 %v7061_v38, %v7051_v29  ;;  %v2691_v25 = vshll.u32 %v7545_v58, %v2682_v63 }
 0x27b   :  { %v2831_v54 = vsel %vm2829_vm11, %v2830_v32, %v7052_v50  ;;  %v2684_v10 = vshrl.u32 %v7554_v15, %v2683_v62  ;;  %v2686_v31 = vshrl.u32 %v7555_v24, %v2683_v62  ;;  %v2689_v27 = vshrl.u32 %v7545_v58, %v2683_v62 }
 0x27c   :  { %v2535_v6 = vor.u32 %v2534_v55, %v2533_v8  ;;  %v2538_v9 = vshll.u32 %v2537_v39, 23  ;;  %v2832_v17 = vadd.s32 %v2831_v54, %v2827_v26  ;;  %v2692_v5 = vshrl.u32 %v7546_v18, %v2683_v62 }
 0x27d   :  { %v2687_v30 = vor.u32 %v2686_v31, %v2685_v49  ;;  %v2690_v35 = vor.u32 %v2689_v27, %v2688_v37  ;;  %v2694_v12 = vshll.u32 %v7546_v18, %v2682_v63  ;;  %v2695_v40 = vshrl.u32 %v7571_v3, %v2683_v62 }
 0x27e   :  { %v7620_v50 = vand.u32 2147483647, %v6641_v57  ;;  %v2539_v58 = vor.u32 4788187, %v2538_v9  ;;  %v2542_v24 = vcvt.s32.f32 %v2535_v6  ;;  %v2833_v16 = vadd.s32 536870912, %v2832_v17 }
 0x27f   :  { %v2693_v26 = vor.u32 %v2692_v5, %v2691_v25  ;;  %v2696_v32 = vor.u32 %v2695_v40, %v2694_v12  ;;  %v2697_v8 = vshll.u32 %v7571_v3, %v2682_v63  ;;  %v2698_v49 = vshrl.u32 %v7548_v0, %v2683_v62 }
 0x280   :  { %vm7086_vm7 = vcmp.le.f32.partialorder %v7620_v50, 0.7853982  ;;  %vm2700_vm1 = vcmp.lt.s32.totalorder %v2681_v47, 1  ;;  %v2540_v37 = vand.u32 2147483647, %v2539_v58  ;;  %v7092_v18 = vshrl.u32 %v2833_v16, 30 }
 0x281   :  { %vm2701_vm11 = vcmp.lt.s32.totalorder %v2681_v47, 2  ;;  %vm2702_vm6 = vcmp.lt.s32.totalorder %v2681_v47, 3  ;;  %v2699_v55 = vor.u32 %v2698_v49, %v2697_v8  ;;  %vm2703_vm0 = vcmp.lt.s32.totalorder %v2681_v47, 4 }
 0x282   :  { %v2704_v39 = vsel %vm2700_vm1, %v2684_v10, %v2687_v30  ;;  %v2708_v54 = vsel %vm2700_vm1, %v2687_v30, %v2690_v35  ;;  %v7096_v31 = vpop.eup %5130  ;;  %v2543_v25 = vmul.f32 %v2542_v24, %v2540_v37  ;;  %v2835_v27 = vshll.u32 %v7092_v18, 30 }
 0x283   :  { %v2705_v3 = vsel %vm2703_vm0, %v2693_v26, 2102212464  ;;  %v2709_v63 = vsel %vm2703_vm0, %v2696_v32, 920167782  ;;  %v2712_v6 = vsel %vm2700_vm1, %v2690_v35, %v2693_v26  ;;  %v2713_v9 = vsel %vm2703_vm0, %v2699_v55, 1326507024 }
 0x284   :  { %v2706_v0 = vsel %vm2702_vm6, %v2690_v35, %v2705_v3  ;;  %v2710_v62 = vsel %vm2702_vm6, %v2693_v26, %v2709_v63  ;;  %5132 = vsinq.f32 %v7035_v61  ;;  %v2544_v5 = vxor.u32 2147483648, %v2543_v25 }
 0x285   :  { %v7103_v10 = vsub.s32 %v2832_v17, %v2835_v27  ;;  %v2711_v30 = vsel %vm2701_vm11, %v2708_v54, %v2710_v62  ;;  %vm1304_vm13 = vweird.f32 %v5715_v60  ;;  %v2714_v12 = vsel %vm2702_vm6, %v2696_v32, %v2713_v9  ;;  %v7625_v62 = vld [vmem:[#allocation10_spill] sm:$0xff] }
 0x286   :  { %v7109_v40 = vmul.u32.u64.low %v7064_v22, %v2711_v30  ;;  %v7110_v50 = vmul.u32.u64.high %v7064_v22, %v2711_v30, %v7109_v40  ;;  %vm1307_vm9 = vcmp.lt.s32.totalorder %v7066_v48, 2  ;;  %vm7623_vm0 = vcmp.lt.s32.totalorder %v6641_v57, 0 }
 0x287   :  { %v2545_v35 = vsel %vm7623_vm0, %v2544_v5, %v2543_v25  ;;  %v2838_v61 = vsub.s32 0, %v7103_v10  ;;  %v2707_v17 = vsel %vm2701_vm11, %v2704_v39, %v2706_v0  ;;  %v2715_v58 = vsel %vm2701_vm11, %v2712_v6, %v2714_v12 }
 0x288   :  { %v2548_v24 = vsel %vm7086_vm7, %v6641_v57, %v2545_v35  ;;  %v7123_v16 = vmul.u32.u64.low %v7064_v22, %v2715_v58  ;;  %v7124_v26 = vmul.u32.u64.high %v7064_v22, %v2715_v58, %v7123_v16  ;;  %v1309_v32 = vxor.u32 2147483648, %v6145_v42  ;;  %v7626_v58 = vld [vmem:[#allocation8_spill] sm:$0xff] }
 0x289   :  { %v2828_v8 = vadd.s32 %v7051_v29, %v7061_v38  ;;  %v4296_v49 = vmin.u32 %v2838_v61, %v7103_v10  ;;  %vm1308_vm6 = vcmp.eq.s32.totalorder %v7066_v48, 0  ;;  %v1312_v47 = vxor.u32 2147483648, %v6137_v44 }
 0x28a   :  { %v2726_v37 = vadd.s32 1, %v7110_v50  ;;  %v1310_v55 = vsel %vm1308_vm6, %v6137_v44, %v1309_v32  ;;  %vm1311_vm1 = vcmp.eq.s32.totalorder %v7066_v48, 2  ;;  %v1402_v39 = vsub.s32 4, %v5841_v21 }
 0x28b   :  { %5134 = vcosq.f32 %v2548_v24  ;;  %v2840_v54 = vclz %v4296_v49  ;;  %v2723_v25 = vmul.u32 %v7064_v22, %v2707_v17  ;;  %v1313_v29 = vsel %vm1311_vm1, %v1312_v47, %v6145_v42 }
 0x28c   :  { %vm2725_vm11 = vc.u32 %v7124_v26, %v7109_v40  ;;  %v1314_v38 = vsel %vm1307_vm9, %v1310_v55, %v1313_v29  ;;  %vm7624_vm0 = vcmp.lt.s32.totalorder %v5705_v45, 0  ;;  %v1413_v42 = vxor.u32 2147483648, %v6069_v36 }
 0x28d   :  { %v1403_v44 = vsel %vm7624_vm0, %v1402_v39, %v5841_v21  ;;  %v4297_v27 = vadd.s32 4294967294, %v2840_v54  ;;  %v2727_v3 = vsel %vm2725_vm11, %v2726_v37, %v7110_v50  ;;  %v1315_v48 = vsel %vm1304_vm13, nan, %v1314_v38 }
 0x28e   :  { %v1405_v22 = vsel %vm5995_vm15, 0, %v1403_v44  ;;  %v2728_v63 = vadd.s32 %v2727_v3, %v2723_v25  ;;  %v1416_v6 = vxor.u32 2147483648, %v7625_v62  ;;  %vm1516_vm0 = vcmp.eq.s32.totalorder %v6615_v34, 0  ;;  %v7633_v3 = vld [vmem:[#allocation17_spill] sm:$0xff] }
 0x28f   :  { %v1409_v0 = vadd.s32 3, %v1405_v22  ;;  %vm4298_vm9 = vcmp.lt.s32.totalorder %v4297_v27, 0  ;;  %v1517_v21 = vxor.u32 2147483648, %v6409_v51  ;;  %vm1519_vm11 = vcmp.eq.s32.totalorder %v6615_v34, 2  ;;  %v7634_v22 = vld [vmem:[#allocation13_spill] sm:$0xff] }
 0x290   :  { %v2843_v59 = vsel %vm4298_vm9, 0, %v4297_v27  ;;  %v2729_v9 = vadd.s32 536870912, %v2728_v63  ;;  %v1520_v30 = vxor.u32 2147483648, %v6404_v14  ;;  %vm1616_vm6 = vweird.f32 %v7626_v58 }
 0x291   :  { %v1410_v5 = vand.u32 3, %v1409_v0  ;;  %v2844_v12 = vsub.s32 32, %v2843_v59  ;;  %v2845_v50 = vshll.u32 %v7103_v10, %v2843_v59  ;;  %v2848_v60 = vsub.s32 4294967266, %v2843_v59  ;;  %v7160_v61 = vpop.eup %5132 }
 0x292   :  { %v1518_v35 = vsel %vm1516_vm0, %v6404_v14, %v1517_v21  ;;  %v7162_v17 = vshrl.u32 %v2729_v9, 30  ;;  %vm1515_vm9 = vcmp.lt.s32.totalorder %v6615_v34, 2  ;;  %v1521_v14 = vsel %vm1519_vm11, %v1520_v30, %v6409_v51  ;;  %v7629_v34 = vld [vmem:[#allocation18_spill] sm:$0xff]  ;;  %v7635_v21 = vld [vmem:[#allocation7_spill] sm:$0xff]  ;;  %v7637_v9 = vld [vmem:[#allocation12_spill] sm:$0xff] }
 0x293   :  { %vm1411_vm15 = vcmp.lt.s32.totalorder %v1410_v5, 2  ;;  %vm1412_vm13 = vcmp.eq.s32.totalorder %v1410_v5, 0  ;;  %vm1415_vm1 = vcmp.eq.s32.totalorder %v1410_v5, 2  ;;  %v2846_v16 = vshrl.u32 %v2828_v8, %v2844_v12 }
 0x294   :  { %v2849_v32 = vadd.s32 127, %v2848_v60  ;;  %v1414_v49 = vsel %vm1412_vm13, %v7625_v62, %v1413_v42  ;;  %v1417_v47 = vsel %vm1415_vm1, %v1416_v6, %v6069_v36  ;;  %v2731_v10 = vshll.u32 %v7162_v17, 30 }
 0x295   :  { %v1418_v37 = vsel %vm1411_vm15, %v1414_v49, %v1417_v47  ;;  %v2847_v55 = vor.u32 %v2846_v16, %v2845_v50  ;;  %vm7627_vm0 = vweird.f32 %v5705_v45  ;;  %v1522_v8 = vsel %vm1515_vm9, %v1518_v35, %v1521_v14  ;;  %v7639_v47 = vld [vmem:[#allocation6_spill] sm:$0xff] }
 0x296   :  { %v2850_v39 = vshll.u32 %v2849_v32, 23  ;;  %v1419_v54 = vsel %vm7627_vm0, nan, %v1418_v37  ;;  %5136 = vsinq.f32 %v2548_v24  ;;  %vm7527_vm13 = vcmp.lt.s32.totalorder %v6868_v28, 0 }
 0x297   :  { %v7175_v25 = vsub.s32 %v2728_v63, %v2731_v10  ;;  %v2876_v36 = vpack.c.bf16 %v1419_v54, %v1315_v48  ;;  %vm7628_vm1 = vweird.f32 %v5770_v56  ;;  %vm1619_vm15 = vcmp.lt.s32.totalorder %v6608_v2, 2 }
 0x298   :  { %v2851_v29 = vor.u32 4788187, %v2850_v39  ;;  %v1523_v38 = vsel %vm7628_vm1, nan, %v1522_v8  ;;  %v1621_v51 = vxor.u32 2147483648, %v7629_v34  ;;  %v7181_v44 = vpop.eup %5134  ;;  %v7630_v45 = vand.u32 2147483647, %v6868_v28 }
 0x299   :  { %v2734_v24 = vsub.s32 0, %v7175_v25  ;;  %4783 = vmatprep.mubr.bf16.mxu1 %v2876_v36  ;;  %vm1620_vm9 = vcmp.eq.s32.totalorder %v6608_v2, 0  ;;  %v1624_v56 = vxor.u32 2147483648, %v7633_v3  ;;  %v1714_v42 = vsub.s32 4, %v7634_v22  ;;  %v7642_v36 = vld [vmem:[#allocation22_spill] sm:$0xff] }
 0x29a   :  { %vm7185_vm11 = vcmp.le.f32.partialorder %v7630_v45, 0.7853982  ;;  %v2852_v63 = vand.u32 2147483647, %v2851_v29  ;;  %v2854_v48 = vcvt.s32.f32 %v2847_v55  ;;  %v1622_v0 = vsel %vm1620_vm9, %v7633_v3, %v1621_v51  ;;  %v7644_v51 = vld [vmem:[#allocation23_spill] sm:$0xff] }
 0x29b   :  { %vm1623_vm0 = vcmp.eq.s32.totalorder %v6608_v2, 2  ;;  %v4292_v62 = vmin.u32 %v2734_v24, %v7175_v25  ;;  %vm7636_vm1 = vcmp.lt.s32.totalorder %v7635_v21, 0  ;;  %v1818_v5 = vsub.s32 4, %v7637_v9 }
 0x29c   :  { %v1625_v6 = vsel %vm1623_vm0, %v1624_v56, %v7629_v34  ;;  %v1715_v59 = vsel %vm7636_vm1, %v1714_v42, %v7634_v22  ;;  %v2855_v30 = vmul.f32 %v2854_v48, %v2852_v63  ;;  %v2724_v12 = vadd.s32 %v7109_v40, %v7124_v26 }
 0x29d   :  { %v1626_v50 = vsel %vm1619_vm15, %v1622_v0, %v1625_v6  ;;  %v1717_v35 = vsel %vm6335_vm12, 0, %v1715_v59  ;;  %v2736_v16 = vclz %v4292_v62  ;;  %vm7640_vm9 = vcmp.lt.s32.totalorder %v7639_v47, 0  ;;  %v7645_v59 = vld [vmem:[#allocation11_spill] sm:$0xff] }
 0x29e   :  { %v1627_v32 = vsel %vm1616_vm6, nan, %v1626_v50  ;;  %v1721_v49 = vadd.s32 3, %v1717_v35  ;;  %v1819_v10 = vsel %vm7640_vm9, %v1818_v5, %v7637_v9  ;;  %v2856_v37 = vxor.u32 2147483648, %v2855_v30 }
 0x29f   :  { %v2877_v14 = vpack.c.bf16 %v1627_v32, %v1523_v38  ;;  %v1725_v55 = vxor.u32 2147483648, %v6568_v11  ;;  %v1821_v2 = vsel %vm6297_vm14, 0, %v1819_v10  ;;  %v4293_v26 = vadd.s32 4294967294, %v2736_v16  ;;  %v7643_v38 = vld [vmem:[#allocation26_spill] sm:$0xff]  ;;  %v7648_v10 = vld [vmem:[#allocation15_spill] sm:$0xff] }
 0x2a0   :  { %vm1720_vm15 = vweird.f32 %v7635_v21  ;;  %v1722_v39 = vand.u32 3, %v1721_v49  ;;  %v1728_v54 = vxor.u32 2147483648, %v6481_v19  ;;  %v2857_v58 = vsel %vm7527_vm13, %v2856_v37, %v2855_v30 }
 0x2a1   :  { %4784 = vmatmul.mubr.bf16.vlgmr.msra.gmra.mxu1 %v2877_v14  ;;  %v1825_v8 = vadd.s32 3, %v1821_v2  ;;  %v1922_v29 = vsub.s32 4, %v7642_v36  ;;  %vm4294_vm6 = vcmp.lt.s32.totalorder %v4293_v26, 0  ;;  %v1829_v34 = vxor.u32 2147483648, %v7643_v38 }
 0x2a2   :  { %vm1724_vm0 = vcmp.eq.s32.totalorder %v1722_v39, 0  ;;  %v1832_v45 = vxor.u32 2147483648, %v7644_v51  ;;  %v7226_v24 = vsel %vm7185_vm11, %v6868_v28, %v2857_v58  ;;  %v2739_v3 = vsel %vm4294_vm6, 0, %v4293_v26  ;;  %v7653_v58 = vld [vmem:[#allocation9_spill] sm:$0xff] }
 0x2a3   :  { %v1726_v56 = vsel %vm1724_vm0, %v6481_v19, %v1725_v55  ;;  %v1933_v22 = vxor.u32 2147483648, %v6708_v41  ;;  %v2740_v42 = vsub.s32 32, %v2739_v3  ;;  %v2744_v63 = vsub.s32 4294967266, %v2739_v3  ;;  %v7230_v48 = vpop.eup %5136 }
 0x2a4   :  { %vm1723_vm14 = vcmp.lt.s32.totalorder %v1722_v39, 2  ;;  %vm1727_vm1 = vcmp.eq.s32.totalorder %v1722_v39, 2  ;;  %v2741_v0 = vshll.u32 %v7175_v25, %v2739_v3  ;;  %v1826_v6 = vand.u32 3, %v1825_v8 }
 0x2a5   :  { %v1729_v62 = vsel %vm1727_vm1, %v1728_v54, %v6568_v11  ;;  %vm7646_vm9 = vcmp.lt.s32.totalorder %v7645_v59, 0  ;;  %v2742_v5 = vshrl.u32 %v2724_v12, %v2740_v42  ;;  %v2745_v30 = vadd.s32 127, %v2744_v63 }
 0x2a6   :  { %v1923_v9 = vsel %vm7646_vm9, %v1922_v29, %v7642_v36  ;;  %v1730_v19 = vsel %vm1723_vm14, %v1726_v56, %v1729_v62  ;;  %vm1827_vm6 = vcmp.lt.s32.totalorder %v1826_v6, 2  ;;  %vm1828_vm0 = vcmp.eq.s32.totalorder %v1826_v6, 0  ;;  %v7655_v36 = vld [vmem:[#allocation32_spill] sm:$0xff] }
 0x2a7   :  { %v1925_v60 = vsel %vm6529_vm8, 0, %v1923_v9  ;;  %v1731_v35 = vsel %vm1720_vm15, nan, %v1730_v19  ;;  %vm1831_vm13 = vcmp.eq.s32.totalorder %v1826_v6, 2  ;;  %vm1928_vm12 = vweird.f32 %v7645_v59  ;;  %v7658_v56 = vld [vmem:[#allocation28_spill] sm:$0xff] }
 0x2a8   :  { %v2743_v11 = vor.u32 %v2742_v5, %v2741_v0  ;;  %v2746_v25 = vshll.u32 %v2745_v30, 23  ;;  %v1830_v16 = vsel %vm1828_vm0, %v7644_v51, %v1829_v34  ;;  %v1833_v32 = vsel %vm1831_vm13, %v1832_v45, %v7643_v38  ;;  %v7657_v45 = vld [vmem:[#allocation29_spill] sm:$0xff]  ;;  %v7659_v6 = vld [vmem:[#allocation20_spill] sm:$0xff]  ;;  %v7667_v34 = vld [vmem:[#allocation34_spill] sm:$0xff] }
 0x2a9   :  { %5138 = vcosq.f32 %v7226_v24  ;;  %vm2670_vm14 = vcmp.lt.s32.totalorder %v6882_v43, 0  ;;  %v1834_v12 = vsel %vm1827_vm6, %v1830_v16, %v1833_v32  ;;  %v1929_v49 = vadd.s32 3, %v1925_v60 }
 0x2aa   :  { %v2026_v21 = vsub.s32 4, %v7648_v10  ;;  %v7649_v37 = vand.u32 2147483647, %v6882_v43  ;;  %v2747_v55 = vor.u32 4788187, %v2746_v25  ;;  %v2750_v40 = vcvt.s32.f32 %v2743_v11 }
 0x2ab   :  { %vm7652_vm15 = vweird.f32 %v7639_v47  ;;  %v1936_v26 = vxor.u32 2147483648, %v6681_v52  ;;  %v1930_v54 = vand.u32 3, %v1929_v49  ;;  %vm7654_vm13 = vcmp.lt.s32.totalorder %v7653_v58, 0 }
 0x2ac   :  { %vm7249_vm8 = vcmp.le.f32.partialorder %v7649_v37, 0.7853982  ;;  %v1835_v2 = vsel %vm7652_vm15, nan, %v1834_v12  ;;  %v2027_v8 = vsel %vm7654_vm13, %v2026_v21, %v7648_v10  ;;  %v2037_v29 = vxor.u32 2147483648, %v7655_v36  ;;  %v7663_v21 = vld [vmem:[#allocation14_spill] sm:$0xff] }
 0x2ad   :  { %v2878_v39 = vpack.c.bf16 %v1835_v2, %v1731_v35  ;;  %v2748_v38 = vand.u32 2147483647, %v2747_v55  ;;  %v2029_v51 = vsel %vm6422_vm4, 0, %v2027_v8  ;;  %v2040_v3 = vxor.u32 2147483648, %v7657_v45 }
 0x2ae   :  { %v2130_v42 = vsub.s32 4, %v7658_v56  ;;  %vm1931_vm1 = vcmp.lt.s32.totalorder %v1930_v54, 2  ;;  %vm1932_vm9 = vcmp.eq.s32.totalorder %v1930_v54, 0  ;;  %vm1935_vm6 = vcmp.eq.s32.totalorder %v1930_v54, 2  ;;  %v7677_v54 = vld [vmem:[#allocation37_spill] sm:$0xff] }
 0x2af   :  { %4787 = vmatprep.mubr.bf16.mxu1 %v2878_v39  ;;  %v2033_v47 = vadd.s32 3, %v2029_v51  ;;  %v2751_v63 = vmul.f32 %v2750_v40, %v2748_v38  ;;  %v1934_v0 = vsel %vm1932_vm9, %v6681_v52, %v1933_v22  ;;  %v1937_v62 = vsel %vm1935_vm6, %v1936_v26, %v6708_v41  ;;  %v7662_v41 = vld [vmem:[#allocation25_spill] sm:$0xff] }
 0x2b0   :  { %vm7660_vm0 = vcmp.lt.s32.totalorder %v7659_v6, 0  ;;  %v1938_v5 = vsel %vm1931_vm1, %v1934_v0, %v1937_v62  ;;  %v2141_v60 = vxor.u32 2147483648, %v6917_v23  ;;  %v2144_v52 = vxor.u32 2147483648, %v6913_v46  ;;  %v7671_v62 = vld [vmem:[#allocation21_spill] sm:$0xff] }
 0x2b1   :  { %v2131_v9 = vsel %vm7660_vm0, %v2130_v42, %v7658_v56  ;;  %v2034_v30 = vand.u32 3, %v2033_v47  ;;  %v2752_v35 = vxor.u32 2147483648, %v2751_v63  ;;  %v1939_v11 = vsel %vm1928_vm12, nan, %v1938_v5  ;;  %v7673_v5 = vld [vmem:[#allocation39_spill] sm:$0xff] }
 0x2b2   :  { %v2133_v50 = vsel %vm6781_vm10, 0, %v2131_v9  ;;  %v2234_v22 = vsub.s32 4, %v7662_v41  ;;  %vm2032_vm10 = vweird.f32 %v7653_v58  ;;  %vm7664_vm12 = vcmp.lt.s32.totalorder %v7663_v21, 0 }
 0x2b3   :  { %v2137_v25 = vadd.s32 3, %v2133_v50  ;;  %vm2035_vm4 = vcmp.lt.s32.totalorder %v2034_v30, 2  ;;  %vm2036_vm15 = vcmp.eq.s32.totalorder %v2034_v30, 0  ;;  %vm2039_vm13 = vcmp.eq.s32.totalorder %v2034_v30, 2 }
 0x2b4   :  { %v2753_v16 = vsel %vm2670_vm14, %v2752_v35, %v2751_v63  ;;  %v2038_v32 = vsel %vm2036_vm15, %v7657_v45, %v2037_v29  ;;  %v2041_v12 = vsel %vm2039_vm13, %v2040_v3, %v7655_v36  ;;  %v2235_v37 = vsel %vm7664_vm12, %v2234_v22, %v7662_v41  ;;  %v7666_v36 = vld [vmem:[#allocation35_spill] sm:$0xff] }
 0x2b5   :  { %v2138_v49 = vand.u32 3, %v2137_v25  ;;  %v2756_v59 = vsel %vm7249_vm8, %v6882_v43, %v2753_v16  ;;  %v2042_v10 = vsel %vm2035_vm4, %v2038_v32, %v2041_v12  ;;  %5140 = vsinq.f32 %v7226_v24  ;;  %v7668_v45 = vld [vmem:[#allocation31_spill] sm:$0xff]  ;;  %v7676_v12 = vld [vmem:[#allocation40_spill] sm:$0xff] }
 0x2b6   :  { %v2043_v55 = vsel %vm2032_vm10, nan, %v2042_v10  ;;  %vm2136_vm1 = vweird.f32 %v7659_v6  ;;  %vm2240_vm0 = vweird.f32 %v7663_v21  ;;  %v7291_v26 = vpop.eup %5138  ;;  %5142 = vcosq.f32 %v2756_v59 }
 0x2b7   :  { %vm2140_vm9 = vcmp.eq.s32.totalorder %v2138_v49, 0  ;;  %v2879_v40 = vpack.c.bf16 %v2043_v55, %v1939_v11  ;;  %vm2143_vm6 = vcmp.eq.s32.totalorder %v2138_v49, 2  ;;  %vm2139_vm4 = vcmp.lt.s32.totalorder %v2138_v49, 2 }
 0x2b8   :  { %v2142_v2 = vsel %vm2140_vm9, %v6913_v46, %v2141_v60  ;;  %v2145_v39 = vsel %vm2143_vm6, %v2144_v52, %v6917_v23  ;;  %v2237_v58 = vsel %vm6636_vm3, 0, %v2235_v37  ;;  %5144 = vsinq.f32 %v2756_v59 }
 0x2b9   :  { %4788 = vmatmul.mubr.bf16.gmra.mxu1 %v2879_v40  ;;  %v2146_v24 = vsel %vm2139_vm4, %v2142_v2, %v2145_v39  ;;  %v2241_v8 = vadd.s32 3, %v2237_v58  ;;  %v2338_v29 = vsub.s32 4, %v7666_v36  ;;  %v2245_v38 = vxor.u32 2147483648, %v6903_v20 }
 0x2ba   :  { %v2147_v46 = vsel %vm2136_vm1, nan, %v2146_v24  ;;  %v2248_v51 = vxor.u32 2147483648, %v7667_v34  ;;  %v2442_v3 = vsub.s32 4, %v7668_v45  ;;  %vm7669_vm15 = vcmp.lt.s32.totalorder %v6507_v4, 0 }
 0x2bb   :  { %v2242_v56 = vand.u32 3, %v2241_v8  ;;  %v2339_v23 = vsel %vm7669_vm15, %v2338_v29, %v7666_v36  ;;  %v2349_v42 = vxor.u32 2147483648, %v7047_v53  ;;  %v2352_v47 = vxor.u32 2147483648, %v7039_v7 }
 0x2bc   :  { %v2341_v0 = vsel %vm6927_vm2, 0, %v2339_v23  ;;  %vm7672_vm3 = vcmp.lt.s32.totalorder %v7671_v62, 0  ;;  %v2453_v9 = vxor.u32 2147483648, %v7022_v13  ;;  %v2546_v30 = vsub.s32 4, %v7673_v5 }
 0x2bd   :  { %v2443_v6 = vsel %vm7672_vm3, %v2442_v3, %v7668_v45  ;;  %vm2243_vm13 = vcmp.lt.s32.totalorder %v2242_v56, 2  ;;  %vm2244_vm10 = vcmp.eq.s32.totalorder %v2242_v56, 0  ;;  %vm2247_vm12 = vcmp.eq.s32.totalorder %v2242_v56, 2 }
 0x2be   :  { %v2345_v19 = vadd.s32 3, %v2341_v0  ;;  %v2246_v50 = vsel %vm2244_vm10, %v7667_v34, %v2245_v38  ;;  %v2249_v60 = vsel %vm2247_vm12, %v2248_v51, %v6903_v20  ;;  %v2445_v11 = vsel %vm6808_vm5, 0, %v2443_v6 }
 0x2bf   :  { %vm7675_vm2 = vcmp.lt.s32.totalorder %v6641_v57, 0  ;;  %v2250_v52 = vsel %vm2243_vm13, %v2246_v50, %v2249_v60  ;;  %v2449_v22 = vadd.s32 3, %v2445_v11  ;;  %v2456_v49 = vxor.u32 2147483648, %v7676_v12 }
 0x2c0   :  { %v2547_v25 = vsel %vm7675_vm2, %v2546_v30, %v7673_v5  ;;  %v2346_v41 = vand.u32 3, %v2345_v19  ;;  %v2251_v32 = vsel %vm2240_vm0, nan, %v2250_v52  ;;  %v2557_v20 = vxor.u32 2147483648, %v7230_v48 }
 0x2c1   :  { %v2549_v16 = vsel %vm7086_vm7, 0, %v2547_v25  ;;  %v2880_v10 = vpack.c.bf16 %v2251_v32, %v2147_v46  ;;  %v2450_v40 = vand.u32 3, %v2449_v22  ;;  %vm2344_vm7 = vweird.f32 %v6507_v4  ;;  %v5047_v32 = vld [vmem:[#allocation2 + $0x50] sm:$0xff]  }
 0x2c2   :  { %v2553_v59 = vadd.s32 3, %v2549_v16  ;;  %vm2347_vm5 = vcmp.lt.s32.totalorder %v2346_v41, 2  ;;  %vm2348_vm1 = vcmp.eq.s32.totalorder %v2346_v41, 0  ;;  %vm2351_vm9 = vcmp.eq.s32.totalorder %v2346_v41, 2  ;;  %v7329_v15 = vpop.eup %5140  ;;  %4809 = vmatprep.subr.bf16.mxu0 %v5047_v32 }
 0x2c3   :  { %v2350_v37 = vsel %vm2348_vm1, %v7039_v7, %v2349_v42  ;;  %v2353_v55 = vsel %vm2351_vm9, %v2352_v47, %v7047_v53  ;;  %4791 = vmatprep.mubr.bf16.mxu1 %v2880_v10  ;;  %v2560_v39 = vxor.u32 2147483648, %v7181_v44  ;;  %v2650_v58 = vsub.s32 4, %v7677_v54  ;;  %v5143_v7 = vpop.eup %5142  ;;  %4810 = vmatpush3.bf16.msra.mxu0 %v5047_v32 }
 0x2c4   :  { %v2554_v2 = vand.u32 3, %v2553_v59  ;;  %v2354_v21 = vsel %vm2347_vm5, %v2350_v37, %v2353_v55  ;;  %vm2448_vm6 = vweird.f32 %v7671_v62  ;;  %vm2452_vm0 = vcmp.eq.s32.totalorder %v2450_v40, 0  ;;  %v5051_v59 = vld [vmem:[#allocation2 + $0xb0] sm:$0xff]  }
 0x2c5   :  { %v2355_v24 = vsel %vm2344_vm7, nan, %v2354_v21  ;;  %vm2455_vm4 = vcmp.eq.s32.totalorder %v2450_v40, 2  ;;  %vm2451_vm15 = vcmp.lt.s32.totalorder %v2450_v40, 2  ;;  %v2454_v53 = vsel %vm2452_vm0, %v7676_v12, %v2453_v9  ;;  %v5145_v36 = vpop.eup %5144  ;;  %v5048_v12 = vld [vmem:[#allocation2 + $0x48] sm:$0xff]  }
 0x2c6   :  { %v2457_v8 = vsel %vm2455_vm4, %v2456_v49, %v7022_v13  ;;  %vm2556_vm3 = vcmp.eq.s32.totalorder %v2554_v2, 0  ;;  %vm2559_vm13 = vcmp.eq.s32.totalorder %v2554_v2, 2  ;;  %vm7678_vm10 = vcmp.lt.s32.totalorder %v6612_v33, 0  ;;  %4811 = vmatprep.subr.bf16.mxu0 %v5048_v12  ;;  %v5050_v49 = vld [vmem:[#allocation2 + $0xb8] sm:$0xff]  }
 0x2c7   :  { %v2458_v29 = vsel %vm2451_vm15, %v2454_v53, %v2457_v8  ;;  %v2558_v4 = vsel %vm2556_vm3, %v7181_v44, %v2557_v20  ;;  %v2651_v46 = vsel %vm7678_vm10, %v2650_v58, %v7677_v54  ;;  %vm2555_vm12 = vcmp.lt.s32.totalorder %v2554_v2, 2  ;;  %4812 = vmatpush3.bf16.msra.mxu0 %v5048_v12  ;;  %4831 = vmatprep.subr.bf16.mxu1 %v5050_v49  ;;  %v5054_v20 = vld [vmem:[#allocation2 + $0x98] sm:$0xff]   ;;  %v7371_v58 = vld [vmem:[%s7439_s5] ss:$0 sm:$0xff] }
 0x2c8   :  { %v2459_v38 = vsel %vm2448_vm6, nan, %v2458_v29  ;;  %v2561_v34 = vsel %vm2559_vm13, %v2560_v39, %v7230_v48  ;;  %vm7679_vm2 = vnez %v7617_v1  ;;  %v2661_v56 = vxor.u32 2147483648, %v7160_v61  ;;  %4832 = vmatpush3.bf16.msra.mxu1 %v5050_v49 }
 0x2c9   :  { %v2653_v51 = vsel %vm7679_vm2, 0, %v2651_v46  ;;  %v2881_v45 = vpack.c.bf16 %v2459_v38, %v2355_v24  ;;  %v2562_v3 = vsel %vm2555_vm12, %v2558_v4, %v2561_v34  ;;  %v2664_v23 = vxor.u32 2147483648, %v7096_v31  ;;  %4833 = vmatprep.subr.bf16.mxu1 %v5051_v59 }
 0x2ca   :  { %v2657_v13 = vadd.s32 3, %v2653_v51  ;;  %v2754_v44 = vsub.s32 4, %v7162_v17  ;;  %vm2552_vm5 = vweird.f32 %v6641_v57  ;;  %v2858_v47 = vsub.s32 4, %v7092_v18 }
 0x2cb   :  { %4792 = vmatmul.mubr.bf16.gmra.mxu1 %v2881_v45  ;;  %v2563_v63 = vsel %vm2552_vm5, nan, %v2562_v3  ;;  %vm2656_vm1 = vweird.f32 %v6612_v33  ;;  %vm7680_vm0 = vcmp.lt.s32.totalorder %v6868_v28, 0  ;;  %v2765_v9 = vxor.u32 2147483648, %v5145_v36 }
 0x2cc   :  { %v2658_v42 = vand.u32 3, %v2657_v13  ;;  %v2755_v1 = vsel %vm2670_vm14, %v2754_v44, %v7162_v17  ;;  %v2859_v6 = vsel %vm7680_vm0, %v2858_v47, %v7092_v18  ;;  %v2768_v5 = vxor.u32 2147483648, %v5143_v7  ;;  %4834 = vmatpush3.bf16.msra.mxu1 %v5051_v59 }
 0x2cd   :  { %v2757_v48 = vsel %vm7249_vm8, 0, %v2755_v1  ;;  %v2861_v17 = vsel %vm7185_vm11, 0, %v2859_v6  ;;  %v2869_v60 = vxor.u32 2147483648, %v7329_v15  ;;  %vm2760_vm15 = vweird.f32 %v6882_v43  ;;  %v5049_v43 = vld [vmem:[#allocation2 + $0x40] sm:$0xff]  }
 0x2ce   :  { %vm2659_vm9 = vcmp.lt.s32.totalorder %v2658_v42, 2  ;;  %vm2660_vm7 = vcmp.eq.s32.totalorder %v2658_v42, 0  ;;  %vm2663_vm6 = vcmp.eq.s32.totalorder %v2658_v42, 2  ;;  %v2761_v62 = vadd.s32 3, %v2757_v48  ;;  %4813 = vmatprep.subr.bf16.mxu0 %v5049_v43 }
 0x2cf   :  { %v2662_v0 = vsel %vm2660_vm7, %v7096_v31, %v2661_v56  ;;  %v2665_v57 = vsel %vm2663_vm6, %v2664_v23, %v7160_v61  ;;  %v2865_v50 = vadd.s32 3, %v2861_v17  ;;  %v2872_v31 = vxor.u32 2147483648, %v7291_v26  ;;  %4814 = vmatpush3.bf16.msra.mxu0 %v5049_v43 }
 0x2d0   :  { %v2666_v33 = vsel %vm2659_vm9, %v2662_v0, %v2665_v57  ;;  %v2762_v19 = vand.u32 3, %v2761_v62  ;;  %vm2864_vm10 = vweird.f32 %v6868_v28  ;;  %v5053_v28 = vld [vmem:[#allocation2 + $0xa0] sm:$0xff]   ;;  %vm4171_vm12 = vcmask 64512  }
 0x2d1   :  { %v2667_v30 = vsel %vm2656_vm1, nan, %v2666_v33  ;;  %v2866_v61 = vand.u32 3, %v2865_v50 }
 0x2d2   :  { %v2882_v14 = vpack.c.bf16 %v2667_v30, %v2563_v63  ;;  %vm2764_vm14 = vcmp.eq.s32.totalorder %v2762_v19, 0  ;;  %vm2767_vm8 = vcmp.eq.s32.totalorder %v2762_v19, 2  ;;  %vm2763_vm4 = vcmp.lt.s32.totalorder %v2762_v19, 2 }
 0x2d3   :  { %v2766_v18 = vsel %vm2764_vm14, %v5143_v7, %v2765_v9  ;;  %v2769_v35 = vsel %vm2767_vm8, %v2768_v5, %v5145_v36  ;;  %vm2868_vm3 = vcmp.eq.s32.totalorder %v2866_v61, 0  ;;  %vm2871_vm11 = vcmp.eq.s32.totalorder %v2866_v61, 2 }
 0x2d4   :  { %4795 = vmatprep.mubr.bf16.mxu1 %v2882_v14  ;;  %v2770_v11 = vsel %vm2763_vm4, %v2766_v18, %v2769_v35  ;;  %vm2867_vm13 = vcmp.lt.s32.totalorder %v2866_v61, 2  ;;  %v2870_v25 = vsel %vm2868_vm3, %v7291_v26, %v2869_v60  ;;  %v2873_v52 = vsel %vm2871_vm11, %v2872_v31, %v7329_v15  ;;  %v5052_v26 = vld [vmem:[#allocation2 + $0xa8] sm:$0xff]  }
 0x2d5   :  { %v2771_v27 = vsel %vm2760_vm15, nan, %v2770_v11  ;;  %v2874_v41 = vsel %vm2867_vm13, %v2870_v25, %v2873_v52  ;;  %4835 = vmatprep.subr.bf16.mxu1 %v5052_v26 }
 0x2d6   :  { %v2875_v22 = vsel %vm2864_vm10, nan, %v2874_v41  ;;  %4836 = vmatpush3.bf16.msra.mxu1 %v5052_v26 }
 0x2d7   :  { %v2883_v16 = vpack.c.bf16 %v2875_v22, %v2771_v27  ;;  %4837 = vmatprep.subr.bf16.mxu1 %v5053_v28 }
 0x2d9   :  { %4796 = vmatmul.mubr.bf16.gmra.mxu1 %v2883_v16 }
 0x2da   :  { %4838 = vmatpush3.bf16.msra.mxu1 %v5053_v28 }
 0x2db   :  { %4839 = vmatprep.subr.bf16.mxu1 %v5054_v20 }
 0x2de   :  { %4840 = vmatpush3.bf16.msra.mxu1 %v5054_v20 }
 0x2e5   :  { %v4745_v10 = vpop.f32.mrf.mxu0 }
 0x2e7   :  { %v2970_v37 = vpop.f32.mrf.mxu0 }
 0x2ea   :  { %v4748_v55 = vpop.f32.mrf.mxu0 }
 0x2ec   :  { %v2980_v2 = vpop.f32.mrf.mxu0 }
 0x2ee   :  { %v4751_v38 = vpop.f32.mrf.mxu0 }
 0x2f0   :  { %v2990_v56 = vpop.f32.mrf.mxu0 }
 0x2f2   :  { %v4754_v23 = vpop.f32.mrf.mxu0 }
 0x2f4   :  { %v3000_v42 = vpop.f32.mrf.mxu0 }
 0x2f6   :  { %v4757_v0 = vpop.f32.mrf.mxu0 }
 0x2f8   :  { %v3010_v17 = vpop.f32.mrf.mxu0 }
 0x2fb   :  { %v4760_v31 = vpop.f32.mrf.mxu0 }
 0x2fd   :  { %v3020_v35 = vpop.f32.mrf.mxu0 }
 0x2ff   :  { %v4763_v41 = vpop.f32.mrf.mxu0 }
 0x301   :  { %v3030_v26 = vpop.f32.mrf.mxu0 }
 0x361   :  { %v4785_v40 = vpop.f32.mrf.mxu1 }
 0x362   :  { %v3140_v39 = vadd.f32 %v4785_v40, %v2980_v2  ;;  %v4766_v40 = vpop.f32.mrf.mxu0 }
 0x363   :  { %v3131_v15 = vpop.f32.mrf.mxu1 }
 0x364   :  { %v3132_v21 = vadd.f32 %v3131_v15, %v2970_v37  ;;  %v3201_v29 = vadd.f32 %v7371_v58, %v3140_v39  ;;  %v3040_v39 = vpop.f32.mrf.mxu0 }
 0x365   :  { %v4786_v54 = vpop.f32.mrf.mxu1 }
 0x366   :  { %v3143_v24 = vadd.f32 %v4786_v54, %v4748_v55  ;;  %v3199_v53 = vadd.f32 %v7371_v58, %v3132_v21  ;;  %v3217_v45 = vmax.f32 %v3201_v29, 0.0 }
 0x367   :  { %v3134_v7 = vpop.f32.mrf.mxu1 }
 0x368   :  { %v3202_v8 = vadd.f32 %v7371_v58, %v3143_v24  ;;  %v3135_v36 = vadd.f32 %v4745_v10, %v3134_v7  ;;  %v3215_v34 = vmax.f32 %v3199_v53, 0.0 }
 0x36a   :  { %v3200_v4 = vadd.f32 %v7371_v58, %v3135_v36  ;;  %v3218_v46 = vmax.f32 %v3202_v8, 0.0 }
 0x36c   :  { %v3216_v51 = vmax.f32 %v3200_v4, 0.0  ;;  %v3232_v13 = vpack.c.bf16 %v3218_v46, %v3217_v45 }
 0x36e   :  { %v3231_v3 = vpack.c.bf16 %v3216_v51, %v3215_v34 }
 0x370   :  { %4815 = vmatprep.mubr.bf16.mxu0 %v3231_v3 }
 0x371   :  { %4816 = vmatmul.mubr.bf16.vlgmr.msra.gmra.mxu0 %v3232_v13 }
 0x379   :  { %v4789_v44 = vpop.f32.mrf.mxu1 }
 0x37a   :  { %v3156_v1 = vadd.f32 %v4789_v44, %v3000_v42  ;;  %v5055_v44 = vld [vmem:[#allocation2 + $0x90] sm:$0xff]   ;;  %v5056_v42 = vld [vmem:[#allocation2 + $0x88] sm:$0xff]  }
 0x37b   :  { %v3147_v47 = vpop.f32.mrf.mxu1  ;;  %4841 = vmatprep.subr.bf16.mxu1 %v5055_v44 }
 0x37c   :  { %v3148_v63 = vadd.f32 %v3147_v47, %v2990_v56  ;;  %v3205_v5 = vadd.f32 %v7371_v58, %v3156_v1  ;;  %4842 = vmatpush3.bf16.msra.mxu1 %v5055_v44  ;;  %v5057_v47 = vld [vmem:[#allocation2 + $0x80] sm:$0xff]   ;;  %v5059_v1 = vld [vmem:[#allocation2 + $0xf0] sm:$0xff]  }
 0x37d   :  { %v4790_v48 = vpop.f32.mrf.mxu1  ;;  %4843 = vmatprep.subr.bf16.mxu1 %v5056_v42 }
 0x37e   :  { %v3159_v57 = vadd.f32 %v4790_v48, %v4754_v23  ;;  %v3203_v6 = vadd.f32 %v7371_v58, %v3148_v63  ;;  %v3221_v60 = vmax.f32 %v3205_v5, 0.0  ;;  %v5058_v63 = vld [vmem:[#allocation2 + $0xf8] sm:$0xff]   ;;  %v5061_v48 = vld [vmem:[#allocation2 + $0xe0] sm:$0xff]  }
 0x37f   :  { %v3150_v62 = vpop.f32.mrf.mxu1  ;;  %4863 = vmatprep.subr.bf16.mxu0 %v5058_v63 }
 0x380   :  { %v3206_v33 = vadd.f32 %v7371_v58, %v3159_v57  ;;  %v3151_v9 = vadd.f32 %v4751_v38, %v3150_v62  ;;  %v3219_v50 = vmax.f32 %v3203_v6, 0.0  ;;  %4844 = vmatpush3.bf16.msra.mxu1 %v5056_v42  ;;  %4864 = vmatpush3.bf16.msra.mxu0 %v5058_v63  ;;  %v4325_v6 = vld [vmem:[%s7439_s5 + $0x1] ss:$0 sm:$0xff]  ;;  %v5063_v42 = vld [vmem:[#allocation2 + $0xd0] sm:$0xff]  }
 0x381   :  { %4845 = vmatprep.subr.bf16.mxu1 %v5057_v47  ;;  %4865 = vmatprep.subr.bf16.mxu0 %v5059_v1  ;;  %v5065_v63 = vld [vmem:[#allocation2 + $0xc0] sm:$0xff]  }
 0x382   :  { %v3204_v30 = vadd.f32 %v7371_v58, %v3151_v9  ;;  %v3222_v19 = vmax.f32 %v3206_v33, 0.0 }
 0x384   :  { %v3220_v14 = vmax.f32 %v3204_v30, 0.0  ;;  %v3234_v18 = vpack.c.bf16 %v3222_v19, %v3221_v60  ;;  %4846 = vmatpush3.bf16.msra.mxu1 %v5057_v47  ;;  %4866 = vmatpush3.bf16.msra.mxu0 %v5059_v1  ;;  %v5064_v47 = vld [vmem:[#allocation2 + $0xc8] sm:$0xff]   ;;  %v5066_v1 = vld [vmem:[#allocation2 + $0x138] sm:$0xff]  }
 0x385   :  { %4895 = vmatprep.subr.bf16.mxu1 %v5066_v1 }
 0x386   :  { %v3233_v61 = vpack.c.bf16 %v3220_v14, %v3219_v50 }
 0x388   :  { %4819 = vmatprep.mubr.bf16.mxu0 %v3233_v61 }
 0x389   :  { %4820 = vmatmul.mubr.bf16.gmra.mxu0 %v3234_v18 }
 0x38b   :  { %v4793_v11 = vpop.f32.mrf.mxu1 }
 0x38c   :  { %v3172_v52 = vadd.f32 %v4793_v11, %v3020_v35 }
 0x38d   :  { %v3163_v27 = vpop.f32.mrf.mxu1 }
 0x38e   :  { %v3164_v25 = vadd.f32 %v3163_v27, %v3010_v17  ;;  %v3209_v59 = vadd.f32 %v7371_v58, %v3172_v52 }
 0x38f   :  { %v4794_v22 = vpop.f32.mrf.mxu1 }
 0x390   :  { %v3175_v16 = vadd.f32 %v4794_v22, %v4760_v31  ;;  %v3207_v12 = vadd.f32 %v7371_v58, %v3164_v25  ;;  %v3225_v55 = vmax.f32 %v3209_v59, 0.0 }
 0x391   :  { %v3166_v32 = vpop.f32.mrf.mxu1 }
 0x392   :  { %v3210_v43 = vadd.f32 %v7371_v58, %v3175_v16  ;;  %v3167_v49 = vadd.f32 %v4757_v0, %v3166_v32  ;;  %v3223_v10 = vmax.f32 %v3207_v12, 0.0  ;;  %v5062_v0 = vld [vmem:[#allocation2 + $0xd8] sm:$0xff]  }
 0x394   :  { %v3208_v28 = vadd.f32 %v7371_v58, %v3167_v49  ;;  %v3226_v20 = vmax.f32 %v3210_v43, 0.0 }
 0x396   :  { %v3224_v37 = vmax.f32 %v3208_v28, 0.0  ;;  %v3236_v15 = vpack.c.bf16 %v3226_v20, %v3225_v55 }
 0x398   :  { %v3235_v2 = vpack.c.bf16 %v3224_v37, %v3223_v10 }
 0x399   :  { %v4797_v21 = vpop.f32.mrf.mxu1 }
 0x39a   :  { %4823 = vmatprep.mubr.bf16.mxu0 %v3235_v2  ;;  %v3188_v7 = vadd.f32 %v4797_v21, %v3040_v39 }
 0x39b   :  { %4824 = vmatmul.mubr.bf16.gmra.mxu0 %v3236_v15  ;;  %v3179_v54 = vpop.f32.mrf.mxu1 }
 0x39c   :  { %v3180_v24 = vadd.f32 %v3179_v54, %v3030_v26  ;;  %v3213_v38 = vadd.f32 %v7371_v58, %v3188_v7 }
 0x39d   :  { %v4798_v53 = vpop.f32.mrf.mxu1 }
 0x39e   :  { %v3191_v8 = vadd.f32 %v4798_v53, %v4766_v40  ;;  %v3211_v29 = vadd.f32 %v7371_v58, %v3180_v24  ;;  %v3229_v13 = vmax.f32 %v3213_v38, 0.0 }
 0x39f   :  { %v3182_v36 = vpop.f32.mrf.mxu1 }
 0x3a0   :  { %v3214_v4 = vadd.f32 %v7371_v58, %v3191_v8  ;;  %v3183_v46 = vadd.f32 %v4763_v41, %v3182_v36  ;;  %v3227_v45 = vmax.f32 %v3211_v29, 0.0 }
 0x3a2   :  { %v3212_v34 = vadd.f32 %v7371_v58, %v3183_v46  ;;  %v3230_v51 = vmax.f32 %v3214_v4, 0.0  ;;  %v5060_v58 = vld [vmem:[#allocation2 + $0xe8] sm:$0xff]  }
 0x3a3   :  { %4867 = vmatprep.subr.bf16.mxu0 %v5060_v58 }
 0x3a4   :  { %v3228_v3 = vmax.f32 %v3212_v34, 0.0  ;;  %v3238_v23 = vpack.c.bf16 %v3230_v51, %v3229_v13  ;;  %4868 = vmatpush3.bf16.msra.mxu0 %v5060_v58  ;;  %v5067_v58 = vld [vmem:[#allocation2 + $0x130] sm:$0xff]  }
 0x3a5   :  { %4869 = vmatprep.subr.bf16.mxu0 %v5061_v48 }
 0x3a6   :  { %v3237_v56 = vpack.c.bf16 %v3228_v3, %v3227_v45 }
 0x3a8   :  { %4827 = vmatprep.mubr.bf16.mxu0 %v3237_v56  ;;  %4870 = vmatpush3.bf16.msra.mxu0 %v5061_v48  ;;  %v5068_v48 = vld [vmem:[#allocation2 + $0x128] sm:$0xff]  }
 0x3a9   :  { %4828 = vmatmul.mubr.bf16.gmra.mxu0 %v3238_v23  ;;  %4871 = vmatprep.subr.bf16.mxu0 %v5062_v0 }
 0x3ac   :  { %4872 = vmatpush3.bf16.msra.mxu0 %v5062_v0  ;;  %v5069_v0 = vld [vmem:[#allocation2 + $0x120] sm:$0xff]  }
 0x3ad   :  { %4873 = vmatprep.subr.bf16.mxu0 %v5063_v42 }
 0x3b0   :  { %4874 = vmatpush3.bf16.msra.mxu0 %v5063_v42 }
 0x3b1   :  { %4875 = vmatprep.subr.bf16.mxu0 %v5064_v47 }
 0x3b4   :  { %4876 = vmatpush3.bf16.msra.mxu0 %v5064_v47  ;;  %v5071_v47 = vld [vmem:[#allocation2 + $0x110] sm:$0xff]  }
 0x3b5   :  { %4877 = vmatprep.subr.bf16.mxu0 %v5065_v63 }
 0x3b8   :  { %4878 = vmatpush3.bf16.msra.mxu0 %v5065_v63  ;;  %v5072_v63 = vld [vmem:[#allocation2 + $0x108] sm:$0xff]  }
 0x431   :  { %v4817_v57 = vpop.f32.mrf.mxu0 }
 0x432   :  { %v3352_v17 = vadd.f32 %v4817_v57, %v4325_v6  ;;  %v5070_v57 = vld [vmem:[#allocation2 + $0x118] sm:$0xff]  }
 0x433   :  { %v3343_v62 = vpop.f32.mrf.mxu0 }
 0x434   :  { %v3344_v9 = vadd.f32 %v4325_v6, %v3343_v62  ;;  %v3408_v31 = vmax.f32 %v3352_v17, 0.0 }
 0x435   :  { %v4818_v33 = vpop.f32.mrf.mxu0 }
 0x436   :  { %v3355_v5 = vadd.f32 %v4818_v33, %v4325_v6  ;;  %v3406_v14 = vmax.f32 %v3344_v9, 0.0  ;;  %v4334_v33 = vld [vmem:[%s7439_s5 + $0x2] ss:$0 sm:$0xff] }
 0x437   :  { %v3346_v30 = vpop.f32.mrf.mxu0 }
 0x438   :  { %v3347_v19 = vadd.f32 %v4325_v6, %v3346_v30  ;;  %v3409_v50 = vmax.f32 %v3355_v5, 0.0 }
 0x43a   :  { %v3407_v60 = vmax.f32 %v3347_v19, 0.0  ;;  %v3423_v18 = vpack.c.bf16 %v3409_v50, %v3408_v31 }
 0x43c   :  { %v3422_v61 = vpack.c.bf16 %v3407_v60, %v3406_v14 }
 0x43e   :  { %4847 = vmatprep.mubr.bf16.mxu1 %v3422_v61 }
 0x43f   :  { %4848 = vmatmul.mubr.bf16.vlgmr.msra.gmra.mxu1 %v3423_v18 }
 0x440   :  { %4896 = vmatpush3.bf16.msra.mxu1 %v5066_v1  ;;  %v5073_v1 = vld [vmem:[#allocation2 + $0x100] sm:$0xff]  }
 0x441   :  { %4897 = vmatprep.subr.bf16.mxu1 %v5067_v58 }
 0x444   :  { %4898 = vmatpush3.bf16.msra.mxu1 %v5067_v58  ;;  %v5074_v58 = vld [vmem:[%s7440_s6 + $0x38] sm:$0xff]  }
 0x445   :  { %4899 = vmatprep.subr.bf16.mxu1 %v5068_v48  ;;  %4927 = vmatprep.subr.bf16.mxu0 %v5074_v58 }
 0x448   :  { %4900 = vmatpush3.bf16.msra.mxu1 %v5068_v48  ;;  %v5075_v48 = vld [vmem:[%s7440_s6 + $0x30] sm:$0xff]  }
 0x449   :  { %v4821_v35 = vpop.f32.mrf.mxu0  ;;  %4901 = vmatprep.subr.bf16.mxu1 %v5069_v0 }
 0x44a   :  { %v3368_v41 = vadd.f32 %v4821_v35, %v4325_v6 }
 0x44b   :  { %v3359_v11 = vpop.f32.mrf.mxu0 }
 0x44c   :  { %v3360_v25 = vadd.f32 %v4325_v6, %v3359_v11  ;;  %v3412_v49 = vmax.f32 %v3368_v41, 0.0  ;;  %4902 = vmatpush3.bf16.msra.mxu1 %v5069_v0  ;;  %v5076_v0 = vld [vmem:[%s7440_s6 + $0x28] sm:$0xff]  }
 0x44d   :  { %v4822_v27 = vpop.f32.mrf.mxu0  ;;  %4903 = vmatprep.subr.bf16.mxu1 %v5070_v57 }
 0x44e   :  { %v3371_v52 = vadd.f32 %v4822_v27, %v4325_v6  ;;  %v3410_v12 = vmax.f32 %v3360_v25, 0.0 }
 0x44f   :  { %v3362_v22 = vpop.f32.mrf.mxu0 }
 0x450   :  { %v3363_v16 = vadd.f32 %v4325_v6, %v3362_v22  ;;  %v3413_v32 = vmax.f32 %v3371_v52, 0.0  ;;  %4904 = vmatpush3.bf16.msra.mxu1 %v5070_v57  ;;  %v5077_v57 = vld [vmem:[%s7440_s6 + $0x20] sm:$0xff]  }
 0x451   :  { %4905 = vmatprep.subr.bf16.mxu1 %v5071_v47 }
 0x452   :  { %v3411_v43 = vmax.f32 %v3363_v16, 0.0  ;;  %v3425_v26 = vpack.c.bf16 %v3413_v32, %v3412_v49 }
 0x454   :  { %v3424_v59 = vpack.c.bf16 %v3411_v43, %v3410_v12  ;;  %4906 = vmatpush3.bf16.msra.mxu1 %v5071_v47 }
 0x455   :  { %4907 = vmatprep.subr.bf16.mxu1 %v5072_v63 }
 0x456   :  { %4851 = vmatprep.mubr.bf16.mxu1 %v3424_v59 }
 0x457   :  { %4852 = vmatmul.mubr.bf16.gmra.mxu1 %v3425_v26 }
 0x458   :  { %4908 = vmatpush3.bf16.msra.mxu1 %v5072_v63  ;;  %v5079_v63 = vld [vmem:[%s7440_s6 + $0x10] sm:$0xff]  }
 0x459   :  { %4909 = vmatprep.subr.bf16.mxu1 %v5073_v1 }
 0x45b   :  { %v4825_v28 = vpop.f32.mrf.mxu0 }
 0x45c   :  { %v3384_v40 = vadd.f32 %v4825_v28, %v4325_v6  ;;  %4910 = vmatpush3.bf16.msra.mxu1 %v5073_v1  ;;  %v5080_v1 = vld [vmem:[%s7440_s6 + $0x8] sm:$0xff]  }
 0x45d   :  { %v3375_v20 = vpop.f32.mrf.mxu0 }
 0x45e   :  { %v3376_v37 = vadd.f32 %v4325_v6, %v3375_v20  ;;  %v3416_v24 = vmax.f32 %v3384_v40, 0.0 }
 0x45f   :  { %v4826_v10 = vpop.f32.mrf.mxu0 }
 0x460   :  { %v3387_v55 = vadd.f32 %v4826_v10, %v4325_v6  ;;  %v3414_v39 = vmax.f32 %v3376_v37, 0.0 }
 0x461   :  { %v3378_v2 = vpop.f32.mrf.mxu0 }
 0x462   :  { %v3379_v15 = vadd.f32 %v4325_v6, %v3378_v2  ;;  %v3417_v21 = vmax.f32 %v3387_v55, 0.0 }
 0x464   :  { %v3415_v54 = vmax.f32 %v3379_v15, 0.0  ;;  %v3427_v53 = vpack.c.bf16 %v3417_v21, %v3416_v24 }
 0x466   :  { %v3426_v7 = vpack.c.bf16 %v3415_v54, %v3414_v39 }
 0x468   :  { %4855 = vmatprep.mubr.bf16.mxu1 %v3426_v7 }
 0x469   :  { %4856 = vmatmul.mubr.bf16.gmra.mxu1 %v3427_v53  ;;  %v4829_v8 = vpop.f32.mrf.mxu0 }
 0x46a   :  { %v3400_v38 = vadd.f32 %v4829_v8, %v4325_v6 }
 0x46b   :  { %v3391_v36 = vpop.f32.mrf.mxu0 }
 0x46c   :  { %v3392_v4 = vadd.f32 %v4325_v6, %v3391_v36  ;;  %v3420_v56 = vmax.f32 %v3400_v38, 0.0 }
 0x46d   :  { %v4830_v29 = vpop.f32.mrf.mxu0 }
 0x46e   :  { %v3403_v46 = vadd.f32 %v4830_v29, %v4325_v6  ;;  %v3418_v3 = vmax.f32 %v3392_v4, 0.0 }
 0x46f   :  { %v3394_v34 = vpop.f32.mrf.mxu0 }
 0x470   :  { %v3395_v51 = vadd.f32 %v4325_v6, %v3394_v34  ;;  %v3421_v45 = vmax.f32 %v3403_v46, 0.0 }
 0x472   :  { %v3419_v13 = vmax.f32 %v3395_v51, 0.0  ;;  %v3429_v44 = vpack.c.bf16 %v3421_v45, %v3420_v56 }
 0x474   :  { %v3428_v23 = vpack.c.bf16 %v3419_v13, %v3418_v3 }
 0x476   :  { %4859 = vmatprep.mubr.bf16.mxu1 %v3428_v23 }
 0x477   :  { %4860 = vmatmul.mubr.bf16.gmra.mxu1 %v3429_v44 }
 0x4ff   :  { %v4849_v62 = vpop.f32.mrf.mxu1 }
 0x500   :  { %v3543_v30 = vadd.f32 %v4849_v62, %v4334_v33  ;;  %v5078_v62 = vld [vmem:[%s7440_s6 + $0x18] sm:$0xff]  }
 0x501   :  { %v3534_v6 = vpop.f32.mrf.mxu1 }
 0x502   :  { %v3535_v5 = vadd.f32 %v4334_v33, %v3534_v6  ;;  %v3599_v61 = vmax.f32 %v3543_v30, 0.0 }
 0x503   :  { %v4850_v9 = vpop.f32.mrf.mxu1 }
 0x504   :  { %v3546_v17 = vadd.f32 %v4850_v9, %v4334_v33  ;;  %v3597_v60 = vmax.f32 %v3535_v5, 0.0  ;;  %v4343_v9 = vld [vmem:[%s7439_s5 + $0x3] ss:$0 sm:$0xff] }
 0x505   :  { %v3537_v19 = vpop.f32.mrf.mxu1 }
 0x506   :  { %v3538_v50 = vadd.f32 %v4334_v33, %v3537_v19  ;;  %v3600_v14 = vmax.f32 %v3546_v17, 0.0 }
 0x508   :  { %v3598_v31 = vmax.f32 %v3538_v50, 0.0  ;;  %v3614_v35 = vpack.c.bf16 %v3600_v14, %v3599_v61 }
 0x50a   :  { %v3613_v18 = vpack.c.bf16 %v3598_v31, %v3597_v60 }
 0x50c   :  { %4879 = vmatprep.mubr.bf16.mxu0 %v3613_v18 }
 0x50d   :  { %4880 = vmatmul.mubr.bf16.vlgmr.msra.gmra.mxu0 %v3614_v35 }
 0x50e   :  { %4928 = vmatpush3.bf16.msra.mxu0 %v5074_v58  ;;  %v5081_v58 = vld [vmem:[%s7440_s6] sm:$0xff]  }
 0x50f   :  { %4929 = vmatprep.subr.bf16.mxu0 %v5075_v48 }
 0x512   :  { %4930 = vmatpush3.bf16.msra.mxu0 %v5075_v48 }
 0x513   :  { %4931 = vmatprep.subr.bf16.mxu0 %v5076_v0 }
 0x516   :  { %4932 = vmatpush3.bf16.msra.mxu0 %v5076_v0 }
 0x517   :  { %v4853_v11 = vpop.f32.mrf.mxu1  ;;  %4933 = vmatprep.subr.bf16.mxu0 %v5077_v57 }
 0x518   :  { %v3559_v22 = vadd.f32 %v4853_v11, %v4334_v33 }
 0x519   :  { %v3550_v27 = vpop.f32.mrf.mxu1 }
 0x51a   :  { %v3551_v52 = vadd.f32 %v4334_v33, %v3550_v27  ;;  %v3603_v59 = vmax.f32 %v3559_v22, 0.0  ;;  %4934 = vmatpush3.bf16.msra.mxu0 %v5077_v57  ;;  %v4352_v57 = vld [vmem:[%s7439_s5 + $0x4] ss:$0 sm:$0xff] }
 0x51b   :  { %v4854_v25 = vpop.f32.mrf.mxu1  ;;  %4935 = vmatprep.subr.bf16.mxu0 %v5078_v62 }
 0x51c   :  { %v3562_v41 = vadd.f32 %v4854_v25, %v4334_v33  ;;  %v3601_v43 = vmax.f32 %v3551_v52, 0.0 }
 0x51d   :  { %v3553_v16 = vpop.f32.mrf.mxu1 }
 0x51e   :  { %v3554_v32 = vadd.f32 %v4334_v33, %v3553_v16  ;;  %v3604_v12 = vmax.f32 %v3562_v41, 0.0  ;;  %4936 = vmatpush3.bf16.msra.mxu0 %v5078_v62 }
 0x51f   :  { %4937 = vmatprep.subr.bf16.mxu0 %v5079_v63 }
 0x520   :  { %v3602_v49 = vmax.f32 %v3554_v32, 0.0  ;;  %v3616_v28 = vpack.c.bf16 %v3604_v12, %v3603_v59 }
 0x522   :  { %v3615_v26 = vpack.c.bf16 %v3602_v49, %v3601_v43  ;;  %4938 = vmatpush3.bf16.msra.mxu0 %v5079_v63 }
 0x523   :  { %4939 = vmatprep.subr.bf16.mxu0 %v5080_v1 }
 0x524   :  { %4883 = vmatprep.mubr.bf16.mxu0 %v3615_v26 }
 0x525   :  { %4884 = vmatmul.mubr.bf16.gmra.mxu0 %v3616_v28 }
 0x526   :  { %4940 = vmatpush3.bf16.msra.mxu0 %v5080_v1 }
 0x527   :  { %4941 = vmatprep.subr.bf16.mxu0 %v5081_v58 }
 0x529   :  { %v4857_v20 = vpop.f32.mrf.mxu1 }
 0x52a   :  { %v3575_v2 = vadd.f32 %v4857_v20, %v4334_v33  ;;  %4942 = vmatpush3.bf16.msra.mxu0 %v5081_v58 }
 0x52b   :  { %v3566_v10 = vpop.f32.mrf.mxu1 }
 0x52c   :  { %v3567_v55 = vadd.f32 %v4334_v33, %v3566_v10  ;;  %v3607_v7 = vmax.f32 %v3575_v2, 0.0 }
 0x52d   :  { %v4858_v37 = vpop.f32.mrf.mxu1 }
 0x52e   :  { %v3578_v40 = vadd.f32 %v4858_v37, %v4334_v33  ;;  %v3605_v54 = vmax.f32 %v3567_v55, 0.0 }
 0x52f   :  { %v3569_v15 = vpop.f32.mrf.mxu1 }
 0x530   :  { %v3570_v21 = vadd.f32 %v4334_v33, %v3569_v15  ;;  %v3608_v39 = vmax.f32 %v3578_v40, 0.0 }
 0x532   :  { %v3606_v24 = vmax.f32 %v3570_v21, 0.0  ;;  %v3618_v8 = vpack.c.bf16 %v3608_v39, %v3607_v7 }
 0x534   :  { %v3617_v53 = vpack.c.bf16 %v3606_v24, %v3605_v54 }
 0x536   :  { %4887 = vmatprep.mubr.bf16.mxu0 %v3617_v53 }
 0x537   :  { %4888 = vmatmul.mubr.bf16.gmra.mxu0 %v3618_v8  ;;  %v4861_v36 = vpop.f32.mrf.mxu1 }
 0x538   :  { %v3591_v34 = vadd.f32 %v4861_v36, %v4334_v33 }
 0x539   :  { %v3582_v29 = vpop.f32.mrf.mxu1 }
 0x53a   :  { %v3583_v46 = vadd.f32 %v4334_v33, %v3582_v29  ;;  %v3611_v23 = vmax.f32 %v3591_v34, 0.0 }
 0x53b   :  { %v4862_v4 = vpop.f32.mrf.mxu1 }
 0x53c   :  { %v3594_v38 = vadd.f32 %v4862_v4, %v4334_v33  ;;  %v3609_v13 = vmax.f32 %v3583_v46, 0.0 }
 0x53d   :  { %v3585_v51 = vpop.f32.mrf.mxu1 }
 0x53e   :  { %v3586_v45 = vadd.f32 %v4334_v33, %v3585_v51  ;;  %v3612_v3 = vmax.f32 %v3594_v38, 0.0 }
 0x540   :  { %v3610_v56 = vmax.f32 %v3586_v45, 0.0  ;;  %v3620_v42 = vpack.c.bf16 %v3612_v3, %v3611_v23 }
 0x542   :  { %v3619_v44 = vpack.c.bf16 %v3610_v56, %v3609_v13 }
 0x544   :  { %4891 = vmatprep.mubr.bf16.mxu0 %v3619_v44 }
 0x545   :  { %4892 = vmatmul.mubr.bf16.gmra.mxu0 %v3620_v42 }
 0x5cd   :  { %v4881_v6 = vpop.f32.mrf.mxu0 }
 0x5ce   :  { %v3734_v19 = vadd.f32 %v4881_v6, %v4343_v9 }
 0x5cf   :  { %v3725_v33 = vpop.f32.mrf.mxu0 }
 0x5d0   :  { %v3726_v17 = vadd.f32 %v4343_v9, %v3725_v33  ;;  %v3790_v18 = vmax.f32 %v3734_v19, 0.0 }
 0x5d1   :  { %v4882_v5 = vpop.f32.mrf.mxu0 }
 0x5d2   :  { %v3737_v30 = vadd.f32 %v4882_v5, %v4343_v9  ;;  %v3788_v31 = vmax.f32 %v3726_v17, 0.0 }
 0x5d3   :  { %v3728_v50 = vpop.f32.mrf.mxu0 }
 0x5d4   :  { %v3729_v14 = vadd.f32 %v4343_v9, %v3728_v50  ;;  %v3791_v60 = vmax.f32 %v3737_v30, 0.0 }
 0x5d6   :  { %v3789_v61 = vmax.f32 %v3729_v14, 0.0  ;;  %v3805_v11 = vpack.c.bf16 %v3791_v60, %v3790_v18 }
 0x5d8   :  { %v3804_v35 = vpack.c.bf16 %v3789_v61, %v3788_v31 }
 0x5da   :  { %4911 = vmatprep.mubr.bf16.mxu1 %v3804_v35 }
 0x5db   :  { %4912 = vmatmul.mubr.bf16.vlgmr.msra.gmra.mxu1 %v3805_v11 }
 0x5e5   :  { %v4885_v27 = vpop.f32.mrf.mxu0 }
 0x5e6   :  { %v3750_v16 = vadd.f32 %v4885_v27, %v4343_v9 }
 0x5e7   :  { %v3741_v25 = vpop.f32.mrf.mxu0 }
 0x5e8   :  { %v3742_v41 = vadd.f32 %v4343_v9, %v3741_v25  ;;  %v3794_v26 = vmax.f32 %v3750_v16, 0.0 }
 0x5e9   :  { %v4886_v52 = vpop.f32.mrf.mxu0 }
 0x5ea   :  { %v3753_v22 = vadd.f32 %v4886_v52, %v4343_v9  ;;  %v3792_v49 = vmax.f32 %v3742_v41, 0.0 }
 0x5eb   :  { %v3744_v32 = vpop.f32.mrf.mxu0 }
 0x5ec   :  { %v3745_v12 = vadd.f32 %v4343_v9, %v3744_v32  ;;  %v3795_v43 = vmax.f32 %v3753_v22, 0.0 }
 0x5ee   :  { %v3793_v59 = vmax.f32 %v3745_v12, 0.0  ;;  %v3807_v20 = vpack.c.bf16 %v3795_v43, %v3794_v26 }
 0x5f0   :  { %v3806_v28 = vpack.c.bf16 %v3793_v59, %v3792_v49 }
 0x5f2   :  { %4915 = vmatprep.mubr.bf16.mxu1 %v3806_v28 }
 0x5f3   :  { %4916 = vmatmul.mubr.bf16.gmra.mxu1 %v3807_v20 }
 0x5f7   :  { %v4889_v10 = vpop.f32.mrf.mxu0 }
 0x5f8   :  { %v3766_v15 = vadd.f32 %v4889_v10, %v4343_v9 }
 0x5f9   :  { %v3757_v37 = vpop.f32.mrf.mxu0 }
 0x5fa   :  { %v3758_v40 = vadd.f32 %v4343_v9, %v3757_v37  ;;  %v3798_v53 = vmax.f32 %v3766_v15, 0.0 }
 0x5fb   :  { %v4890_v55 = vpop.f32.mrf.mxu0 }
 0x5fc   :  { %v3769_v2 = vadd.f32 %v4890_v55, %v4343_v9  ;;  %v3796_v24 = vmax.f32 %v3758_v40, 0.0 }
 0x5fd   :  { %v3760_v21 = vpop.f32.mrf.mxu0 }
 0x5fe   :  { %v3761_v39 = vadd.f32 %v4343_v9, %v3760_v21  ;;  %v3799_v54 = vmax.f32 %v3769_v2, 0.0 }
 0x600   :  { %v3797_v7 = vmax.f32 %v3761_v39, 0.0  ;;  %v3809_v36 = vpack.c.bf16 %v3799_v54, %v3798_v53 }
 0x602   :  { %v3808_v8 = vpack.c.bf16 %v3797_v7, %v3796_v24 }
 0x604   :  { %4919 = vmatprep.mubr.bf16.mxu1 %v3808_v8 }
 0x605   :  { %4920 = vmatmul.mubr.bf16.gmra.mxu1 %v3809_v36  ;;  %v4893_v29 = vpop.f32.mrf.mxu0 }
 0x606   :  { %v3782_v51 = vadd.f32 %v4893_v29, %v4343_v9 }
 0x607   :  { %v3773_v4 = vpop.f32.mrf.mxu0 }
 0x608   :  { %v3774_v38 = vadd.f32 %v4343_v9, %v3773_v4  ;;  %v3802_v44 = vmax.f32 %v3782_v51, 0.0 }
 0x609   :  { %v4894_v46 = vpop.f32.mrf.mxu0 }
 0x60a   :  { %v3785_v34 = vadd.f32 %v4894_v46, %v4343_v9  ;;  %v3800_v56 = vmax.f32 %v3774_v38, 0.0 }
 0x60b   :  { %v3776_v45 = vpop.f32.mrf.mxu0 }
 0x60c   :  { %v3777_v3 = vadd.f32 %v4343_v9, %v3776_v45  ;;  %v3803_v13 = vmax.f32 %v3785_v34, 0.0 }
 0x60e   :  { %v3801_v23 = vmax.f32 %v3777_v3, 0.0  ;;  %v3811_v47 = vpack.c.bf16 %v3803_v13, %v3802_v44 }
 0x610   :  { %v3810_v42 = vpack.c.bf16 %v3801_v23, %v3800_v56  ;;  %v4361_v23 = vld [vmem:[%s7441_s7] ss:$0 sm:$0xff] }
 0x612   :  { %4923 = vmatprep.mubr.bf16.mxu1 %v3810_v42 }
 0x613   :  { %4924 = vmatmul.mubr.bf16.gmra.mxu1 %v3811_v47 }
 0x69b   :  { %v4913_v48 = vpop.f32.mrf.mxu1 }
 0x69c   :  { %v3925_v9 = vadd.f32 %v4913_v48, %v4352_v57 }
 0x69d   :  { %v3916_v0 = vpop.f32.mrf.mxu1 }
 0x69e   :  { %v3917_v6 = vadd.f32 %v4352_v57, %v3916_v0  ;;  %v3981_v14 = vmax.f32 %v3925_v9, 0.0 }
 0x69f   :  { %v4914_v62 = vpop.f32.mrf.mxu1 }
 0x6a0   :  { %v3928_v33 = vadd.f32 %v4914_v62, %v4352_v57  ;;  %v3979_v19 = vmax.f32 %v3917_v6, 0.0 }
 0x6a1   :  { %v3919_v5 = vpop.f32.mrf.mxu1 }
 0x6a2   :  { %v3920_v17 = vadd.f32 %v4352_v57, %v3919_v5  ;;  %v3982_v30 = vmax.f32 %v3928_v33, 0.0 }
 0x6a4   :  { %v3980_v50 = vmax.f32 %v3920_v17, 0.0  ;;  %v3996_v31 = vpack.c.bf16 %v3982_v30, %v3981_v14 }
 0x6a6   :  { %v3995_v60 = vpack.c.bf16 %v3980_v50, %v3979_v19 }
 0x6a8   :  { %4943 = vmatprep.mubr.bf16.mxu0 %v3995_v60 }
 0x6a9   :  { %4944 = vmatmul.mubr.bf16.vlgmr.msra.gmra.mxu0 %v3996_v31 }
 0x6b3   :  { %v4917_v61 = vpop.f32.mrf.mxu1 }
 0x6b4   :  { %v3941_v25 = vadd.f32 %v4917_v61, %v4352_v57 }
 0x6b5   :  { %v3932_v18 = vpop.f32.mrf.mxu1 }
 0x6b6   :  { %v3933_v11 = vadd.f32 %v4352_v57, %v3932_v18  ;;  %v3985_v12 = vmax.f32 %v3941_v25, 0.0 }
 0x6b7   :  { %v4918_v35 = vpop.f32.mrf.mxu1 }
 0x6b8   :  { %v3944_v27 = vadd.f32 %v4918_v35, %v4352_v57  ;;  %v3983_v16 = vmax.f32 %v3933_v11, 0.0 }
 0x6b9   :  { %v3935_v52 = vpop.f32.mrf.mxu1 }
 0x6ba   :  { %v3936_v41 = vadd.f32 %v4352_v57, %v3935_v52  ;;  %v3986_v22 = vmax.f32 %v3944_v27, 0.0 }
 0x6bc   :  { %v3984_v32 = vmax.f32 %v3936_v41, 0.0  ;;  %v3998_v49 = vpack.c.bf16 %v3986_v22, %v3985_v12 }
 0x6be   :  { %v3997_v43 = vpack.c.bf16 %v3984_v32, %v3983_v16 }
 0x6c0   :  { %4947 = vmatprep.mubr.bf16.mxu0 %v3997_v43 }
 0x6c1   :  { %4948 = vmatmul.mubr.bf16.gmra.mxu0 %v3998_v49 }
 0x6c5   :  { %v4921_v59 = vpop.f32.mrf.mxu1 }
 0x6c6   :  { %v3957_v37 = vadd.f32 %v4921_v59, %v4352_v57 }
 0x6c7   :  { %v3948_v26 = vpop.f32.mrf.mxu1 }
 0x6c8   :  { %v3949_v20 = vadd.f32 %v4352_v57, %v3948_v26  ;;  %v3989_v39 = vmax.f32 %v3957_v37, 0.0 }
 0x6c9   :  { %v4922_v28 = vpop.f32.mrf.mxu1 }
 0x6ca   :  { %v3960_v10 = vadd.f32 %v4922_v28, %v4352_v57  ;;  %v3987_v15 = vmax.f32 %v3949_v20, 0.0 }
 0x6cb   :  { %v3951_v55 = vpop.f32.mrf.mxu1 }
 0x6cc   :  { %v3952_v40 = vadd.f32 %v4352_v57, %v3951_v55  ;;  %v3990_v2 = vmax.f32 %v3960_v10, 0.0 }
 0x6ce   :  { %v3988_v21 = vmax.f32 %v3952_v40, 0.0  ;;  %v4000_v24 = vpack.c.bf16 %v3990_v2, %v3989_v39 }
 0x6d0   :  { %v3999_v54 = vpack.c.bf16 %v3988_v21, %v3987_v15 }
 0x6d2   :  { %4951 = vmatprep.mubr.bf16.mxu0 %v3999_v54 }
 0x6d3   :  { %4952 = vmatmul.mubr.bf16.gmra.mxu0 %v4000_v24  ;;  %v4925_v7 = vpop.f32.mrf.mxu1 }
 0x6d4   :  { %v3973_v4 = vadd.f32 %v4925_v7, %v4352_v57 }
 0x6d5   :  { %v3964_v53 = vpop.f32.mrf.mxu1 }
 0x6d6   :  { %v3965_v36 = vadd.f32 %v4352_v57, %v3964_v53  ;;  %v3993_v3 = vmax.f32 %v3973_v4, 0.0 }
 0x6d7   :  { %v4926_v8 = vpop.f32.mrf.mxu1 }
 0x6d8   :  { %v3976_v29 = vadd.f32 %v4926_v8, %v4352_v57  ;;  %v3991_v51 = vmax.f32 %v3965_v36, 0.0 }
 0x6d9   :  { %v3967_v46 = vpop.f32.mrf.mxu1 }
 0x6da   :  { %v3968_v38 = vadd.f32 %v4352_v57, %v3967_v46  ;;  %v3994_v34 = vmax.f32 %v3976_v29, 0.0 }
 0x6dc   :  { %v3992_v45 = vmax.f32 %v3968_v38, 0.0  ;;  %v4002_v56 = vpack.c.bf16 %v3994_v34, %v3993_v3 }
 0x6de   :  { %v4001_v13 = vpack.c.bf16 %v3992_v45, %v3991_v51 }
 0x6e0   :  { %4955 = vmatprep.mubr.bf16.mxu0 %v4001_v13 }
 0x6e1   :  { %4956 = vmatmul.mubr.bf16.gmra.mxu0 %v4002_v56 }
 0x769   :  { %v4945_v44 = vpop.f32.mrf.mxu0 }
 0x76b   :  { %v4108_v42 = vpop.f32.mrf.mxu0 }
 0x76c   :  { %v4109_v47 = vadd.f32 %v4361_v23, %v4108_v42 }
 0x76d   :  { %v4946_v63 = vpop.f32.mrf.mxu0 }
 0x76e   :  { %4172 = vst.msk [vmem:[#allocation4] sm:$0xff] %vm4171_vm12, %v4109_v47 }
 0x76f   :  { %v4111_v1 = vpop.f32.mrf.mxu0 }
 0x770   :  { %v4112_v58 = vadd.f32 %v4361_v23, %v4111_v1 }
 0x772   :  { %4173 = vst.msk [vmem:[#allocation4 + $0x8] sm:$0xff] %vm4171_vm12, %v4112_v58 }
 0x775   :  { %v4220_v48 = vld [vmem:[#allocation4] sm:$0xff] }
 0x776   :  { %4221 = vst [vmem:[%s7442_s8] sm:$0xff] %v4220_v48 }
 0x779   :  { %v4222_v0 = vld [vmem:[#allocation4 + $0x8] sm:$0xff] }
 0x77a   :  { %4223 = vst [vmem:[%s7442_s8 + $0x8] sm:$0xff] %v4222_v0 }
 0x781   :  { %v4949_v57 = vpop.f32.mrf.mxu0 }
 0x783   :  { %v4124_v62 = vpop.f32.mrf.mxu0 }
 0x785   :  { %v4950_v6 = vpop.f32.mrf.mxu0 }
 0x787   :  { %v4127_v33 = vpop.f32.mrf.mxu0 }
 0x793   :  { %v4953_v9 = vpop.f32.mrf.mxu0 }
 0x795   :  { %v4140_v5 = vpop.f32.mrf.mxu0 }
 0x797   :  { %v4954_v17 = vpop.f32.mrf.mxu0 }
 0x799   :  { %v4143_v30 = vpop.f32.mrf.mxu0 }
 0x7a1   :  { %v4957_v19 = vpop.f32.mrf.mxu0 }
 0x7a3   :  { %v4156_v50 = vpop.f32.mrf.mxu0 }
 0x7a5   :  { %v4958_v14 = vpop.f32.mrf.mxu0 }
 0x7a7   :  { %v4159_v60 = vpop.f32.mrf.mxu0 }
 0x7a8   :  { %4229 = vsyncpa [#allocation3], 1 }

</bundles_post_ra>
